<compile_context>
chip_gen: v6e
topology: v6e:2x2x1
jax: 0.10.0
libtpu: 0.0.40
codegen_flags: <defaults>
</compile_context>

<pallas_src>
import jax
import jax.numpy as jnp
from jax.experimental import pallas as pl
from jax.experimental.pallas import tpu as pltpu


def _num_groups(channels):
    # mirrors Normalize(): num_groups = channels // 32, min 1
    g = channels // 32
    return g if g > 0 else 1


def _make_resblock_kernel(*, Cin, C1, Cout, H, W, K, groups1, groups2, eps,
                          shortcut_mode):
    """shortcut_mode in {"identity", "nin", "conv"} (static)."""
    pad = K // 2
    HW = H * W

    def group_norm(h, gamma, beta, groups):
        # h: (C, H*W) f32; gamma/beta: (C, 1)
        C = h.shape[0]
        hg = h.reshape(groups, C // groups, HW)
        mean = jnp.mean(hg, axis=(1, 2), keepdims=True)
        var = jnp.mean(jnp.square(hg - mean), axis=(1, 2), keepdims=True)
        hn = ((hg - mean) * jax.lax.rsqrt(var + eps)).reshape(C, HW)
        return hn * gamma + beta

    def silu(h):
        return h * jax.nn.sigmoid(h)

    def fill_padded(pad_ref, h_flat):
        # write h (C, H*W) into the interior of a zeroed (C, H+2p, W+2p) scratch
        C = pad_ref.shape[0]
        pad_ref[...] = jnp.zeros_like(pad_ref)
        pad_ref[:, pad:pad + H, pad:pad + W] = h_flat.reshape(C, H, W)

    def conv_same(pad_ref, w_mat, bias):
        # single lane-dense im2col matmul: (Co, K*K*C) @ (K*K*C, H*W) -> (Co, H*W)
        C = pad_ref.shape[0]
        taps = []
        for kh in range(K):              # K small & static: fully unrolled
            for kw in range(K):
                taps.append(pad_ref[:, kh:kh + H, kw:kw + W].reshape(C, HW))
        patches = jnp.concatenate(taps, axis=0)           # (K*K*C, H*W)
        return jnp.dot(w_mat, patches,
                       preferred_element_type=jnp.float32) + bias

    def kernel(x_ref, g1_ref, b1_ref, w1_ref, cb1_ref,
               g2_ref, b2_ref, w2_ref, cb2_ref, *rest):
        if shortcut_mode == "identity":
            o_ref, pad1_ref, pad2_ref = rest
        else:
            ws_ref, bs_ref, o_ref, pad1_ref, pad2_ref = rest

        x = x_ref[0].astype(jnp.float32)                  # (Cin, H*W), lane-dense

        # ---- shortcut branch ----
        if shortcut_mode == "identity":
            sc = x
        elif shortcut_mode == "nin":                      # 1x1 conv
            sc = jnp.dot(ws_ref[...], x,
                         preferred_element_type=jnp.float32) + bs_ref[...]
        else:                                             # kxk conv shortcut (reuse pad1)
            fill_padded(pad1_ref, x)
            sc = conv_same(pad1_ref, ws_ref[...], bs_ref[...])

        # ---- norm1 -> SiLU -> conv1 ----
        h = silu(group_norm(x, g1_ref[...], b1_ref[...], groups1))
        fill_padded(pad1_ref, h)
        h = conv_same(pad1_ref, w1_ref[...], cb1_ref[...])          # (C1, H*W)

        # ---- norm2 -> SiLU -> dropout (identity at eval) -> conv2 ----
        # TODO(synk): training-mode dropout would need pltpu.prng_seed/prng_random_bits.
        h = silu(group_norm(h, g2_ref[...], b2_ref[...], groups2))
        fill_padded(pad2_ref, h)
        h = conv_same(pad2_ref, w2_ref[...], cb2_ref[...])          # (Cout, H*W)

        o_ref[0] = (sc + h).astype(o_ref.dtype)

    return kernel


def conv_resnet_block_forward(x, params, *, kernel_size=3, eps=1e-6):
    """Fused ConvResnetBlock forward. x: (N, Cin, H, W) NCHW.

    params:
      "norm1": (gamma (Cin,), beta (Cin,))
      "conv1": (w (C1, Cin, K, K), b (C1,))
      "norm2": (gamma (C1,), beta (C1,))
      "conv2": (w (Cout, C1, K, K), b (Cout,))
      "shortcut": (w (Cout, Cin, 1, 1) or (Cout, Cin, K, K), b (Cout,)) if Cin != Cout
    """
    N, Cin, H, W = x.shape
    K = kernel_size
    # TODO(synk): even kernel_size would give H-1 output in PyTorch (pad=k//2); odd K only.
    assert K % 2 == 1, "only odd kernel_size reproduces 'same' output size"
    pad = K // 2
    HW = H * W

    g1, b1 = params["norm1"]
    w1, cb1 = params["conv1"]
    g2, b2 = params["norm2"]
    w2, cb2 = params["conv2"]
    C1 = w1.shape[0]
    Cout = w2.shape[0]
    groups1 = _num_groups(Cin)
    groups2 = _num_groups(C1)

    f32 = jnp.float32
    # weights in lane-dense (Cout', K*K*Cin') matmul layout; column order = (kh, kw, c)
    w1_mat = jnp.transpose(w1, (0, 2, 3, 1)).reshape(C1, K * K * Cin).astype(f32)
    w2_mat = jnp.transpose(w2, (0, 2, 3, 1)).reshape(Cout, K * K * C1).astype(f32)

    if Cin == Cout:
        shortcut_mode = "identity"
        shortcut_inputs = []
    else:
        ws, bs = params["shortcut"]
        if ws.shape[-1] == 1:                              # nin_shortcut (1x1)
            shortcut_mode = "nin"
            ws_mat = ws.reshape(Cout, Cin).astype(f32)
        else:                                              # conv_shortcut (kxk)
            shortcut_mode = "conv"
            ws_mat = jnp.transpose(ws, (0, 2, 3, 1)).reshape(Cout, K * K * Cin).astype(f32)
        shortcut_inputs = [ws_mat, bs.reshape(Cout, 1).astype(f32)]

    inputs = [x.reshape(N, Cin, HW),
              g1.reshape(Cin, 1).astype(f32), b1.reshape(Cin, 1).astype(f32),
              w1_mat, cb1.reshape(C1, 1).astype(f32),
              g2.reshape(C1, 1).astype(f32), b2.reshape(C1, 1).astype(f32),
              w2_mat, cb2.reshape(Cout, 1).astype(f32)] + shortcut_inputs

    def _param_spec(arr):
        # full-array 2-D block, constant index map -> stays VMEM-resident across the grid
        return pl.BlockSpec(arr.shape, lambda n: (0, 0))

    in_specs = ([pl.BlockSpec((1, Cin, HW), lambda n: (n, 0, 0))]
                + [_param_spec(a) for a in inputs[1:]])
    out_spec = pl.BlockSpec((1, Cout, HW), lambda n: (n, 0, 0))

    kernel = _make_resblock_kernel(
        Cin=Cin, C1=C1, Cout=Cout, H=H, W=W, K=K,
        groups1=groups1, groups2=groups2, eps=eps, shortcut_mode=shortcut_mode)

    out = pl.pallas_call(
        kernel,
        out_shape=jax.ShapeDtypeStruct((N, Cout, HW), x.dtype),
        grid_spec=pltpu.PrefetchScalarGridSpec(
            num_scalar_prefetch=0,
            grid=(N,),
            in_specs=in_specs,
            out_specs=out_spec,
            scratch_shapes=[pltpu.VMEM((Cin, H + 2 * pad, W + 2 * pad), f32),
                            pltpu.VMEM((C1, H + 2 * pad, W + 2 * pad), f32)]),
        compiler_params=pltpu.CompilerParams(
            dimension_semantics=("parallel",)),
    )(*inputs)

    # (N, Cout, H*W) -> (N, Cout, H, W) is a metadata-only reshape (already NCHW order)
    return out.reshape(N, Cout, H, W)


# ------------------------- pure-JAX reference -------------------------

def _group_norm_ref(x, gamma, beta, groups, eps=1e-6):
    N, C, H, W = x.shape
    xg = x.reshape(N, groups, -1)
    mean = xg.mean(axis=2, keepdims=True)
    var = ((xg - mean) ** 2).mean(axis=2, keepdims=True)
    xn = ((xg - mean) / jnp.sqrt(var + eps)).reshape(N, C, H, W)
    return xn * gamma.reshape(1, C, 1, 1) + beta.reshape(1, C, 1, 1)


def _conv_ref(x, w, b):
    k = w.shape[-1]
    p = (k - 1) // 2
    y = jax.lax.conv_general_dilated(
        x, w, window_strides=(1, 1), padding=[(p, p), (p, p)],
        dimension_numbers=("NCHW", "OIHW", "NCHW"))
    return y + b.reshape(1, -1, 1, 1)


def _resblock_ref(x, params, eps=1e-6):
    g1, b1 = params["norm1"]
    w1, cb1 = params["conv1"]
    g2, b2 = params["norm2"]
    w2, cb2 = params["conv2"]
    Cin, C1 = x.shape[1], w1.shape[0]
    h = _group_norm_ref(x, g1, b1, _num_groups(Cin), eps)
    h = h * jax.nn.sigmoid(h)
    h = _conv_ref(h, w1, cb1)
    h = _group_norm_ref(h, g2, b2, _num_groups(C1), eps)
    h = h * jax.nn.sigmoid(h)
    h = _conv_ref(h, w2, cb2)
    sc = x
    if "shortcut" in params:
        ws, bs = params["shortcut"]
        sc = _conv_ref(x, ws, bs)
    return sc + h


if __name__ == "__main__":
    # Module config: in_channels=4, out_channels=8, kernel_size=3, dropout(eval)=identity,
    # conv_shortcut=False (-> nin_shortcut 1x1), res_first=False (-> conv1 out = out_channels)
    in_channels, out_channels, kernel_size = 4, 8, 3
    N, H, W = 2, 16, 16
    C1 = out_channels

    key = jax.random.PRNGKey(0)
    ks = jax.random.split(key, 12)
    x = jax.random.normal(ks[0], (N, in_channels, H, W), dtype=jnp.float32)
    params = {
        "norm1": (1.0 + 0.1 * jax.random.normal(ks[1], (in_channels,), jnp.float32),
                  0.1 * jax.random.normal(ks[2], (in_channels,), jnp.float32)),
        "conv1": (0.1 * jax.random.normal(ks[3], (C1, in_channels, kernel_size, kernel_size), jnp.float32),
                  0.1 * jax.random.normal(ks[4], (C1,), jnp.float32)),
        "norm2": (1.0 + 0.1 * jax.random.normal(ks[5], (C1,), jnp.float32),
                  0.1 * jax.random.normal(ks[6], (C1,), jnp.float32)),
        "conv2": (0.1 * jax.random.normal(ks[7], (out_channels, C1, kernel_size, kernel_size), jnp.float32),
                  0.1 * jax.random.normal(ks[8], (out_channels,), jnp.float32)),
        "shortcut": (0.1 * jax.random.normal(ks[9], (out_channels, in_channels, 1, 1), jnp.float32),
                     0.1 * jax.random.normal(ks[10], (out_channels,), jnp.float32)),
    }

    out = conv_resnet_block_forward(x, params, kernel_size=kernel_size)
    out = jax.block_until_ready(out)
    assert out.shape == (N, out_channels, H, W), out.shape

    # silent correctness check against pure-JAX reference
    ref = _resblock_ref(x, params)
    err = float(jnp.max(jnp.abs(out - ref)))
    assert jnp.allclose(out, ref, atol=1e-3, rtol=1e-3), f"mismatch vs reference: {err}"

    print("KERNEL_OK")
</pallas_src>

<mosaic_0001>
module attributes {stable_mosaic.version = 11 : i64} {
  func.func @kernel(%arg0: i32, %arg1: memref<1x4x256xf32, #tpu.memory_space<vmem>>, %arg2: memref<4x1xf32, #tpu.memory_space<vmem>>, %arg3: memref<4x1xf32, #tpu.memory_space<vmem>>, %arg4: memref<8x36xf32, #tpu.memory_space<vmem>>, %arg5: memref<8x1xf32, #tpu.memory_space<vmem>>, %arg6: memref<8x1xf32, #tpu.memory_space<vmem>>, %arg7: memref<8x1xf32, #tpu.memory_space<vmem>>, %arg8: memref<8x72xf32, #tpu.memory_space<vmem>>, %arg9: memref<8x1xf32, #tpu.memory_space<vmem>>, %arg10: memref<8x4xf32, #tpu.memory_space<vmem>>, %arg11: memref<8x1xf32, #tpu.memory_space<vmem>>, %arg12: memref<1x8x256xf32, #tpu.memory_space<vmem>>, %arg13: memref<4x18x18xf32, #tpu.memory_space<vmem>>, %arg14: memref<8x18x18xf32, #tpu.memory_space<vmem>>) attributes {dimension_semantics = [#tpu.dimension_semantics<parallel>], iteration_bounds = array<i64: 2>, scalar_prefetch = 0 : i64, scratch_operands = 2 : i64, tpu.core_type = #tpu.core_type<tc>, window_params = [{transform_indices = @transform_0, window_bounds = array<i64: 1, 4, 256>}, {pipeline_mode = #tpu.pipeline_mode<synchronous>, transform_indices = @transform_1, window_bounds = array<i64: 4, 1>}, {pipeline_mode = #tpu.pipeline_mode<synchronous>, transform_indices = @transform_2, window_bounds = array<i64: 4, 1>}, {pipeline_mode = #tpu.pipeline_mode<synchronous>, transform_indices = @transform_3, window_bounds = array<i64: 8, 36>}, {pipeline_mode = #tpu.pipeline_mode<synchronous>, transform_indices = @transform_4, window_bounds = array<i64: 8, 1>}, {pipeline_mode = #tpu.pipeline_mode<synchronous>, transform_indices = @transform_5, window_bounds = array<i64: 8, 1>}, {pipeline_mode = #tpu.pipeline_mode<synchronous>, transform_indices = @transform_6, window_bounds = array<i64: 8, 1>}, {pipeline_mode = #tpu.pipeline_mode<synchronous>, transform_indices = @transform_7, window_bounds = array<i64: 8, 72>}, {pipeline_mode = #tpu.pipeline_mode<synchronous>, transform_indices = @transform_8, window_bounds = array<i64: 8, 1>}, {pipeline_mode = #tpu.pipeline_mode<synchronous>, transform_indices = @transform_9, window_bounds = array<i64: 8, 4>}, {pipeline_mode = #tpu.pipeline_mode<synchronous>, transform_indices = @transform_10, window_bounds = array<i64: 8, 1>}, {transform_indices = @transform_11, window_bounds = array<i64: 1, 8, 256>}]} {
    %c0 = arith.constant 0 : index
    %c0_0 = arith.constant 0 : index
    %c0_1 = arith.constant 0 : index
    %0 = vector.load %arg1[%c0, %c0_0, %c0_1] : memref<1x4x256xf32, #tpu.memory_space<vmem>>, vector<1x4x256xf32>
    %1 = vector.shape_cast %0 : vector<1x4x256xf32> to vector<4x256xf32>
    %c0_2 = arith.constant 0 : index
    %c0_3 = arith.constant 0 : index
    %2 = vector.load %arg10[%c0_2, %c0_3] : memref<8x4xf32, #tpu.memory_space<vmem>>, vector<8x4xf32>
    %cst = arith.constant dense<0.000000e+00> : vector<8x256xf32>
    %3 = tpu.matmul %2, %1, %cst {dimension_numbers = #tpu.dot_dimension_numbers<[1], [0], [0], [1], [0, 0, 1, 1], [], []>} : vector<8x4xf32>, vector<4x256xf32>, vector<8x256xf32> -> vector<8x256xf32>
    %c0_4 = arith.constant 0 : index
    %c0_5 = arith.constant 0 : index
    %4 = vector.load %arg11[%c0_4, %c0_5] : memref<8x1xf32, #tpu.memory_space<vmem>>, vector<8x1xf32>
    %5 = vector.broadcast %4 : vector<8x1xf32> to vector<8x256xf32>
    %6 = arith.addf %3, %5 : vector<8x256xf32>
    %c0_6 = arith.constant 0 : index
    %c0_7 = arith.constant 0 : index
    %7 = vector.load %arg2[%c0_6, %c0_7] : memref<4x1xf32, #tpu.memory_space<vmem>>, vector<4x1xf32>
    %c0_8 = arith.constant 0 : index
    %c0_9 = arith.constant 0 : index
    %8 = vector.load %arg3[%c0_8, %c0_9] : memref<4x1xf32, #tpu.memory_space<vmem>>, vector<4x1xf32>
    %9 = vector.shape_cast %1 : vector<4x256xf32> to vector<1x4x256xf32>
    %cst_10 = arith.constant dense<0.000000e+00> : vector<1xf32>
    %10 = vector.multi_reduction <add>, %9, %cst_10 [1, 2] : vector<1x4x256xf32> to vector<1xf32>
    %11 = vector.shape_cast %10 : vector<1xf32> to vector<1x1x1xf32>
    %cst_11 = arith.constant 1.024000e+03 : f32
    %12 = vector.broadcast %cst_11 : f32 to vector<1x1x1xf32>
    %13 = arith.divf %11, %12 : vector<1x1x1xf32>
    %14 = vector.broadcast %13 : vector<1x1x1xf32> to vector<1x4x256xf32>
    %15 = arith.subf %9, %14 : vector<1x4x256xf32>
    %16 = arith.mulf %15, %15 : vector<1x4x256xf32>
    %cst_12 = arith.constant dense<0.000000e+00> : vector<1xf32>
    %17 = vector.multi_reduction <add>, %16, %cst_12 [1, 2] : vector<1x4x256xf32> to vector<1xf32>
    %18 = vector.shape_cast %17 : vector<1xf32> to vector<1x1x1xf32>
    %cst_13 = arith.constant 1.024000e+03 : f32
    %19 = vector.broadcast %cst_13 : f32 to vector<1x1x1xf32>
    %20 = arith.divf %18, %19 : vector<1x1x1xf32>
    %21 = vector.broadcast %13 : vector<1x1x1xf32> to vector<1x4x256xf32>
    %22 = arith.subf %9, %21 : vector<1x4x256xf32>
    %cst_14 = arith.constant 9.99999997E-7 : f32
    %23 = vector.broadcast %cst_14 : f32 to vector<1x1x1xf32>
    %24 = arith.addf %20, %23 : vector<1x1x1xf32>
    %25 = math.rsqrt %24 : vector<1x1x1xf32>
    %26 = vector.broadcast %25 : vector<1x1x1xf32> to vector<1x4x256xf32>
    %27 = arith.mulf %22, %26 : vector<1x4x256xf32>
    %28 = vector.shape_cast %27 : vector<1x4x256xf32> to vector<4x256xf32>
    %29 = vector.broadcast %7 : vector<4x1xf32> to vector<4x256xf32>
    %30 = arith.mulf %28, %29 : vector<4x256xf32>
    %31 = vector.broadcast %8 : vector<4x1xf32> to vector<4x256xf32>
    %32 = arith.addf %30, %31 : vector<4x256xf32>
    %33 = arith.negf %32 : vector<4x256xf32>
    %34 = math.exp %33 : vector<4x256xf32>
    %cst_15 = arith.constant 1.000000e+00 : f32
    %35 = vector.broadcast %cst_15 : f32 to vector<4x256xf32>
    %36 = arith.addf %35, %34 : vector<4x256xf32>
    %37 = arith.divf %35, %36 : vector<4x256xf32>
    %38 = arith.mulf %32, %37 : vector<4x256xf32>
    %cst_16 = arith.constant 0.000000e+00 : f32
    %39 = vector.broadcast %cst_16 : f32 to vector<4x18x18xf32>
    %c0_17 = arith.constant 0 : index
    %c0_18 = arith.constant 0 : index
    %c0_19 = arith.constant 0 : index
    %40 = vector.load %arg13[%c0_17, %c0_18, %c0_19] : memref<4x18x18xf32, #tpu.memory_space<vmem>>, vector<4x18x18xf32>
    tpu.vector_store %arg13[%c0_17, %c0_18, %c0_19], %39 {strides = array<i32>} : memref<4x18x18xf32, #tpu.memory_space<vmem>>, vector<4x18x18xf32>,
    %41 = vector.shape_cast %38 : vector<4x256xf32> to vector<4x16x16xf32>
    %c0_20 = arith.constant 0 : index
    %c1 = arith.constant 1 : index
    %c1_21 = arith.constant 1 : index
    %42 = vector.load %arg13[%c0_20, %c1, %c1_21] : memref<4x18x18xf32, #tpu.memory_space<vmem>>, vector<4x16x16xf32>
    tpu.vector_store %arg13[%c0_20, %c1, %c1_21], %41 {strides = array<i32>} : memref<4x18x18xf32, #tpu.memory_space<vmem>>, vector<4x16x16xf32>,
    %c0_22 = arith.constant 0 : index
    %c0_23 = arith.constant 0 : index
    %43 = vector.load %arg4[%c0_22, %c0_23] : memref<8x36xf32, #tpu.memory_space<vmem>>, vector<8x36xf32>
    %c0_24 = arith.constant 0 : index
    %c0_25 = arith.constant 0 : index
    %44 = vector.load %arg5[%c0_24, %c0_25] : memref<8x1xf32, #tpu.memory_space<vmem>>, vector<8x1xf32>
    %c0_26 = arith.constant 0 : index
    %c0_27 = arith.constant 0 : index
    %c0_28 = arith.constant 0 : index
    %45 = vector.load %arg13[%c0_26, %c0_27, %c0_28] : memref<4x18x18xf32, #tpu.memory_space<vmem>>, vector<4x16x16xf32>
    %46 = vector.shape_cast %45 : vector<4x16x16xf32> to vector<4x256xf32>
    %c0_29 = arith.constant 0 : index
    %c0_30 = arith.constant 0 : index
    %c1_31 = arith.constant 1 : index
    %47 = vector.load %arg13[%c0_29, %c0_30, %c1_31] : memref<4x18x18xf32, #tpu.memory_space<vmem>>, vector<4x16x16xf32>
    %48 = vector.shape_cast %47 : vector<4x16x16xf32> to vector<4x256xf32>
    %c0_32 = arith.constant 0 : index
    %c0_33 = arith.constant 0 : index
    %c2 = arith.constant 2 : index
    %49 = vector.load %arg13[%c0_32, %c0_33, %c2] : memref<4x18x18xf32, #tpu.memory_space<vmem>>, vector<4x16x16xf32>
    %50 = vector.shape_cast %49 : vector<4x16x16xf32> to vector<4x256xf32>
    %c0_34 = arith.constant 0 : index
    %c1_35 = arith.constant 1 : index
    %c0_36 = arith.constant 0 : index
    %51 = vector.load %arg13[%c0_34, %c1_35, %c0_36] : memref<4x18x18xf32, #tpu.memory_space<vmem>>, vector<4x16x16xf32>
    %52 = vector.shape_cast %51 : vector<4x16x16xf32> to vector<4x256xf32>
    %c0_37 = arith.constant 0 : index
    %c1_38 = arith.constant 1 : index
    %c1_39 = arith.constant 1 : index
    %53 = vector.load %arg13[%c0_37, %c1_38, %c1_39] : memref<4x18x18xf32, #tpu.memory_space<vmem>>, vector<4x16x16xf32>
    %54 = vector.shape_cast %53 : vector<4x16x16xf32> to vector<4x256xf32>
    %c0_40 = arith.constant 0 : index
    %c1_41 = arith.constant 1 : index
    %c2_42 = arith.constant 2 : index
    %55 = vector.load %arg13[%c0_40, %c1_41, %c2_42] : memref<4x18x18xf32, #tpu.memory_space<vmem>>, vector<4x16x16xf32>
    %56 = vector.shape_cast %55 : vector<4x16x16xf32> to vector<4x256xf32>
    %c0_43 = arith.constant 0 : index
    %c2_44 = arith.constant 2 : index
    %c0_45 = arith.constant 0 : index
    %57 = vector.load %arg13[%c0_43, %c2_44, %c0_45] : memref<4x18x18xf32, #tpu.memory_space<vmem>>, vector<4x16x16xf32>
    %58 = vector.shape_cast %57 : vector<4x16x16xf32> to vector<4x256xf32>
    %c0_46 = arith.constant 0 : index
    %c2_47 = arith.constant 2 : index
    %c1_48 = arith.constant 1 : index
    %59 = vector.load %arg13[%c0_46, %c2_47, %c1_48] : memref<4x18x18xf32, #tpu.memory_space<vmem>>, vector<4x16x16xf32>
    %60 = vector.shape_cast %59 : vector<4x16x16xf32> to vector<4x256xf32>
    %c0_49 = arith.constant 0 : index
    %c2_50 = arith.constant 2 : index
    %c2_51 = arith.constant 2 : index
    %61 = vector.load %arg13[%c0_49, %c2_50, %c2_51] : memref<4x18x18xf32, #tpu.memory_space<vmem>>, vector<4x16x16xf32>
    %62 = vector.shape_cast %61 : vector<4x16x16xf32> to vector<4x256xf32>
    %63 = tpu.concatenate %46, %48, %50, %52, %54, %56, %58, %60, %62 in 0 : vector<4x256xf32>, vector<4x256xf32>, vector<4x256xf32>, vector<4x256xf32>, vector<4x256xf32>, vector<4x256xf32>, vector<4x256xf32>, vector<4x256xf32>, vector<4x256xf32> -> vector<36x256xf32>
    %cst_52 = arith.constant dense<0.000000e+00> : vector<8x256xf32>
    %64 = tpu.matmul %43, %63, %cst_52 {dimension_numbers = #tpu.dot_dimension_numbers<[1], [0], [0], [1], [0, 0, 1, 1], [], []>} : vector<8x36xf32>, vector<36x256xf32>, vector<8x256xf32> -> vector<8x256xf32>
    %65 = vector.broadcast %44 : vector<8x1xf32> to vector<8x256xf32>
    %66 = arith.addf %64, %65 : vector<8x256xf32>
    %c0_53 = arith.constant 0 : index
    %c0_54 = arith.constant 0 : index
    %67 = vector.load %arg6[%c0_53, %c0_54] : memref<8x1xf32, #tpu.memory_space<vmem>>, vector<8x1xf32>
    %c0_55 = arith.constant 0 : index
    %c0_56 = arith.constant 0 : index
    %68 = vector.load %arg7[%c0_55, %c0_56] : memref<8x1xf32, #tpu.memory_space<vmem>>, vector<8x1xf32>
    %69 = vector.shape_cast %66 : vector<8x256xf32> to vector<1x8x256xf32>
    %cst_57 = arith.constant dense<0.000000e+00> : vector<1xf32>
    %70 = vector.multi_reduction <add>, %69, %cst_57 [1, 2] : vector<1x8x256xf32> to vector<1xf32>
    %71 = vector.shape_cast %70 : vector<1xf32> to vector<1x1x1xf32>
    %cst_58 = arith.constant 2.048000e+03 : f32
    %72 = vector.broadcast %cst_58 : f32 to vector<1x1x1xf32>
    %73 = arith.divf %71, %72 : vector<1x1x1xf32>
    %74 = vector.broadcast %73 : vector<1x1x1xf32> to vector<1x8x256xf32>
    %75 = arith.subf %69, %74 : vector<1x8x256xf32>
    %76 = arith.mulf %75, %75 : vector<1x8x256xf32>
    %cst_59 = arith.constant dense<0.000000e+00> : vector<1xf32>
    %77 = vector.multi_reduction <add>, %76, %cst_59 [1, 2] : vector<1x8x256xf32> to vector<1xf32>
    %78 = vector.shape_cast %77 : vector<1xf32> to vector<1x1x1xf32>
    %cst_60 = arith.constant 2.048000e+03 : f32
    %79 = vector.broadcast %cst_60 : f32 to vector<1x1x1xf32>
    %80 = arith.divf %78, %79 : vector<1x1x1xf32>
    %81 = vector.broadcast %73 : vector<1x1x1xf32> to vector<1x8x256xf32>
    %82 = arith.subf %69, %81 : vector<1x8x256xf32>
    %cst_61 = arith.constant 9.99999997E-7 : f32
    %83 = vector.broadcast %cst_61 : f32 to vector<1x1x1xf32>
    %84 = arith.addf %80, %83 : vector<1x1x1xf32>
    %85 = math.rsqrt %84 : vector<1x1x1xf32>
    %86 = vector.broadcast %85 : vector<1x1x1xf32> to vector<1x8x256xf32>
    %87 = arith.mulf %82, %86 : vector<1x8x256xf32>
    %88 = vector.shape_cast %87 : vector<1x8x256xf32> to vector<8x256xf32>
    %89 = vector.broadcast %67 : vector<8x1xf32> to vector<8x256xf32>
    %90 = arith.mulf %88, %89 : vector<8x256xf32>
    %91 = vector.broadcast %68 : vector<8x1xf32> to vector<8x256xf32>
    %92 = arith.addf %90, %91 : vector<8x256xf32>
    %93 = arith.negf %92 : vector<8x256xf32>
    %94 = math.exp %93 : vector<8x256xf32>
    %cst_62 = arith.constant 1.000000e+00 : f32
    %95 = vector.broadcast %cst_62 : f32 to vector<8x256xf32>
    %96 = arith.addf %95, %94 : vector<8x256xf32>
    %97 = arith.divf %95, %96 : vector<8x256xf32>
    %98 = arith.mulf %92, %97 : vector<8x256xf32>
    %cst_63 = arith.constant 0.000000e+00 : f32
    %99 = vector.broadcast %cst_63 : f32 to vector<8x18x18xf32>
    %c0_64 = arith.constant 0 : index
    %c0_65 = arith.constant 0 : index
    %c0_66 = arith.constant 0 : index
    %100 = vector.load %arg14[%c0_64, %c0_65, %c0_66] : memref<8x18x18xf32, #tpu.memory_space<vmem>>, vector<8x18x18xf32>
    tpu.vector_store %arg14[%c0_64, %c0_65, %c0_66], %99 {strides = array<i32>} : memref<8x18x18xf32, #tpu.memory_space<vmem>>, vector<8x18x18xf32>,
    %101 = vector.shape_cast %98 : vector<8x256xf32> to vector<8x16x16xf32>
    %c0_67 = arith.constant 0 : index
    %c1_68 = arith.constant 1 : index
    %c1_69 = arith.constant 1 : index
    %102 = vector.load %arg14[%c0_67, %c1_68, %c1_69] : memref<8x18x18xf32, #tpu.memory_space<vmem>>, vector<8x16x16xf32>
    tpu.vector_store %arg14[%c0_67, %c1_68, %c1_69], %101 {strides = array<i32>} : memref<8x18x18xf32, #tpu.memory_space<vmem>>, vector<8x16x16xf32>,
    %c0_70 = arith.constant 0 : index
    %c0_71 = arith.constant 0 : index
    %103 = vector.load %arg8[%c0_70, %c0_71] : memref<8x72xf32, #tpu.memory_space<vmem>>, vector<8x72xf32>
    %c0_72 = arith.constant 0 : index
    %c0_73 = arith.constant 0 : index
    %104 = vector.load %arg9[%c0_72, %c0_73] : memref<8x1xf32, #tpu.memory_space<vmem>>, vector<8x1xf32>
    %c0_74 = arith.constant 0 : index
    %c0_75 = arith.constant 0 : index
    %c0_76 = arith.constant 0 : index
    %105 = vector.load %arg14[%c0_74, %c0_75, %c0_76] : memref<8x18x18xf32, #tpu.memory_space<vmem>>, vector<8x16x16xf32>
    %106 = vector.shape_cast %105 : vector<8x16x16xf32> to vector<8x256xf32>
    %c0_77 = arith.constant 0 : index
    %c0_78 = arith.constant 0 : index
    %c1_79 = arith.constant 1 : index
    %107 = vector.load %arg14[%c0_77, %c0_78, %c1_79] : memref<8x18x18xf32, #tpu.memory_space<vmem>>, vector<8x16x16xf32>
    %108 = vector.shape_cast %107 : vector<8x16x16xf32> to vector<8x256xf32>
    %c0_80 = arith.constant 0 : index
    %c0_81 = arith.constant 0 : index
    %c2_82 = arith.constant 2 : index
    %109 = vector.load %arg14[%c0_80, %c0_81, %c2_82] : memref<8x18x18xf32, #tpu.memory_space<vmem>>, vector<8x16x16xf32>
    %110 = vector.shape_cast %109 : vector<8x16x16xf32> to vector<8x256xf32>
    %c0_83 = arith.constant 0 : index
    %c1_84 = arith.constant 1 : index
    %c0_85 = arith.constant 0 : index
    %111 = vector.load %arg14[%c0_83, %c1_84, %c0_85] : memref<8x18x18xf32, #tpu.memory_space<vmem>>, vector<8x16x16xf32>
    %112 = vector.shape_cast %111 : vector<8x16x16xf32> to vector<8x256xf32>
    %c0_86 = arith.constant 0 : index
    %c1_87 = arith.constant 1 : index
    %c1_88 = arith.constant 1 : index
    %113 = vector.load %arg14[%c0_86, %c1_87, %c1_88] : memref<8x18x18xf32, #tpu.memory_space<vmem>>, vector<8x16x16xf32>
    %114 = vector.shape_cast %113 : vector<8x16x16xf32> to vector<8x256xf32>
    %c0_89 = arith.constant 0 : index
    %c1_90 = arith.constant 1 : index
    %c2_91 = arith.constant 2 : index
    %115 = vector.load %arg14[%c0_89, %c1_90, %c2_91] : memref<8x18x18xf32, #tpu.memory_space<vmem>>, vector<8x16x16xf32>
    %116 = vector.shape_cast %115 : vector<8x16x16xf32> to vector<8x256xf32>
    %c0_92 = arith.constant 0 : index
    %c2_93 = arith.constant 2 : index
    %c0_94 = arith.constant 0 : index
    %117 = vector.load %arg14[%c0_92, %c2_93, %c0_94] : memref<8x18x18xf32, #tpu.memory_space<vmem>>, vector<8x16x16xf32>
    %118 = vector.shape_cast %117 : vector<8x16x16xf32> to vector<8x256xf32>
    %c0_95 = arith.constant 0 : index
    %c2_96 = arith.constant 2 : index
    %c1_97 = arith.constant 1 : index
    %119 = vector.load %arg14[%c0_95, %c2_96, %c1_97] : memref<8x18x18xf32, #tpu.memory_space<vmem>>, vector<8x16x16xf32>
    %120 = vector.shape_cast %119 : vector<8x16x16xf32> to vector<8x256xf32>
    %c0_98 = arith.constant 0 : index
    %c2_99 = arith.constant 2 : index
    %c2_100 = arith.constant 2 : index
    %121 = vector.load %arg14[%c0_98, %c2_99, %c2_100] : memref<8x18x18xf32, #tpu.memory_space<vmem>>, vector<8x16x16xf32>
    %122 = vector.shape_cast %121 : vector<8x16x16xf32> to vector<8x256xf32>
    %123 = tpu.concatenate %106, %108, %110, %112, %114, %116, %118, %120, %122 in 0 : vector<8x256xf32>, vector<8x256xf32>, vector<8x256xf32>, vector<8x256xf32>, vector<8x256xf32>, vector<8x256xf32>, vector<8x256xf32>, vector<8x256xf32>, vector<8x256xf32> -> vector<72x256xf32>
    %cst_101 = arith.constant dense<0.000000e+00> : vector<8x256xf32>
    %124 = tpu.matmul %103, %123, %cst_101 {dimension_numbers = #tpu.dot_dimension_numbers<[1], [0], [0], [1], [0, 0, 1, 1], [], []>} : vector<8x72xf32>, vector<72x256xf32>, vector<8x256xf32> -> vector<8x256xf32>
    %125 = vector.broadcast %104 : vector<8x1xf32> to vector<8x256xf32>
    %126 = arith.addf %124, %125 : vector<8x256xf32>
    %127 = arith.addf %6, %126 : vector<8x256xf32>
    %c0_102 = arith.constant 0 : index
    %c0_103 = arith.constant 0 : index
    %c0_104 = arith.constant 0 : index
    %128 = vector.load %arg12[%c0_102, %c0_103, %c0_104] : memref<1x8x256xf32, #tpu.memory_space<vmem>>, vector<1x8x256xf32>
    %129 = vector.shape_cast %128 : vector<1x8x256xf32> to vector<8x256xf32>
    %130 = vector.shape_cast %127 : vector<8x256xf32> to vector<1x8x256xf32>
    tpu.vector_store %arg12[%c0_102, %c0_103, %c0_104], %130 {strides = array<i32>} : memref<1x8x256xf32, #tpu.memory_space<vmem>>, vector<1x8x256xf32>,
    return
  }
  func.func @transform_0(%arg0: i32) -> (i32, i32, i32) {
    %c0_i32 = arith.constant 0 : i32
    %c0_i32_0 = arith.constant 0 : i32
    %c0_i32_1 = arith.constant 0 : i32
    return %arg0, %c0_i32, %c0_i32_0 : i32, i32, i32
  }
  func.func @transform_1(%arg0: i32) -> (i32, i32) {
    %c0_i32 = arith.constant 0 : i32
    %c0_i32_0 = arith.constant 0 : i32
    %c0_i32_1 = arith.constant 0 : i32
    return %c0_i32, %c0_i32_0 : i32, i32
  }
  func.func @transform_2(%arg0: i32) -> (i32, i32) {
    %c0_i32 = arith.constant 0 : i32
    %c0_i32_0 = arith.constant 0 : i32
    %c0_i32_1 = arith.constant 0 : i32
    return %c0_i32, %c0_i32_0 : i32, i32
  }
  func.func @transform_3(%arg0: i32) -> (i32, i32) {
    %c0_i32 = arith.constant 0 : i32
    %c0_i32_0 = arith.constant 0 : i32
    %c0_i32_1 = arith.constant 0 : i32
    return %c0_i32, %c0_i32_0 : i32, i32
  }
  func.func @transform_4(%arg0: i32) -> (i32, i32) {
    %c0_i32 = arith.constant 0 : i32
    %c0_i32_0 = arith.constant 0 : i32
    %c0_i32_1 = arith.constant 0 : i32
    return %c0_i32, %c0_i32_0 : i32, i32
  }
  func.func @transform_5(%arg0: i32) -> (i32, i32) {
    %c0_i32 = arith.constant 0 : i32
    %c0_i32_0 = arith.constant 0 : i32
    %c0_i32_1 = arith.constant 0 : i32
    return %c0_i32, %c0_i32_0 : i32, i32
  }
  func.func @transform_6(%arg0: i32) -> (i32, i32) {
    %c0_i32 = arith.constant 0 : i32
    %c0_i32_0 = arith.constant 0 : i32
    %c0_i32_1 = arith.constant 0 : i32
    return %c0_i32, %c0_i32_0 : i32, i32
  }
  func.func @transform_7(%arg0: i32) -> (i32, i32) {
    %c0_i32 = arith.constant 0 : i32
    %c0_i32_0 = arith.constant 0 : i32
    %c0_i32_1 = arith.constant 0 : i32
    return %c0_i32, %c0_i32_0 : i32, i32
  }
  func.func @transform_8(%arg0: i32) -> (i32, i32) {
    %c0_i32 = arith.constant 0 : i32
    %c0_i32_0 = arith.constant 0 : i32
    %c0_i32_1 = arith.constant 0 : i32
    return %c0_i32, %c0_i32_0 : i32, i32
  }
  func.func @transform_9(%arg0: i32) -> (i32, i32) {
    %c0_i32 = arith.constant 0 : i32
    %c0_i32_0 = arith.constant 0 : i32
    %c0_i32_1 = arith.constant 0 : i32
    return %c0_i32, %c0_i32_0 : i32, i32
  }
  func.func @transform_10(%arg0: i32) -> (i32, i32) {
    %c0_i32 = arith.constant 0 : i32
    %c0_i32_0 = arith.constant 0 : i32
    %c0_i32_1 = arith.constant 0 : i32
    return %c0_i32, %c0_i32_0 : i32, i32
  }
  func.func @transform_11(%arg0: i32) -> (i32, i32, i32) {
    %c0_i32 = arith.constant 0 : i32
    %c0_i32_0 = arith.constant 0 : i32
    %c0_i32_1 = arith.constant 0 : i32
    return %arg0, %c0_i32, %c0_i32_0 : i32, i32, i32
  }
}

</mosaic_0001>

<bundles_post_ra>
// kernel: tpu_custom_call.1
= control target key start
LH: loop header
LB: loop body
LE: loop exit
PB: predicated region body
PF: predicated region fallthrough
CT: control target
= control target key end

     0   :  { %s11561_s0 = inlined_call_operand.vmem [shape: f32[2,4,256], index: 0, kind: input, shape index: {}]   ;;  %s11562_s1 = inlined_call_operand.vmem [shape: f32[4,1], index: 1, kind: input, shape index: {}]   ;;  %s11563_s2 = inlined_call_operand.vmem [shape: f32[4,1], index: 2, kind: input, shape index: {}]   ;;  %s11564_s3 = inlined_call_operand.vmem [shape: f32[8,36], index: 3, kind: input, shape index: {}]   ;;  %s11565_s4 = inlined_call_operand.vmem [shape: f32[8,1], index: 4, kind: input, shape index: {}]   ;;  %s11566_s5 = inlined_call_operand.vmem [shape: f32[8,1], index: 5, kind: input, shape index: {}]   ;;  %s11567_s6 = inlined_call_operand.vmem [shape: f32[8,1], index: 6, kind: input, shape index: {}]   ;;  %s11568_s7 = inlined_call_operand.vmem [shape: f32[8,72], index: 7, kind: input, shape index: {}]   ;;  %s11569_s8 = inlined_call_operand.vmem [shape: f32[8,1], index: 8, kind: input, shape index: {}]   ;;  %s11570_s9 = inlined_call_operand.vmem [shape: f32[8,4], index: 9, kind: input, shape index: {}]   ;;  %s11571_s10 = inlined_call_operand.vmem [shape: f32[8,1], index: 10, kind: input, shape index: {}]   ;;  %s11572_s11 = inlined_call_operand.hbm [shape: f32[2,8,256], index: 11, kind: output, shape index: {}]  }
   0x1   :  { %11816 = sst [smem:[#allocation121_spill]] %s11561_s0 }
   0x2   :  { %11817 = sst [smem:[#allocation122_spill]] %s11562_s1 }
   0x3   :  { %16 = vsyncpa [#allocation5], 0 }
   0x4   :  { %18 = vsyncpa [#allocation5 + $0x1], 0  ;;  %s7356_s17 = smov 0   ;;  %s7358_s18 = smov 0  }
   0x5   :  { %s7360_s19 = smov 0   ;;  %s7362_s20 = smov 0  }
   0x6 LB: > { %s7377_s21 = sadd.s32 4294967295, %s7278_s20   ;;  %s7063_s22 = sadd.s32 4294967294, %s7278_s20   ;;  %s7278_s20 = sphi %s7362_s20, %s12447_s20   ;;  %s7274_s19 = sphi %s7360_s19, %s12446_s19   ;;  %s7270_s18 = sphi %s7358_s18, %s12445_s18   ;;  %s7266_s17 = sphi %s7356_s17, %s12444_s17  }
   0x7   : > { %s7381_s23 = sadd.s32 1, %s7278_s20   ;;  %s267_s24 = sadd.s32 1, %s7274_s19 }
   0x8   : > { %s264_s25 = ssub.s32 %s7278_s20, %s7381_s23  ;;  %p277_p0 = scmp.ne.s32.totalorder %s7274_s19, %s7270_s18 }
   0x9   : > { %p265_p1 = scmp.eq.s32.totalorder %s264_s25, 0  ;;  %p278_p2 = scmp.eq.s32.totalorder %s7377_s21, 1 }
   0xa   : > { %p283_p3 = scmp.ne.s32.totalorder %s7270_s18, %s7266_s17  ;;  %p284_p4 = scmp.eq.s32.totalorder %s7063_s22, 1 }
   0xb   : > { %s7392_s26 = scalar_select %p265_p1, %s7274_s19, %s267_s24  }
   0xc   : > { %p7394_p5 = por %p278_p2, %p277_p0  ;;  %p7398_p6 = por %p284_p4, %p283_p3 }
   0xd   : > { %p7066_p7 = scmp.ge.s32.totalorder %s7278_s20, 1  ;;  %p340_p8 = scmp.lt.s32.totalorder %s7278_s20, 3 }
   0xf   : > { %p341_p9 = pnand %p7066_p7, %p340_p8 }
  0x11   : > { %344 = sbr.rel (%p341_p9) target bundleno = 2746 (0xaba), region = 64 }
  0x16   : > { %p380_p10 = scmp.lt.s32.totalorder %s7377_s21, 1  ;;  %vm399_vm0 = vcmask 1043456   ;;  %s11820_s0 = sld [smem:[#allocation121_spill]]  ;;  %v7280_v6 = vmov 0   ;;  %v476_v7 = vld [vmem:[%s11563_s2] sm:$0xf]  ;;  %v518_v33 = vlaneseq }
  0x17   : > { %s11821_s1 = sld [smem:[#allocation122_spill]]  ;;  %7145 = vset.pattern.permute.xlu1 %v7280_v6  ;;  %7146 = vset.pattern.permute.xlu0 %v7280_v6  ;;  %v7281_v31 = vmov 839922192   ;;  %s7282_s25 = smov 96   ;;  %vm544_vm1 = vcmask 146432   ;;  %v11577_v50 = vmov 0.0  }
  0x18   : > { %s381_s29 = scalar_select %p380_p10, %s7377_s21, 1  ;;  %v516_v32 = vunpack.c.l.s4 %v7281_v31  ;;  %v7421_v35 = vshrl.u32 %v518_v33, 7  ;;  %549 = vst.msk [vmem:[#allocation2 + $0x18] sm:$0xff] %vm544_vm1, %v11577_v50  ;;  %550 = vst.msk [vmem:[#allocation2 + $0x20] sm:$0xff] %vm544_vm1, %v11577_v50  ;;  %468 = vmatprep.mubr.f32.mxu1 %v11577_v50  ;;  %6978 = vmatprep.mubr.f32.mxu0 %v11577_v50  ;;  %v7290_v53 = vmov 1983009808  }
  0x19   : > { %s11618_s12 = smov 64   ;;  %s11612_s13 = smov 48   ;;  %545 = vst.msk [vmem:[#allocation2] sm:$0xff] %vm544_vm1, %v11577_v50  ;;  %546 = vst.msk [vmem:[#allocation2 + $0x8] sm:$0xff] %vm544_vm1, %v11577_v50  ;;  %v598_v54 = vunpack.c.l.s4 %v7290_v53  ;;  %v7291_v57 = vmov 1934713408  }
  0x1a   : > { %s7089_s30 = sshll.u32 %s381_s29, 3  ;;  %v517_v34 = vunpack.c.0.s8 %v516_v32  ;;  %s7283_s29 = smov 112   ;;  %552 = vst.msk [vmem:[#allocation2 + $0x30] sm:$0xff] %vm544_vm1, %v11577_v50  ;;  %553 = vst.msk [vmem:[#allocation2 + $0x38] sm:$0xff] %vm544_vm1, %v11577_v50  ;;  %v615_v58 = vunpack.c.l.s4 %v7291_v57  ;;  %vm547_vm2 = vcmask 140288   ;;  %vm780_vm3 = vcmask 138248  }
  0x1b   : > { %s11610_s15 = smov 16   ;;  %555 = vst.msk [vmem:[#allocation2 + $0x48] sm:$0xff] %vm544_vm1, %v11577_v50  ;;  %556 = vst.msk [vmem:[#allocation2 + $0x50] sm:$0xff] %vm544_vm1, %v11577_v50  ;;  %v599_v56 = vunpack.c.0.s8 %v598_v54  ;;  %s11608_s16 = smov 1   ;;  %vm395_vm4 = vcmask 31744   ;;  %vm991_vm5 = vcmask 130048  }
  0x1c   : > { %s384_s14 = scalar_lea.vmem %s11820_s0, %s7089_s30  ;;  %v520_v37 = vsub.s32 %v517_v34, %v7421_v35  ;;  %s11616_s30 = smov 80   ;;  %3021 = vst.msk [vmem:[#allocation3] sm:$0xff] %vm544_vm1, %v11577_v50  ;;  %3022 = vst.msk [vmem:[#allocation3 + $0x8] sm:$0xff] %vm544_vm1, %v11577_v50  ;;  %v616_v63 = vunpack.c.0.s8 %v615_v58  ;;  %vm993_vm6 = vcmask 261120   ;;  %vm995_vm7 = vcmask 392192  }
  0x1d   : > { %v385_v0 = vld [vmem:[%s384_s14] sm:$0xff]  ;;  %s11614_s14 = smov 32   ;;  %3024 = vst.msk [vmem:[#allocation3 + $0x18] sm:$0xff] %vm544_vm1, %v11577_v50  ;;  %3025 = vst.msk [vmem:[#allocation3 + $0x20] sm:$0xff] %vm544_vm1, %v11577_v50  ;;  %v7491_v62 = vsub.s32 %v599_v56, %v7421_v35  ;;  %s11573_s22 = smov 126   ;;  %vm997_vm8 = vcmask 523264  }
  0x1e   : > { %v394_v1 = vcombine.high %v385_v0, %v385_v0  ;;  %v478_v2 = vsel %vm399_vm0, %v385_v0, 0.0  ;;  %v475_v5 = vld [vmem:[%s11821_s1] sm:$0xf]  ;;  %3027 = vst.msk [vmem:[#allocation3 + $0x30] sm:$0xff] %vm544_vm1, %v11577_v50  ;;  %3028 = vst.msk [vmem:[#allocation3 + $0x38] sm:$0xff] %vm544_vm1, %v11577_v50  ;;  %v7496_v6 = vsub.s32 %v616_v63, %v7421_v35  ;;  %s11575_s24 = smov 127  }
  0x1f   : > { %513 = vperm.xlu1 %7145, %v475_v5   ;;  %3030 = vst.msk [vmem:[#allocation3 + $0x48] sm:$0xff] %vm544_vm1, %v11577_v50  ;;  %3031 = vst.msk [vmem:[#allocation3 + $0x50] sm:$0xff] %vm544_vm1, %v11577_v50  ;;  %vm999_vm9 = vcmask 654336   ;;  %vm1001_vm10 = vcmask 785408   ;;  %vm1003_vm11 = vcmask 916480   ;;  %vm2881_vm12 = vcmask 293888  }
  0x20   : > { %v479_v3 = vsel %vm399_vm0, %v394_v1, 0.0  ;;  %7070 = vmatprep.subr.msk.mxu1 %vm399_vm0, %v394_v1  ;;  %3033 = vst.msk [vmem:[#allocation3 + $0x60] sm:$0xff] %vm544_vm1, %v11577_v50  ;;  %3034 = vst.msk [vmem:[#allocation3 + $0x68] sm:$0xff] %vm544_vm1, %v11577_v50  ;;  %vm6910_vm13 = vcmask 588800  }
  0x21   : > { %v480_v4 = vadd.f32 %v479_v3, %v478_v2  ;;  %7071 = vmatpush1.msk.msra.mxu1 %vm399_vm0, %v385_v0  ;;  %3036 = vst.msk [vmem:[#allocation3 + $0x78] sm:$0xff] %vm544_vm1, %v11577_v50  ;;  %3037 = vst.msk [vmem:[#allocation3 + $0x80] sm:$0xff] %vm544_vm1, %v11577_v50 }
  0x22   : > { %3039 = vst.msk [vmem:[#allocation3 + $0x90] sm:$0xff] %vm544_vm1, %v11577_v50  ;;  %3040 = vst.msk [vmem:[#allocation3 + $0x98] sm:$0xff] %vm544_vm1, %v11577_v50 }
  0x23   : > { %481 = vadd.xlane.f32.xlu0 %v480_v4  ;;  %526 = vperm.xlu1 %7145, %v476_v7   ;;  %3042 = vst.msk [vmem:[#allocation3 + $0xa8] sm:$0xff] %vm544_vm1, %v11577_v50  ;;  %3043 = vst.msk [vmem:[#allocation3 + $0xb0] sm:$0xff] %vm544_vm1, %v11577_v50 }
  0x24   : > { %11822 = vst [vmem:[#allocation7_spill] sm:$0xff] %v7491_v62  ;;  %11823 = vst [vmem:[#allocation8_spill] sm:$0xff] %v7496_v6 }
  0x25   : > { %551 = vst.msk [vmem:[#allocation2 + $0x28] sm:$0x3] %vm547_vm2, %v11577_v50  ;;  %548 = vst.msk [vmem:[#allocation2 + $0x10] sm:$0x3] %vm547_vm2, %v11577_v50 }
  0x26   : > { %554 = vst.msk [vmem:[#allocation2 + $0x40] sm:$0x3] %vm547_vm2, %v11577_v50  ;;  %557 = vst.msk [vmem:[#allocation2 + $0x58] sm:$0x3] %vm547_vm2, %v11577_v50 }
  0x27   : > { %3023 = vst.msk [vmem:[#allocation3 + $0x10] sm:$0x3] %vm547_vm2, %v11577_v50  ;;  %3026 = vst.msk [vmem:[#allocation3 + $0x28] sm:$0x3] %vm547_vm2, %v11577_v50 }
  0x28   : > { %3029 = vst.msk [vmem:[#allocation3 + $0x40] sm:$0x3] %vm547_vm2, %v11577_v50  ;;  %3032 = vst.msk [vmem:[#allocation3 + $0x58] sm:$0x3] %vm547_vm2, %v11577_v50 }
  0x29   : > { %3035 = vst.msk [vmem:[#allocation3 + $0x70] sm:$0x3] %vm547_vm2, %v11577_v50  ;;  %3038 = vst.msk [vmem:[#allocation3 + $0x88] sm:$0x3] %vm547_vm2, %v11577_v50 }
  0x2a   : > { %3041 = vst.msk [vmem:[#allocation3 + $0xa0] sm:$0x3] %vm547_vm2, %v11577_v50  ;;  %3044 = vst.msk [vmem:[#allocation3 + $0xb8] sm:$0x3] %vm547_vm2, %v11577_v50 }
  0x9a   : > { %v514_v36 = vpop.permute.xlu1 %513 }
  0x9b   : > { %v521_v41 = vrot.slane %v514_v36, %v520_v37 }
  0x9e   : > { %v527_v39 = vpop.permute.xlu1 %526 }
  0x9f   : > { %v534_v43 = vrot.slane %v527_v39, %v520_v37 }
  0xac   : > { %v482_v8 = vpop.xlane.xlu0 %481 }
  0xad   : > { %v483_v9 = vrot.slane %v482_v8, 4 }
  0xaf   : > { %v484_v10 = vadd.f32 %v483_v9, %v482_v8 }
  0xb1   : > { %v485_v11 = vrot.slane %v484_v10, 2 }
  0xb3   : > { %v486_v12 = vadd.f32 %v485_v11, %v484_v10 }
  0xb5   : > { %v487_v13 = vrot.slane %v486_v12, 1 }
  0xb7   : > { %v488_v14 = vadd.f32 %v487_v13, %v486_v12 }
  0xb9   : > { %v490_v15 = vmul.f32 0.0009765625, %v488_v14 }
  0xbb   : > { %v491_v16 = vsub.f32 %v385_v0, %v490_v15 }
  0xbd   : > { %v492_v17 = vmul.f32 %v491_v16, %v491_v16 }
  0xbf   : > { %v494_v18 = vcombine.high %v492_v17, %v492_v17  ;;  %v496_v19 = vsel %vm399_vm0, %v492_v17, 0.0 }
  0xc1   : > { %v497_v20 = vsel %vm399_vm0, %v494_v18, 0.0 }
  0xc2   : > { %v498_v21 = vadd.f32 %v497_v20, %v496_v19 }
  0xc4   : > { %499 = vadd.xlane.f32.xlu0 %v498_v21 }
 0x14d   : > { %v500_v22 = vpop.xlane.xlu0 %499 }
 0x14e   : > { %v501_v23 = vrot.slane %v500_v22, 4 }
 0x150   : > { %v502_v24 = vadd.f32 %v501_v23, %v500_v22 }
 0x152   : > { %v503_v25 = vrot.slane %v502_v24, 2 }
 0x154   : > { %v504_v26 = vadd.f32 %v503_v25, %v502_v24 }
 0x156   : > { %v505_v27 = vrot.slane %v504_v26, 1 }
 0x158   : > { %v506_v28 = vadd.f32 %v505_v27, %v504_v26 }
 0x15a   : > { %v507_v29 = vmul.f32 0.0009765625, %v506_v28 }
 0x15c   : > { %v508_v30 = vadd.f32 1e-06, %v507_v29 }
 0x15e   : > { %7202 = vrsqrt.f32 %v508_v30 }
 0x16b   : > { %v7203_v38 = vpop.eup %7202 }
 0x16c   : > { %v510_v40 = vmul.f32 %v7203_v38, %v491_v16 }
 0x16e   : > { %v523_v42 = vmul.f32 %v521_v41, %v510_v40 }
 0x170   : > { %v536_v44 = vadd.f32 %v534_v43, %v523_v42 }
 0x172   : > { %v7073_v45 = vmul.f32 -1.442695, %v536_v44 }
 0x174   : > { %7204 = vpow2.f32 %v7073_v45 }
 0x181   : > { %v7205_v46 = vpop.eup %7204 }
 0x182   : > { %v540_v47 = vadd.f32 1.0, %v7205_v46 }
 0x184   : > { %7206 = vrcp.f32 %v540_v47 }
 0x191   : > { %v7207_v48 = vpop.eup %7206 }
 0x192   : > { %v7424_v49 = vmul.f32 %v7207_v48, %v536_v44 }
 0x194   : > { %565 = vrot.lane.b32.xlu1 %v7424_v49, %s7282_s25  ;;  %561 = vrot.lane.b32.xlu0 %v7424_v49, %s7283_s29  ;;  %v559_v15 = vrot.slane %v7424_v49, 4 }
 0x198   : > { %569 = vrot.lane.b32.xlu1 %v7424_v49, %s11616_s30 }
 0x19c   : > { %573 = vrot.lane.b32.xlu1 %v7424_v49, %s11618_s12 }
 0x1a0   : > { %577 = vrot.lane.b32.xlu1 %v7424_v49, %s11612_s13 }
 0x1a4   : > { %581 = vrot.lane.b32.xlu1 %v7424_v49, %s11614_s14 }
 0x1a8   : > { %585 = vrot.lane.b32.xlu1 %v7424_v49, %s11610_s15 }
 0x206   : > { %v566_v51 = vpop.permute.xlu1 %565  ;;  %v562_v60 = vpop.permute.xlu0 %561 }
 0x207   : > { %v596_v0 = vcombine.low %v7424_v49, %v566_v51  ;;  %v567_v7 = vrot.slane %v566_v51, 4  ;;  %v563_v9 = vrot.slane %v562_v60, 4 }
 0x209   : > { %v603_v8 = vrot.slane %v596_v0, %v7491_v62  ;;  %v664_v22 = vcombine.low %v559_v15, %v567_v7 }
 0x20a   : > { %v570_v52 = vpop.permute.xlu1 %569 }
 0x20b   : > { %v604_v61 = vcombine.low %v562_v60, %v570_v52  ;;  %v571_v2 = vrot.slane %v570_v52, 4  ;;  %v671_v31 = vrot.slane %v664_v22, %v7491_v62 }
 0x20d   : > { %v611_v3 = vrot.slane %v604_v61, %v7491_v62  ;;  %v672_v17 = vcombine.low %v563_v9, %v571_v2 }
 0x20e   : > { %v574_v55 = vpop.permute.xlu1 %573 }
 0x20f   : > { %v575_v11 = vrot.slane %v574_v55, 4  ;;  %v612_v16 = vcombine.low %v603_v8, %v611_v3  ;;  %v613_v26 = vcombine.high %v603_v8, %v611_v3  ;;  %v679_v27 = vrot.slane %v672_v17, %v7491_v62 }
 0x211   : > { %v620_v29 = vrot.slane %v612_v16, %v7496_v6  ;;  %v627_v36 = vrot.slane %v613_v26, %v7496_v6  ;;  %v680_v37 = vcombine.low %v671_v31, %v679_v27  ;;  %v681_v43 = vcombine.high %v671_v31, %v679_v27 }
 0x212   : > { %v578_v59 = vpop.permute.xlu1 %577 }
 0x213   : > { %v579_v12 = vrot.slane %v578_v59, 4  ;;  %v688_v42 = vrot.slane %v680_v37, %v7496_v6  ;;  %v695_v47 = vrot.slane %v681_v43, %v7496_v6 }
 0x216   : > { %v582_v1 = vpop.permute.xlu1 %581 }
 0x217   : > { %v583_v4 = vrot.slane %v582_v1, 4  ;;  %v630_v5 = vcombine.low %v574_v55, %v582_v1 }
 0x219   : > { %v637_v18 = vrot.slane %v630_v5, %v7491_v62  ;;  %v698_v19 = vcombine.low %v575_v11, %v583_v4 }
 0x21a   : > { %v586_v10 = vpop.permute.xlu1 %585 }
 0x21b   : > { %v587_v13 = vrot.slane %v586_v10, 4  ;;  %v638_v14 = vcombine.low %v578_v59, %v586_v10  ;;  %v705_v28 = vrot.slane %v698_v19, %v7491_v62 }
 0x21d   : > { %v645_v20 = vrot.slane %v638_v14, %v7491_v62  ;;  %v706_v21 = vcombine.low %v579_v12, %v587_v13 }
 0x21f   : > { %v646_v23 = vcombine.low %v637_v18, %v645_v20  ;;  %v647_v24 = vcombine.high %v637_v18, %v645_v20  ;;  %v713_v25 = vrot.slane %v706_v21, %v7491_v62 }
 0x221   : > { %v654_v30 = vrot.slane %v646_v23, %v7496_v6  ;;  %v661_v34 = vrot.slane %v647_v24, %v7496_v6  ;;  %v714_v35 = vcombine.low %v705_v28, %v713_v25  ;;  %v715_v41 = vcombine.high %v705_v28, %v713_v25 }
 0x223   : > { %v7074_v32 = vcombine.high %v620_v29, %v654_v30  ;;  %v748_v33 = vcombine.low %v620_v29, %v654_v30  ;;  %v7076_v38 = vcombine.high %v627_v36, %v661_v34  ;;  %v752_v39 = vcombine.low %v627_v36, %v661_v34 }
 0x224   : > { %v722_v40 = vrot.slane %v714_v35, %v7496_v6  ;;  %v729_v46 = vrot.slane %v715_v41, %v7496_v6 }
 0x225   : > { %760 = vrot.lane.b32.xlu1 %v7074_v32, %s11608_s16  ;;  %756 = vrot.lane.b32.xlu0 %v748_v33, %s11608_s16 }
 0x226   : > { %v7075_v44 = vcombine.high %v688_v42, %v722_v40  ;;  %v749_v45 = vcombine.low %v688_v42, %v722_v40  ;;  %v7077_v48 = vcombine.high %v695_v47, %v729_v46  ;;  %v753_v49 = vcombine.low %v695_v47, %v729_v46 }
 0x229   : > { %768 = vrot.lane.b32.xlu1 %v7076_v38, %s11608_s16  ;;  %764 = vrot.lane.b32.xlu0 %v752_v39, %s11608_s16 }
 0x22d   : > { %762 = vrot.lane.b32.xlu1 %v7075_v44, %s11608_s16  ;;  %758 = vrot.lane.b32.xlu0 %v749_v45, %s11608_s16 }
 0x231   : > { %770 = vrot.lane.b32.xlu1 %v7077_v48, %s11608_s16  ;;  %766 = vrot.lane.b32.xlu0 %v753_v49, %s11608_s16  ;;  %s12010_s16 = smov 48  }
 0x297   : > { %v761_v51 = vpop.permute.xlu1 %760  ;;  %v757_v52 = vpop.permute.xlu0 %756 }
 0x298   : > { %783 = vst.msk [vmem:[#allocation2 + $0x19] sm:$0xff] %vm780_vm3, %v761_v51  ;;  %781 = vst.msk [vmem:[#allocation2 + $0x1] sm:$0xff] %vm780_vm3, %v757_v52 }
 0x29b   : > { %v769_v53 = vpop.permute.xlu1 %768  ;;  %v765_v54 = vpop.permute.xlu0 %764 }
 0x29c   : > { %787 = vst.msk [vmem:[#allocation2 + $0x49] sm:$0xff] %vm780_vm3, %v769_v53  ;;  %785 = vst.msk [vmem:[#allocation2 + $0x31] sm:$0xff] %vm780_vm3, %v765_v54 }
 0x29f   : > { %v763_v55 = vpop.permute.xlu1 %762  ;;  %v759_v56 = vpop.permute.xlu0 %758  ;;  %v1482_v57 = vld [vmem:[#allocation2 + $0x19] sm:$0xff]  ;;  %v1480_v58 = vld [vmem:[#allocation2 + $0x1] sm:$0xff] }
 0x2a0   : > { %784 = vst.msk [vmem:[#allocation2 + $0x21] sm:$0xff] %vm780_vm3, %v763_v55  ;;  %782 = vst.msk [vmem:[#allocation2 + $0x9] sm:$0xff] %vm780_vm3, %v759_v56  ;;  %1936 = vrot.lane.b32.xlu1 %v1482_v57, %s11573_s22  ;;  %1932 = vrot.lane.b32.xlu0 %v1480_v58, %s11573_s22  ;;  %v793_v5 = vld [vmem:[#allocation2 + $0x18] sm:$0xff]  ;;  %v791_v7 = vld [vmem:[#allocation2] sm:$0xff] }
 0x2a3   : > { %v771_v59 = vpop.permute.xlu1 %770  ;;  %v767_v60 = vpop.permute.xlu0 %766  ;;  %v1486_v61 = vld [vmem:[#allocation2 + $0x49] sm:$0xff]  ;;  %v1484_v63 = vld [vmem:[#allocation2 + $0x31] sm:$0xff] }
 0x2a4   : > { %v7554_v0 = vld [vmem:[#allocation2 + $0x48] sm:$0xff]  ;;  %788 = vst.msk [vmem:[#allocation2 + $0x51] sm:$0xff] %vm780_vm3, %v771_v59  ;;  %786 = vst.msk [vmem:[#allocation2 + $0x39] sm:$0xff] %vm780_vm3, %v767_v60  ;;  %v1504_v1 = vcombine.low %v1482_v57, %v1486_v61  ;;  %v1505_v2 = vcombine.high %v1482_v57, %v1486_v61  ;;  %1944 = vrot.lane.b32.xlu1 %v1486_v61, %s11573_s22  ;;  %v1488_v3 = vcombine.low %v1480_v58, %v1484_v63  ;;  %v795_v8 = vld [vmem:[#allocation2 + $0x30] sm:$0xff] }
 0x2a5   : > { %v1489_v4 = vcombine.high %v1480_v58, %v1484_v63  ;;  %1940 = vrot.lane.b32.xlu0 %v1484_v63, %s11573_s22  ;;  %v815_v9 = vcombine.low %v793_v5, %v7554_v0  ;;  %v816_v10 = vcombine.high %v793_v5, %v7554_v0  ;;  %v799_v11 = vcombine.low %v791_v7, %v795_v8 }
 0x2a6   : > { %v800_v12 = vcombine.high %v791_v7, %v795_v8  ;;  %v7563_v13 = vrot.slane %v1488_v3, %v7491_v62  ;;  %v7566_v14 = vrot.slane %v1504_v1, %v7491_v62  ;;  %v7572_v16 = vrot.slane %v1505_v2, %v7491_v62 }
 0x2a7   : > { %v7569_v15 = vrot.slane %v1489_v4, %v7491_v62  ;;  %v7575_v17 = vrot.slane %v799_v11, %v7491_v62  ;;  %v7578_v18 = vrot.slane %v815_v9, %v7491_v62  ;;  %v7584_v20 = vrot.slane %v816_v10, %v7491_v62  ;;  %v2165_v29 = vld [vmem:[#allocation2 + $0x22] sm:$0xff]  ;;  %v2163_v30 = vld [vmem:[#allocation2 + $0xa] sm:$0xff]  ;;  %v7612_v40 = vld [vmem:[#allocation2 + $0x1a] sm:$0xff] }
 0x2a8   : > { %v7581_v19 = vrot.slane %v800_v12, %v7491_v62  ;;  %1706 = vrot.lane.b32.xlu1 %v1482_v57, %s11575_s24  ;;  %v1521_v21 = vcombine.high %v7563_v13, %v7566_v14  ;;  %v1520_v24 = vcombine.low %v7563_v13, %v7566_v14  ;;  %v7607_v38 = vld [vmem:[#allocation2 + $0x2] sm:$0xff] }
 0x2a9   : > { %11825 = vst [vmem:[#allocation10_spill] sm:$0xff] %v7584_v20  ;;  %v1537_v22 = vcombine.high %v7569_v15, %v7572_v16  ;;  %v1536_v23 = vcombine.low %v7569_v15, %v7572_v16  ;;  %1702 = vrot.lane.b32.xlu0 %v1480_v58, %s11575_s24  ;;  %v832_v25 = vcombine.high %v7575_v17, %v7578_v18  ;;  %v1483_v56 = vld [vmem:[#allocation2 + $0x21] sm:$0xff]  ;;  %v1481_v57 = vld [vmem:[#allocation2 + $0x9] sm:$0xff] }
 0x2aa   : > { %11824 = vst [vmem:[#allocation9_spill] sm:$0xff] %v7581_v19  ;;  %v847_v26 = vcombine.low %v7581_v19, %v7584_v20  ;;  %v831_v27 = vcombine.low %v7575_v17, %v7578_v18  ;;  %v7690_v60 = vld [vmem:[#allocation2 + $0x20] sm:$0xff]  ;;  %v1535_v4 = vrot.slane %v1521_v21, %v7496_v6 }
 0x2ab   : > { %v2169_v31 = vld [vmem:[#allocation2 + $0x52] sm:$0xff]  ;;  %v2167_v32 = vld [vmem:[#allocation2 + $0x3a] sm:$0xff]  ;;  %v7604_v33 = vld [vmem:[#allocation2 + $0x4a] sm:$0xff]  ;;  %v7722_v3 = vrot.slane %v832_v25, %v7496_v6  ;;  %v7741_v10 = vrot.slane %v1537_v22, %v7496_v6  ;;  %v1544_v11 = vrot.slane %v1536_v23, %v7496_v6  ;;  %v7771_v23 = vrot.slane %v1520_v24, %v7496_v6 }
 0x2ac   : > { %1714 = vrot.lane.b32.xlu1 %v1486_v61, %s11575_s24  ;;  %v2254_v34 = vcombine.low %v2165_v29, %v2169_v31  ;;  %v2255_v35 = vcombine.high %v2165_v29, %v2169_v31  ;;  %v2238_v36 = vcombine.low %v2163_v30, %v2167_v32  ;;  %v2239_v37 = vcombine.high %v2163_v30, %v2167_v32  ;;  %v7609_v39 = vld [vmem:[#allocation2 + $0x32] sm:$0xff]  ;;  %v7694_v61 = vld [vmem:[#allocation2 + $0x8] sm:$0xff] }
 0x2ad   : > { %1710 = vrot.lane.b32.xlu0 %v1484_v63, %s11575_s24  ;;  %v2171_v41 = vcombine.high %v7607_v38, %v7609_v39  ;;  %v2187_v42 = vcombine.high %v7612_v40, %v7604_v33  ;;  %v1487_v58 = vld [vmem:[#allocation2 + $0x51] sm:$0xff]  ;;  %v1485_v59 = vld [vmem:[#allocation2 + $0x39] sm:$0xff]  ;;  %v2186_v1 = vcombine.low %v7612_v40, %v7604_v33  ;;  %v2170_v2 = vcombine.low %v7607_v38, %v7609_v39 }
 0x2ae   : > { %v7620_v43 = vrot.slane %v2238_v36, %v7491_v62  ;;  %v7623_v44 = vrot.slane %v2254_v34, %v7491_v62  ;;  %v7637_v49 = vrot.slane %v2239_v37, %v7491_v62  ;;  %v7640_v51 = vrot.slane %v2255_v35, %v7491_v62  ;;  %v7698_v63 = vld [vmem:[#allocation2 + $0x50] sm:$0xff]  ;;  %11826 = vst [vmem:[#allocation11_spill] sm:$0xff] %v7771_v23 }
 0x2af   : > { %v7627_v45 = vrot.slane %v2171_v41, %v7491_v62  ;;  %v7634_v48 = vrot.slane %v2187_v42, %v7491_v62  ;;  %v1556_v9 = vcombine.low %v1481_v57, %v1485_v59  ;;  %v7756_v21 = vrot.slane %v847_v26, %v7496_v6 }
 0x2b0   : > { %1024 = vrot.lane.b32.xlu1 %v793_v5, %s11575_s24  ;;  %v2271_v46 = vcombine.high %v7620_v43, %v7623_v44  ;;  %v2270_v47 = vcombine.low %v7620_v43, %v7623_v44  ;;  %v2286_v53 = vcombine.low %v7637_v49, %v7640_v51  ;;  %v2287_v55 = vcombine.high %v7637_v49, %v7640_v51 }
 0x2b1   : > { %1020 = vrot.lane.b32.xlu0 %v791_v7, %s11575_s24  ;;  %v2218_v52 = vcombine.low %v7627_v45, %v7634_v48  ;;  %v2219_v54 = vcombine.high %v7627_v45, %v7634_v48  ;;  %v7759_v22 = vrot.slane %v1556_v9, %v7491_v62  ;;  %v1573_v25 = vcombine.high %v1483_v56, %v1487_v58 }
 0x2b2   : > { %v1557_v26 = vcombine.high %v1481_v57, %v1485_v59  ;;  %v1552_v13 = vcombine.high %v7771_v23, %v11577_v50  ;;  %v7817_v37 = vrot.slane %v2286_v53, %v7496_v6  ;;  %v7864_v45 = vrot.slane %v831_v27, %v7496_v6 }
 0x2b3   : > { %v7803_v34 = vrot.slane %v2218_v52, %v7496_v6  ;;  %v884_v52 = vcombine.high %v7690_v60, %v7698_v63 }
 0x2b4   : > { %1032 = vrot.lane.b32.xlu1 %v7554_v0, %s11575_s24  ;;  %v1571_v24 = vrot.slane %v1557_v26, %v7491_v62  ;;  %11827 = vst [vmem:[#allocation12_spill] sm:$0xff] %v7864_v45  ;;  %v863_v17 = vcombine.high %v7864_v45, %v11577_v50 }
 0x2b5   : > { %1028 = vrot.lane.b32.xlu0 %v795_v8, %s11575_s24 }
 0x2b8   : > { %1254 = vrot.lane.b32.xlu1 %v793_v5, %s11573_s22  ;;  %v7729_v5 = vrot.slane %v2170_v2, %v7491_v62 }
 0x2b9   : > { %1250 = vrot.lane.b32.xlu0 %v791_v7, %s11573_s22  ;;  %v7732_v7 = vrot.slane %v2186_v1, %v7491_v62  ;;  %v1554_v1 = vcombine.high %v1544_v11, %v11577_v50 }
 0x2bb   : > { %v2203_v12 = vcombine.high %v7729_v5, %v7732_v7  ;;  %v2202_v9 = vcombine.low %v7729_v5, %v7732_v7 }
 0x2bc   : > { %1262 = vrot.lane.b32.xlu1 %v7554_v0, %s11573_s22  ;;  %v7702_v0 = vld [vmem:[#allocation2 + $0x38] sm:$0xff] }
 0x2bd   : > { %1258 = vrot.lane.b32.xlu0 %v795_v8, %s11573_s22  ;;  %v1572_v8 = vcombine.low %v1483_v56, %v1487_v58  ;;  %v7765_v16 = vrot.slane %v2203_v12, %v7496_v6  ;;  %v868_v53 = vcombine.high %v7694_v61, %v7702_v0 }
 0x2bf   : > { %v7762_v15 = vrot.slane %v1572_v8, %v7491_v62  ;;  %v2235_v43 = vcombine.high %v7765_v16, %v11577_v50 }
 0x2c0   : > { %2390 = vrot.lane.b32.xlu1 %v2165_v29, %s11575_s24 }
 0x2c1   : > { %2386 = vrot.lane.b32.xlu0 %v2163_v30, %s11575_s24  ;;  %v1588_v5 = vcombine.low %v7759_v22, %v7762_v15 }
 0x2c4   : > { %2398 = vrot.lane.b32.xlu1 %v2169_v31, %s11575_s24 }
 0x2c5   : > { %2394 = vrot.lane.b32.xlu0 %v2167_v32, %s11575_s24 }
 0x2c8   : > { %2388 = vrot.lane.b32.xlu1 %v7612_v40, %s11575_s24 }
 0x2c9   : > { %2384 = vrot.lane.b32.xlu0 %v7607_v38, %s11575_s24 }
 0x2cc   : > { %2396 = vrot.lane.b32.xlu1 %v7604_v33, %s11575_s24 }
 0x2cd   : > { %2392 = vrot.lane.b32.xlu0 %v7609_v39, %s11575_s24 }
 0x2d0   : > { %2620 = vrot.lane.b32.xlu1 %v2165_v29, %s11573_s22  ;;  %v7781_v29 = vrot.slane %v2271_v46, %v7496_v6 }
 0x2d1   : > { %2616 = vrot.lane.b32.xlu0 %v2163_v30, %s11573_s22  ;;  %v1589_v30 = vcombine.high %v7759_v22, %v7762_v15  ;;  %v865_v15 = vcombine.high %v7756_v21, %v11577_v50 }
 0x2d2   : > { %v2303_v44 = vcombine.high %v7781_v29, %v11577_v50 }
 0x2d3   : > { %v7791_v14 = vrot.slane %v1589_v30, %v7496_v6  ;;  %v7912_v30 = vrot.slane %v2202_v9, %v7496_v6 }
 0x2d4   : > { %2628 = vrot.lane.b32.xlu1 %v2169_v31, %s11573_s22  ;;  %v1587_v31 = vrot.slane %v1573_v25, %v7491_v62  ;;  %v864_v25 = vcombine.high %v7722_v3, %v11577_v50 }
 0x2d5   : > { %2624 = vrot.lane.b32.xlu0 %v2167_v32, %s11573_s22  ;;  %v883_v32 = vcombine.low %v7690_v60, %v7698_v63  ;;  %11829 = vst [vmem:[#allocation14_spill] sm:$0xff] %v7912_v30 }
 0x2d7   : > { %v7824_v41 = vrot.slane %v883_v32, %v7491_v62 }
 0x2d8   : > { %1938 = vrot.lane.b32.xlu1 %v1483_v56, %s11573_s22 }
 0x2d9   : > { %1934 = vrot.lane.b32.xlu0 %v1481_v57, %s11573_s22 }
 0x2dc   : > { %1946 = vrot.lane.b32.xlu1 %v1487_v58, %s11573_s22 }
 0x2dd   : > { %1942 = vrot.lane.b32.xlu0 %v1485_v59, %s11573_s22 }
 0x2e0   : > { %2618 = vrot.lane.b32.xlu1 %v7612_v40, %s11573_s22 }
 0x2e1   : > { %2614 = vrot.lane.b32.xlu0 %v7607_v38, %s11573_s22  ;;  %v1604_v38 = vcombine.low %v1571_v24, %v1587_v31 }
 0x2e3   : > { %v7832_v46 = vrot.slane %v1604_v38, %v7496_v6 }
 0x2e4   : > { %2626 = vrot.lane.b32.xlu1 %v7604_v33, %s11573_s22  ;;  %v867_v33 = vcombine.low %v7694_v61, %v7702_v0 }
 0x2e5   : > { %2622 = vrot.lane.b32.xlu0 %v7609_v39, %s11573_s22  ;;  %v1553_v39 = vcombine.high %v1535_v4, %v11577_v50 }
 0x2e6   : > { %v7821_v40 = vrot.slane %v867_v33, %v7491_v62 }
 0x2e8   : > { %1708 = vrot.lane.b32.xlu1 %v1483_v56, %s11575_s24 }
 0x2e9   : > { %1704 = vrot.lane.b32.xlu0 %v1481_v57, %s11575_s24  ;;  %v7844_v57 = vrot.slane %v2219_v54, %v7496_v6 }
 0x2ec   : > { %1716 = vrot.lane.b32.xlu1 %v1487_v58, %s11575_s24  ;;  %v900_v58 = vcombine.high %v7821_v40, %v7824_v41 }
 0x2ed   : > { %1712 = vrot.lane.b32.xlu0 %v1485_v59, %s11575_s24 }
 0x2ee   : > { %v7869_v54 = vrot.slane %v900_v58, %v7496_v6  ;;  %v2236_v58 = vcombine.high %v7803_v34, %v11577_v50 }
 0x2f0   : > { %1026 = vrot.lane.b32.xlu1 %v7690_v60, %s11575_s24 }
 0x2f1   : > { %1022 = vrot.lane.b32.xlu0 %v7694_v61, %s11575_s24 }
 0x2f4   : > { %1034 = vrot.lane.b32.xlu1 %v7698_v63, %s11575_s24 }
 0x2f5   : > { %1030 = vrot.lane.b32.xlu0 %v7702_v0, %s11575_s24  ;;  %s12014_s24 = smov 1  }
 0x2f8   : > { %1256 = vrot.lane.b32.xlu1 %v7690_v60, %s11573_s22  ;;  %v7858_v60 = vrot.slane %v2287_v55, %v7496_v6 }
 0x2f9   : > { %1252 = vrot.lane.b32.xlu0 %v7694_v61, %s11573_s22  ;;  %v1605_v61 = vcombine.high %v1571_v24, %v1587_v31  ;;  %v2234_v24 = vcombine.high %v7912_v30, %v11577_v50  ;;  %v7928_v31 = vrot.slane %v1588_v5, %v7496_v6 }
 0x2fb   : > { %v7884_v27 = vrot.slane %v1605_v61, %v7496_v6  ;;  %11830 = vst [vmem:[#allocation15_spill] sm:$0xff] %v7928_v31  ;;  %v1620_v33 = vcombine.high %v7928_v31, %v11577_v50 }
 0x2fc   : > { %1264 = vrot.lane.b32.xlu1 %v7698_v63, %s11573_s22  ;;  %v882_v63 = vrot.slane %v868_v53, %v7491_v62 }
 0x2fd   : > { %1260 = vrot.lane.b32.xlu0 %v7702_v0, %s11573_s22  ;;  %v898_v0 = vrot.slane %v884_v52, %v7491_v62  ;;  %s12011_s22 = smov 16  }
 0x2ff   : > { %v915_v51 = vcombine.low %v882_v63, %v898_v0  ;;  %v916_v8 = vcombine.high %v882_v63, %v898_v0  ;;  %v1621_v63 = vcombine.high %v7791_v14, %v11577_v50 }
 0x300   : > { %940 = vrot.lane.b32.xlu1 %v7722_v3, %s11614_s14  ;;  %v1555_v3 = vcombine.high %v7741_v10, %v11577_v50 }
 0x301   : > { %1629 = vrot.lane.b32.xlu0 %v1535_v4, %s11614_s14  ;;  %v7895_v4 = vrot.slane %v915_v51, %v7496_v6  ;;  %v7909_v26 = vrot.slane %v916_v8, %v7496_v6 }
 0x303   : > { %11828 = vst [vmem:[#allocation13_spill] sm:$0xff] %v7909_v26 }
 0x304   : > { %1645 = vrot.lane.b32.xlu1 %v7741_v10, %s7282_s25  ;;  %v7940_v10 = vrot.slane %v2270_v47, %v7496_v6 }
 0x305   : > { %1637 = vrot.lane.b32.xlu0 %v1544_v11, %s11618_s12 }
 0x306   : > { %11831 = vst [vmem:[#allocation16_spill] sm:$0xff] %v7940_v10 }
 0x308   : > { %948 = vrot.lane.b32.xlu1 %v7756_v21, %s11618_s12  ;;  %v2302_v21 = vcombine.high %v7940_v10, %v11577_v50 }
 0x309   : > { %2311 = vrot.lane.b32.xlu0 %v7765_v16, %s11614_s14 }
 0x30c   : > { %2339 = vrot.lane.b32.xlu1 %v7781_v29, %s11614_s14  ;;  %v386_v29 = vld [vmem:[%s11570_s9] sm:$0xff] }
 0x30d   : > { %1625 = vrot.lane.b32.xlu0 %v1552_v13, %s11610_s15  ;;  %7072 = vmatmul.mubr.msk.f32.vlgmr.msra.gmra.mxu1 %vm395_vm4, %v386_v29 }
 0x30e   : > { %2955 = vmatprep.mubr.f32.mxu1 %v11577_v50 }
 0x310   : > { %1657 = vrot.lane.b32.xlu1 %v7791_v14, %s11614_s14  ;;  %v2304_v14 = vcombine.high %v7817_v37, %v11577_v50 }
 0x311   : > { %2319 = vrot.lane.b32.xlu0 %v7803_v34, %s11618_s12  ;;  %v899_v34 = vcombine.low %v7821_v40, %v7824_v41 }
 0x312   : > { %v7809_v35 = vpop.permute.xlu1 %1936  ;;  %v7811_v36 = vpop.permute.xlu0 %1932 }
 0x313   : > { %v8001_v41 = vrot.slane %v899_v34, %v7496_v6 }
 0x314   : > { %2347 = vrot.lane.b32.xlu1 %v7817_v37, %s11618_s12 }
 0x315   : > { %1633 = vrot.lane.b32.xlu0 %v1553_v39, %s11612_s13  ;;  %11834 = vst [vmem:[#allocation19_spill] sm:$0xff] %v8001_v41 }
 0x316   : > { %v7829_v42 = vpop.permute.xlu1 %1944 }
 0x317   : > { %v7838_v56 = vpop.permute.xlu0 %1940  ;;  %v1973_v34 = vcombine.high %v7809_v35, %v7829_v42 }
 0x318   : > { %1665 = vrot.lane.b32.xlu1 %v7832_v46, %s11618_s12  ;;  %v1956_v9 = vcombine.low %v7811_v36, %v7838_v56 }
 0x319   : > { %2327 = vrot.lane.b32.xlu0 %v7844_v57, %s7282_s25 }
 0x31a   : > { %v7852_v59 = vpop.permute.xlu1 %1706 }
 0x31b   : > { %v7866_v48 = vpop.permute.xlu0 %1702 }
 0x31c   : > { %2355 = vrot.lane.b32.xlu1 %v7858_v60, %s7282_s25 }
 0x31d   : > { %968 = vrot.lane.b32.xlu0 %v7869_v54, %s11614_s14 }
 0x31e   : > { %v7877_v49 = vpop.permute.xlu1 %1714 }
 0x31f   : > { %v7881_v18 = vpop.permute.xlu0 %1710 }
 0x320   : > { %936 = vrot.lane.b32.xlu1 %v863_v17, %s11610_s15 }
 0x321   : > { %1673 = vrot.lane.b32.xlu0 %v7884_v27, %s7282_s25 }
 0x322   : > { %v7889_v55 = vpop.permute.xlu1 %1024 }
 0x323   : > { %v7892_v2 = vpop.permute.xlu0 %1020 }
 0x324   : > { %1641 = vrot.lane.b32.xlu1 %v1554_v1, %s11616_s30  ;;  %v2237_v1 = vcombine.high %v7844_v57, %v11577_v50  ;;  %v1972_v57 = vcombine.low %v7809_v35, %v7829_v42 }
 0x325   : > { %976 = vrot.lane.b32.xlu0 %v7895_v4, %s11618_s12 }
 0x326   : > { %v7902_v12 = vpop.permute.xlu1 %1032 }
 0x327   : > { %v7906_v11 = vpop.permute.xlu0 %1028 }
 0x328   : > { %944 = vrot.lane.b32.xlu1 %v864_v25, %s11612_s13 }
 0x329   : > { %984 = vrot.lane.b32.xlu0 %v7909_v26, %s7282_s25 }
 0x32a   : > { %v7919_v7 = vpop.permute.xlu1 %1254 }
 0x32b   : > { %v7923_v13 = vpop.permute.xlu0 %1250 }
 0x32c   : > { %1649 = vrot.lane.b32.xlu1 %v1555_v3, %s7283_s29  ;;  %v932_v3 = vcombine.high %v7869_v54, %v11577_v50  ;;  %v1045_v54 = vcombine.high %v7892_v2, %v7906_v11 }
 0x32d   : > { %2307 = vrot.lane.b32.xlu0 %v2234_v24, %s11610_s15  ;;  %v1742_v24 = vcombine.low %v7852_v59, %v7877_v49 }
 0x32e   : > { %v7932_v22 = vpop.permute.xlu1 %1262 }
 0x32f   : > { %v7942_v32 = vpop.permute.xlu0 %1258  ;;  %v1291_v42 = vcombine.high %v7919_v7, %v7932_v22 }
 0x330   : > { %952 = vrot.lane.b32.xlu1 %v865_v15, %s11616_s30  ;;  %v1726_v15 = vcombine.low %v7866_v48, %v7881_v18 }
 0x331   : > { %1653 = vrot.lane.b32.xlu0 %v1620_v33, %s11610_s15 }
 0x332   : > { %v7948_v38 = vpop.permute.xlu1 %2390 }
 0x333   : > { %v7952_v39 = vpop.permute.xlu0 %2386 }
 0x334   : > { %2335 = vrot.lane.b32.xlu1 %v2302_v21, %s11610_s15  ;;  %v1061_v21 = vcombine.high %v7889_v55, %v7902_v12 }
 0x335   : > { %2315 = vrot.lane.b32.xlu0 %v2235_v43, %s11612_s13 }
 0x336   : > { %v7960_v47 = vpop.permute.xlu1 %2398  ;;  %v8062_v35 = vrot.slane %v1061_v21, %v7491_v62  ;;  %v8084_v21 = vrot.slane %v1973_v34, %v7491_v62  ;;  %v1060_v34 = vcombine.low %v7889_v55, %v7902_v12  ;;  %v1044_v55 = vcombine.low %v7892_v2, %v7906_v11 }
 0x337   : > { %v2492_v52 = vcombine.low %v7948_v38, %v7960_v47  ;;  %v7964_v53 = vpop.permute.xlu0 %2394 }
 0x338   : > { %v2476_v16 = vcombine.low %v7952_v39, %v7964_v53  ;;  %2343 = vrot.lane.b32.xlu1 %v2303_v44, %s11612_s13  ;;  %v8134_v2 = vrot.slane %v1060_v34, %v7491_v62  ;;  %v1274_v34 = vcombine.low %v7923_v13, %v7942_v32 }
 0x339   : > { %v7972_v61 = vrot.slane %v2492_v52, %v7491_v62  ;;  %2323 = vrot.lane.b32.xlu0 %v2236_v58, %s11616_s30  ;;  %v931_v52 = vcombine.high %v8001_v41, %v11577_v50  ;;  %v8036_v58 = vrot.slane %v1972_v57, %v7491_v62  ;;  %v1622_v57 = vcombine.high %v7832_v46, %v11577_v50 }
 0x33a   : > { %v7983_v0 = vrot.slane %v2476_v16, %v7491_v62  ;;  %v7985_v17 = vpop.permute.xlu1 %2388  ;;  %v8039_v16 = vrot.slane %v1956_v9, %v7491_v62  ;;  %v8055_v9 = vrot.slane %v1742_v24, %v7491_v62  ;;  %v1275_v46 = vcombine.high %v7923_v13, %v7942_v32 }
 0x33b   : > { %11832 = vst [vmem:[#allocation17_spill] sm:$0xff] %v7972_v61  ;;  %v7987_v51 = vpop.permute.xlu0 %2384 }
 0x33c   : > { %11833 = vst [vmem:[#allocation18_spill] sm:$0xff] %v7983_v0  ;;  %1661 = vrot.lane.b32.xlu1 %v1621_v63, %s11612_s13  ;;  %v1623_v63 = vcombine.high %v7884_v27, %v11577_v50  ;;  %v1989_v27 = vcombine.high %v8039_v16, %v8036_v58 }
 0x33d   : > { %2331 = vrot.lane.b32.xlu0 %v2237_v1, %s7283_s29  ;;  %v1957_v1 = vcombine.high %v7811_v36, %v7838_v56  ;;  %v8065_v36 = vrot.slane %v1045_v54, %v7491_v62 }
 0x33e   : > { %v7998_v40 = vpop.permute.xlu1 %2396 }
 0x33f   : > { %v2424_v25 = vcombine.low %v7985_v17, %v7998_v40  ;;  %v8009_v5 = vpop.permute.xlu0 %2392  ;;  %v8087_v54 = vrot.slane %v1957_v1, %v7491_v62 }
 0x340   : > { %v2408_v37 = vcombine.low %v7987_v51, %v8009_v5  ;;  %2351 = vrot.lane.b32.xlu1 %v2304_v14, %s11616_s30 }
 0x341   : > { %v8021_v33 = vrot.slane %v2424_v25, %v7491_v62  ;;  %972 = vrot.lane.b32.xlu0 %v932_v3, %s11612_s13  ;;  %v8058_v25 = vrot.slane %v1726_v15, %v7491_v62  ;;  %v2305_v3 = vcombine.high %v7858_v60, %v11577_v50 }
 0x342   : > { %v8029_v43 = vrot.slane %v2408_v37, %v7491_v62  ;;  %v8031_v44 = vpop.permute.xlu1 %2620  ;;  %v933_v37 = vcombine.high %v7895_v4, %v11577_v50  ;;  %v1727_v4 = vcombine.high %v7866_v48, %v7881_v18 }
 0x343   : > { %v8041_v29 = vpop.permute.xlu0 %2616 }
 0x344   : > { %964 = vrot.lane.b32.xlu1 %v931_v52, %s11610_s15  ;;  %v1743_v52 = vcombine.high %v7852_v59, %v7877_v49  ;;  %v1092_v59 = vcombine.low %v8065_v36, %v8062_v35  ;;  %v8107_v49 = vrot.slane %v1291_v42, %v7491_v62 }
 0x345   : > { %1677 = vrot.lane.b32.xlu0 %v1623_v63, %s7283_s29  ;;  %v1759_v63 = vcombine.high %v8058_v25, %v8055_v9 }
 0x346   : > { %v8071_v56 = vpop.permute.xlu1 %2628  ;;  %v8144_v28 = vrot.slane %v1092_v59, %v7496_v6 }
 0x347   : > { %v2722_v24 = vcombine.low %v8031_v44, %v8071_v56  ;;  %v8081_v15 = vpop.permute.xlu0 %2624 }
 0x348   : > { %v2706_v60 = vcombine.low %v8041_v29, %v8081_v15  ;;  %1669 = vrot.lane.b32.xlu1 %v1622_v57, %s11616_s30  ;;  %v8110_v57 = vrot.slane %v1275_v46, %v7491_v62  ;;  %v2004_v46 = vcombine.low %v8087_v54, %v8084_v21 }
 0x349   : > { %v8101_v1 = vrot.slane %v2722_v24, %v7491_v62  ;;  %980 = vrot.lane.b32.xlu0 %v933_v37, %s11616_s30  ;;  %v8122_v37 = vrot.slane %v1989_v27, %v7496_v6  ;;  %v1757_v24 = vrot.slane %v1743_v52, %v7491_v62  ;;  %v8147_v52 = vrot.slane %v1044_v55, %v7491_v62 }
 0x34a   : > { %v8113_v48 = vrot.slane %v2706_v60, %v7491_v62  ;;  %v8115_v18 = vpop.permute.xlu1 %1938  ;;  %v1741_v60 = vrot.slane %v1727_v4, %v7491_v62  ;;  %v1322_v11 = vcombine.low %v8110_v57, %v8107_v49  ;;  %v1290_v4 = vcombine.low %v7919_v7, %v7932_v22 }
 0x34b   : > { %11835 = vst [vmem:[#allocation20_spill] sm:$0xff] %v8101_v1  ;;  %v8119_v12 = vpop.permute.xlu0 %1934  ;;  %v1077_v55 = vcombine.high %v8147_v52, %v8134_v2  ;;  %v8185_v41 = vrot.slane %v2004_v46, %v7496_v6 }
 0x34c   : > { %2359 = vrot.lane.b32.xlu1 %v2305_v3, %s7283_s29  ;;  %v8141_v3 = vrot.slane %v1759_v63, %v7496_v6  ;;  %v1775_v7 = vcombine.high %v1741_v60, %v1757_v24  ;;  %v8172_v32 = vrot.slane %v1322_v11, %v7496_v6  ;;  %v8177_v14 = vrot.slane %v1290_v4, %v7491_v62 }
 0x34d   : > { %2097 = vrot.lane.b32.xlu0 %v8122_v37, %s11614_s14  ;;  %v1093_v11 = vcombine.high %v8065_v36, %v8062_v35  ;;  %v8207_v45 = vrot.slane %v1077_v55, %v7496_v6  ;;  %v1323_v36 = vcombine.high %v8110_v57, %v8107_v49  ;;  %v1774_v10 = vcombine.low %v1741_v60, %v1757_v24 }
 0x34e   : > { %v8138_v27 = vpop.permute.xlu1 %1946  ;;  %v2477_v49 = vcombine.high %v7952_v39, %v7964_v53  ;;  %v2739_v57 = vcombine.high %v8113_v48, %v8101_v1 }
 0x34f   : > { %v2040_v8 = vcombine.low %v8115_v18, %v8138_v27  ;;  %v8155_v42 = vpop.permute.xlu0 %1942  ;;  %v8226_v23 = vrot.slane %v1093_v11, %v7496_v6  ;;  %v8248_v60 = vrot.slane %v1323_v36, %v7496_v6  ;;  %v2005_v11 = vcombine.high %v8087_v54, %v8084_v21 }
 0x350   : > { %v2024_v63 = vcombine.low %v8119_v12, %v8155_v42  ;;  %1193 = vrot.lane.b32.xlu1 %v8144_v28, %s11618_s12  ;;  %v8257_v39 = vrot.slane %v1774_v10, %v7496_v6  ;;  %v8267_v36 = vrot.slane %v2477_v49, %v7491_v62  ;;  %v2723_v21 = vcombine.high %v8031_v44, %v8071_v56 }
 0x351   : > { %v8162_v59 = vrot.slane %v2040_v8, %v7491_v62  ;;  %1867 = vrot.lane.b32.xlu0 %v8141_v3, %s11614_s14  ;;  %v8180_v8 = vrot.slane %v1274_v34, %v7491_v62  ;;  %v8198_v34 = vrot.slane %v1775_v7, %v7496_v6  ;;  %11838 = vst [vmem:[#allocation23_spill] sm:$0xff] %v8248_v60 }
 0x352   : > { %v8167_v13 = vrot.slane %v2024_v63, %v7491_v62  ;;  %v8169_v22 = vpop.permute.xlu1 %2618  ;;  %v2707_v10 = vcombine.high %v8041_v29, %v8081_v15  ;;  %v8286_v19 = vrot.slane %v2739_v57, %v7496_v6  ;;  %v2509_v44 = vcombine.high %v7983_v0, %v7972_v61 }
 0x353   : > { %11836 = vst [vmem:[#allocation21_spill] sm:$0xff] %v8162_v59  ;;  %v8182_v50 = vpop.permute.xlu0 %2614  ;;  %v1307_v46 = vcombine.high %v8180_v8, %v8177_v14  ;;  %v1988_v15 = vcombine.low %v8039_v16, %v8036_v58  ;;  %v2441_v58 = vcombine.high %v8029_v43, %v8021_v33  ;;  %v2041_v0 = vcombine.high %v8115_v18, %v8138_v27 }
 0x354   : > { %11837 = vst [vmem:[#allocation22_spill] sm:$0xff] %v8167_v13  ;;  %1423 = vrot.lane.b32.xlu1 %v8172_v32, %s11618_s12  ;;  %v2057_v20 = vcombine.high %v8167_v13, %v8162_v59  ;;  %11840 = vst [vmem:[#allocation25_spill] sm:$0xff] %v8286_v19  ;;  %v8323_v13 = vrot.slane %v2509_v44, %v7496_v6 }
 0x355   : > { %2105 = vrot.lane.b32.xlu0 %v8185_v41, %s11618_s12  ;;  %v8338_v61 = vrot.slane %v1988_v15, %v7496_v6  ;;  %v2409_v15 = vcombine.high %v7987_v51, %v8009_v5  ;;  %v8358_v1 = vrot.slane %v2441_v58, %v7496_v6 }
 0x356   : > { %v8195_v4 = vpop.permute.xlu1 %2626  ;;  %v8314_v29 = vrot.slane %v2057_v20, %v7496_v6  ;;  %11842 = vst [vmem:[#allocation27_spill] sm:$0xff] %v8323_v13 }
 0x357   : > { %v2654_v63 = vcombine.low %v8169_v22, %v8195_v4  ;;  %v8204_v31 = vpop.permute.xlu0 %2622  ;;  %11844 = vst [vmem:[#allocation29_spill] sm:$0xff] %v8338_v61  ;;  %11845 = vst [vmem:[#allocation30_spill] sm:$0xff] %v8358_v1 }
 0x358   : > { %v2638_v30 = vcombine.low %v8182_v50, %v8204_v31  ;;  %1883 = vrot.lane.b32.xlu1 %v8198_v34, %s7282_s25  ;;  %11841 = vst [vmem:[#allocation26_spill] sm:$0xff] %v8314_v29 }
 0x359   : > { %v8214_v35 = vrot.slane %v2654_v63, %v7491_v62  ;;  %1185 = vrot.lane.b32.xlu0 %v8207_v45, %s11614_s14  ;;  %v8231_v63 = vrot.slane %v1307_v46, %v7496_v6 }
 0x35a   : > { %v8221_v7 = vrot.slane %v2638_v30, %v7491_v62  ;;  %v8223_v55 = vpop.permute.xlu1 %1708  ;;  %v2493_v30 = vcombine.high %v7948_v38, %v7960_v47 }
 0x35b   : > { %v8228_v26 = vpop.permute.xlu0 %1704 }
 0x35c   : > { %1201 = vrot.lane.b32.xlu1 %v8226_v23, %s7282_s25  ;;  %v8264_v46 = vrot.slane %v2493_v30, %v7491_v62 }
 0x35d   : > { %1415 = vrot.lane.b32.xlu0 %v8231_v63, %s11614_s14 }
 0x35e   : > { %v8245_v24 = vpop.permute.xlu1 %1716  ;;  %v2524_v57 = vcombine.low %v8267_v36, %v8264_v46 }
 0x35f   : > { %v1810_v38 = vcombine.low %v8223_v55, %v8245_v24  ;;  %v8254_v47 = vpop.permute.xlu0 %1712 }
 0x360   : > { %v1794_v53 = vcombine.low %v8228_v26, %v8254_v47  ;;  %1431 = vrot.lane.b32.xlu1 %v8248_v60, %s7282_s25 }
 0x361   : > { %v8272_v54 = vrot.slane %v1810_v38, %v7491_v62  ;;  %1875 = vrot.lane.b32.xlu0 %v8257_v39, %s11618_s12  ;;  %v8293_v38 = vrot.slane %v2005_v11, %v7496_v6  ;;  %v8309_v11 = vrot.slane %v2707_v10, %v7491_v62  ;;  %v8335_v10 = vrot.slane %v2524_v57, %v7496_v6 }
 0x362   : > { %v8281_v30 = vrot.slane %v1794_v53, %v7491_v62  ;;  %v8283_v49 = vpop.permute.xlu1 %1026  ;;  %v8306_v53 = vrot.slane %v2723_v21, %v7491_v62  ;;  %v2425_v57 = vcombine.high %v7985_v17, %v7998_v40  ;;  %v8369_v40 = vrot.slane %v2041_v0, %v7491_v62 }
 0x363   : > { %11839 = vst [vmem:[#allocation24_spill] sm:$0xff] %v8272_v54  ;;  %v8290_v56 = vpop.permute.xlu0 %1022  ;;  %11843 = vst [vmem:[#allocation28_spill] sm:$0xff] %v8335_v10  ;;  %v2671_v0 = vcombine.high %v8221_v7, %v8214_v35 }
 0x364   : > { %2807 = vrot.lane.b32.xlu1 %v8286_v19, %s11614_s14  ;;  %v2754_v44 = vcombine.low %v8309_v11, %v8306_v53  ;;  %v1827_v5 = vcombine.high %v8281_v30, %v8272_v54  ;;  %v8382_v58 = vrot.slane %v2425_v57, %v7491_v62  ;;  %v1758_v54 = vcombine.low %v8058_v25, %v8055_v9 }
 0x365   : > { %2113 = vrot.lane.b32.xlu0 %v8293_v38, %s7282_s25  ;;  %v2525_v9 = vcombine.high %v8267_v36, %v8264_v46 }
 0x366   : > { %v8311_v59 = vpop.permute.xlu1 %1034  ;;  %v8379_v27 = vrot.slane %v2754_v44, %v7496_v6 }
 0x367   : > { %v1128_v16 = vcombine.low %v8283_v49, %v8311_v59  ;;  %v8320_v19 = vpop.permute.xlu0 %1030 }
 0x368   : > { %v1112_v21 = vcombine.low %v8290_v56, %v8320_v19  ;;  %2125 = vrot.lane.b32.xlu1 %v8314_v29, %s11614_s14  ;;  %v2025_v29 = vcombine.high %v8119_v12, %v8155_v42  ;;  %v11846_v12 = vmov 0.0   ;;  %11847 = vst [vmem:[#allocation31_spill] sm:$0xff] %v8379_v27 }
 0x369   : > { %v8330_v20 = vrot.slane %v1128_v16, %v7491_v62  ;;  %2577 = vrot.lane.b32.xlu0 %v8323_v13, %s11614_s14  ;;  %v2020_v17 = vcombine.high %v8338_v61, %v11846_v12 }
 0x36a   : > { %v8347_v16 = vrot.slane %v1112_v21, %v7491_v62  ;;  %v8349_v60 = vpop.permute.xlu1 %1256  ;;  %v8372_v51 = vrot.slane %v2025_v29, %v7491_v62  ;;  %v8385_v21 = vrot.slane %v2409_v15, %v7491_v62 }
 0x36b   : > { %v8355_v13 = vpop.permute.xlu0 %1252 }
 0x36c   : > { %2585 = vrot.lane.b32.xlu1 %v8335_v10, %s11618_s12  ;;  %v2072_v57 = vcombine.low %v8372_v51, %v8369_v40 }
 0x36d   : > { %2549 = vrot.lane.b32.xlu0 %v8358_v1, %s11614_s14  ;;  %v8409_v1 = vrot.slane %v1827_v5, %v7496_v6 }
 0x36e   : > { %v8376_v42 = vpop.permute.xlu1 %1264  ;;  %v8431_v5 = vrot.slane %v2072_v57, %v7496_v6  ;;  %v1145_v57 = vcombine.high %v8347_v16, %v8330_v20 }
 0x36f   : > { %v1358_v29 = vcombine.low %v8349_v60, %v8376_v42  ;;  %v8391_v18 = vpop.permute.xlu0 %1260  ;;  %11849 = vst [vmem:[#allocation33_spill] sm:$0xff] %v8409_v1 }
 0x370   : > { %v1342_v61 = vcombine.low %v8355_v13, %v8391_v18  ;;  %2815 = vrot.lane.b32.xlu1 %v8379_v27, %s11618_s12 }
 0x371   : > { %v8398_v44 = vrot.slane %v1358_v29, %v7491_v62  ;;  %2093 = vrot.lane.b32.xlu0 %v2020_v17, %s11610_s15  ;;  %v2456_v29 = vcombine.low %v8385_v21, %v8382_v58  ;;  %v8418_v17 = vrot.slane %v2671_v0, %v7496_v6  ;;  %v2655_v0 = vcombine.high %v8169_v22, %v8195_v4 }
 0x372   : > { %v8404_v15 = vrot.slane %v1342_v61, %v7491_v62  ;;  %v8406_v10 = vpop.permute.xlu1 %940  ;;  %v2639_v61 = vcombine.high %v8182_v50, %v8204_v31  ;;  %v2755_v22 = vcombine.high %v8309_v11, %v8306_v53  ;;  %v8454_v50 = vrot.slane %v2525_v9, %v7496_v6 }
 0x373   : > { %11848 = vst [vmem:[#allocation32_spill] sm:$0xff] %v8406_v10  ;;  %v8415_v27 = vpop.permute.xlu0 %1629  ;;  %v2669_v31 = vrot.slane %v2655_v0, %v7491_v62  ;;  %v1811_v53 = vcombine.high %v8223_v55, %v8245_v24  ;;  %v1795_v11 = vcombine.high %v8228_v26, %v8254_v47 }
 0x374   : > { %11850 = vst [vmem:[#allocation34_spill] sm:$0xff] %v8415_v27  ;;  %1895 = vrot.lane.b32.xlu1 %v8409_v1, %s11614_s14  ;;  %v8440_v27 = vrot.slane %v2456_v29, %v7496_v6  ;;  %v8443_v1 = vrot.slane %v1758_v54, %v7496_v6  ;;  %v2653_v46 = vrot.slane %v2639_v61, %v7491_v62 }
 0x375   : > { %2779 = vrot.lane.b32.xlu0 %v8418_v17, %s11614_s14  ;;  %v8474_v61 = vrot.slane %v2755_v22, %v7496_v6  ;;  %v8484_v26 = vrot.slane %v1811_v53, %v7491_v62  ;;  %v8487_v55 = vrot.slane %v1795_v11, %v7491_v62  ;;  %v1375_v24 = vcombine.high %v8404_v15, %v8398_v44 }
 0x376   : > { %v8428_v25 = vpop.permute.xlu1 %1645  ;;  %11852 = vst [vmem:[#allocation36_spill] sm:$0xff] %v8443_v1  ;;  %v1790_v54 = vcombine.high %v8443_v1, %v11846_v12  ;;  %v2686_v9 = vcombine.low %v2653_v46, %v2669_v31  ;;  %v8494_v22 = vrot.slane %v1145_v57, %v7496_v6 }
 0x377   : > { %11851 = vst [vmem:[#allocation35_spill] sm:$0xff] %v8428_v25  ;;  %v8437_v10 = vpop.permute.xlu0 %1637  ;;  %v1842_v11 = vcombine.low %v8487_v55, %v8484_v26  ;;  %v2687_v25 = vcombine.high %v2653_v46, %v2669_v31  ;;  %v1791_v46 = vcombine.high %v8141_v3, %v11846_v12 }
 0x378   : > { %2133 = vrot.lane.b32.xlu1 %v8431_v5, %s11618_s12  ;;  %v8503_v53 = vrot.slane %v2686_v9, %v7496_v6 }
 0x379   : > { %2557 = vrot.lane.b32.xlu0 %v8440_v27, %s11618_s12 }
 0x37a   : > { %v8451_v4 = vpop.permute.xlu1 %948 }
 0x37b   : > { %11853 = vst [vmem:[#allocation37_spill] sm:$0xff] %v8451_v4  ;;  %v8458_v36 = vpop.permute.xlu0 %2311 }
 0x37c   : > { %2593 = vrot.lane.b32.xlu1 %v8454_v50, %s7282_s25 }
 0x37d   : > { %1863 = vrot.lane.b32.xlu0 %v1790_v54, %s11610_s15  ;;  %v2021_v54 = vcombine.high %v8122_v37, %v11846_v12  ;;  %v1076_v37 = vcombine.low %v8147_v52, %v8134_v2  ;;  %v8514_v2 = vrot.slane %v1375_v24, %v7496_v6  ;;  %v1306_v52 = vcombine.low %v8180_v8, %v8177_v14 }
 0x37e   : > { %v8471_v29 = vpop.permute.xlu1 %2339  ;;  %v2073_v24 = vcombine.high %v8372_v51, %v8369_v40  ;;  %v8535_v14 = vrot.slane %v1842_v11, %v7496_v6  ;;  %v1129_v11 = vcombine.high %v8283_v49, %v8311_v59  ;;  %v8568_v59 = vrot.slane %v2687_v25, %v7496_v6 }
 0x37f   : > { %v8476_v0 = vpop.permute.xlu0 %1625  ;;  %v8524_v9 = vrot.slane %v1076_v37, %v7496_v6  ;;  %v1109_v25 = vcombine.high %v8207_v45, %v11846_v12 }
 0x380   : > { %2823 = vrot.lane.b32.xlu1 %v8474_v61, %s7282_s25  ;;  %v8550_v51 = vrot.slane %v2073_v24, %v7496_v6  ;;  %v1343_v24 = vcombine.high %v8355_v13, %v8391_v18  ;;  %v2022_v13 = vcombine.high %v8185_v41, %v11846_v12 }
 0x381   : > { %2101 = vrot.lane.b32.xlu0 %v2021_v54, %s11612_s13  ;;  %v2457_v54 = vcombine.high %v8385_v21, %v8382_v58  ;;  %11854 = vst [vmem:[#allocation38_spill] sm:$0xff] %v8524_v9  ;;  %v1108_v37 = vcombine.high %v8524_v9, %v11846_v12  ;;  %v1113_v9 = vcombine.high %v8290_v56, %v8320_v19 }
 0x382   : > { %v8491_v47 = vpop.permute.xlu1 %1657  ;;  %v1143_v19 = vrot.slane %v1129_v11, %v7491_v62  ;;  %v1359_v56 = vcombine.high %v8349_v60, %v8376_v42  ;;  %v1357_v60 = vrot.slane %v1343_v24, %v7491_v62  ;;  %v1792_v24 = vcombine.high %v8257_v39, %v11846_v12 }
 0x383   : > { %v8500_v1 = vpop.permute.xlu0 %2319  ;;  %v8521_v21 = vrot.slane %v2457_v54, %v7496_v6  ;;  %v8542_v54 = vrot.slane %v1306_v52, %v7496_v6  ;;  %v1127_v49 = vrot.slane %v1113_v9, %v7491_v62 }
 0x384   : > { %1213 = vrot.lane.b32.xlu1 %v8494_v22, %s11614_s14  ;;  %v1373_v9 = vrot.slane %v1359_v56, %v7491_v62 }
 0x385   : > { %2787 = vrot.lane.b32.xlu0 %v8503_v53, %s11618_s12  ;;  %11856 = vst [vmem:[#allocation40_spill] sm:$0xff] %v8542_v54  ;;  %v1338_v52 = vcombine.high %v8542_v54, %v11846_v12  ;;  %v1160_v11 = vcombine.low %v1127_v49, %v1143_v19  ;;  %v1161_v62 = vcombine.high %v1127_v49, %v1143_v19 }
 0x386   : > { %v8511_v57 = vpop.permute.xlu1 %2347  ;;  %v1390_v45 = vcombine.low %v1357_v60, %v1373_v9  ;;  %v1340_v49 = vcombine.high %v8172_v32, %v11846_v12 }
 0x387   : > { %v8518_v58 = vpop.permute.xlu0 %1633  ;;  %v8600_v56 = vrot.slane %v1160_v11, %v7496_v6 }
 0x388   : > { %1443 = vrot.lane.b32.xlu1 %v8514_v2, %s11614_s14  ;;  %s12008_s14 = smov 80  }
 0x389   : > { %2565 = vrot.lane.b32.xlu0 %v8521_v21, %s7282_s25 }
 0x38a   : > { %v8532_v4 = vpop.permute.xlu1 %1665 }
 0x38b   : > { %11855 = vst [vmem:[#allocation39_spill] sm:$0xff] %v8532_v4  ;;  %v8537_v8 = vpop.permute.xlu0 %2327 }
 0x38c   : > { %1903 = vrot.lane.b32.xlu1 %v8535_v14, %s11618_s12 }
 0x38d   : > { %1181 = vrot.lane.b32.xlu0 %v1108_v37, %s11610_s15 }
 0x38e   : > { %v8547_v40 = vpop.permute.xlu1 %2355 }
 0x38f   : > { %v8556_v4 = vpop.permute.xlu0 %968 }
 0x390   : > { %11857 = vst [vmem:[#allocation41_spill] sm:$0xff] %v8556_v4  ;;  %2141 = vrot.lane.b32.xlu1 %v8550_v51, %s7282_s25 }
 0x391   : > { %1411 = vrot.lane.b32.xlu0 %v1338_v52, %s11610_s15  ;;  %v1339_v52 = vcombine.high %v8231_v63, %v11846_v12 }
 0x392   : > { %v8563_v31 = vpop.permute.xlu1 %936 }
 0x393   : > { %v8576_v37 = vpop.permute.xlu0 %1673 }
 0x394   : > { %11858 = vst [vmem:[#allocation42_spill] sm:$0xff] %v8576_v37  ;;  %2795 = vrot.lane.b32.xlu1 %v8568_v59, %s7282_s25 }
 0x395   : > { %1871 = vrot.lane.b32.xlu0 %v1791_v46, %s11612_s13 }
 0x396   : > { %v8581_v3 = vpop.permute.xlu1 %1641 }
 0x397   : > { %v8587_v42 = vpop.permute.xlu0 %976 }
 0x398   : > { %11859 = vst [vmem:[#allocation43_spill] sm:$0xff] %v8587_v42  ;;  %1189 = vrot.lane.b32.xlu1 %v1109_v25, %s11612_s13  ;;  %v1843_v25 = vcombine.high %v8487_v55, %v8484_v26  ;;  %v11869_v42 = vld [vmem:[#allocation17_spill] sm:$0xff] }
 0x399   : > { %2109 = vrot.lane.b32.xlu0 %v2022_v13, %s11616_s30  ;;  %v8614_v13 = vrot.slane %v1390_v45, %v7496_v6  ;;  %v1110_v45 = vcombine.high %v8144_v28, %v11846_v12 }
 0x39a   : > { %v8593_v18 = vpop.permute.xlu1 %944  ;;  %v8626_v26 = vrot.slane %v1843_v25, %v7496_v6 }
 0x39b   : > { %v8597_v46 = vpop.permute.xlu0 %984 }
 0x39c   : > { %11860 = vst [vmem:[#allocation44_spill] sm:$0xff] %v8597_v46  ;;  %1419 = vrot.lane.b32.xlu1 %v1339_v52, %s11612_s13  ;;  %v2023_v52 = vcombine.high %v8293_v38, %v11846_v12  ;;  %v8638_v38 = vrot.slane %v1161_v62, %v7496_v6 }
 0x39d   : > { %1221 = vrot.lane.b32.xlu0 %v8600_v56, %s11618_s12 }
 0x39e   : > { %v8605_v41 = vpop.permute.xlu1 %1649 }
 0x39f   : > { %11861 = vst [vmem:[#allocation45_spill] sm:$0xff] %v8605_v41  ;;  %v8611_v63 = vpop.permute.xlu0 %2307 }
 0x3a0   : > { %1879 = vrot.lane.b32.xlu1 %v1792_v24, %s11616_s30  ;;  %v1391_v24 = vcombine.high %v1357_v60, %v1373_v9  ;;  %v1111_v9 = vcombine.high %v8226_v23, %v11846_v12  ;;  %v11863_v60 = vcombine.low %v8029_v43, %v8021_v33 }
 0x3a1   : > { %1451 = vrot.lane.b32.xlu0 %v8614_v13, %s11618_s12  ;;  %s12019_s12 = smov 126  }
 0x3a2   : > { %v8619_v11 = vpop.permute.xlu1 %952  ;;  %v8650_v28 = vrot.slane %v1391_v24, %v7496_v6  ;;  %v8663_v32 = vrot.slane %v11863_v60, %v7496_v6 }
 0x3a3   : > { %11862 = vst [vmem:[#allocation46_spill] sm:$0xff] %v8619_v11  ;;  %v8623_v39 = vpop.permute.xlu0 %1653  ;;  %v11867_v11 = vld [vmem:[#allocation23_spill] sm:$0xff] }
 0x3a4   : > { %2117 = vrot.lane.b32.xlu1 %v2023_v52, %s7283_s29  ;;  %v2472_v23 = vcombine.high %v8663_v32, %v11846_v12 }
 0x3a5   : > { %1911 = vrot.lane.b32.xlu0 %v8626_v26, %s7282_s25 }
 0x3a6   : > { %v8631_v55 = vpop.permute.xlu1 %2335 }
 0x3a7   : > { %v8635_v46 = vpop.permute.xlu0 %2315 }
 0x3a8   : > { %1197 = vrot.lane.b32.xlu1 %v1110_v45, %s11616_s30  ;;  %v1793_v45 = vcombine.high %v8198_v34, %v11846_v12  ;;  %v1341_v34 = vcombine.high %v11867_v11, %v11846_v12 }
 0x3a9   : > { %1229 = vrot.lane.b32.xlu0 %v8638_v38, %s7282_s25 }
 0x3aa   : > { %v8643_v19 = vpop.permute.xlu1 %2343 }
 0x3ab   : > { %v8647_v25 = vpop.permute.xlu0 %2323 }
 0x3ac   : > { %1427 = vrot.lane.b32.xlu1 %v1340_v49, %s11616_s30  ;;  %v11864_v49 = vld [vmem:[#allocation20_spill] sm:$0xff] }
 0x3ad   : > { %1459 = vrot.lane.b32.xlu0 %v8650_v28, %s7282_s25  ;;  %v11865_v33 = vcombine.low %v8113_v48, %v11864_v49 }
 0x3ae   : > { %v8655_v62 = vpop.permute.xlu1 %1661 }
 0x3af   : > { %v8665_v52 = vpop.permute.xlu0 %2331  ;;  %v8679_v43 = vrot.slane %v11865_v33, %v7496_v6  ;;  %v11872_v33 = vld [vmem:[#allocation22_spill] sm:$0xff] }
 0x3b0   : > { %1205 = vrot.lane.b32.xlu1 %v1111_v9, %s7283_s29  ;;  %v11868_v9 = vld [vmem:[#allocation18_spill] sm:$0xff] }
 0x3b1   : > { %1887 = vrot.lane.b32.xlu0 %v1793_v45, %s7283_s29  ;;  %v11870_v45 = vcombine.low %v11868_v9, %v11869_v42  ;;  %v2770_v48 = vcombine.high %v8679_v43, %v11846_v12 }
 0x3b2   : > { %v8671_v24 = vpop.permute.xlu1 %2351 }
 0x3b3   : > { %v8681_v60 = vpop.permute.xlu0 %972  ;;  %v8689_v37 = vrot.slane %v11870_v45, %v7496_v6 }
 0x3b4   : > { %11866 = vst [vmem:[#allocation20_spill] sm:$0xff] %v8681_v60  ;;  %2545 = vrot.lane.b32.xlu1 %v2472_v23, %s11610_s15  ;;  %v11873_v60 = vld [vmem:[#allocation21_spill] sm:$0xff] }
 0x3b5   : > { %1435 = vrot.lane.b32.xlu0 %v1341_v34, %s7283_s29  ;;  %v2540_v11 = vcombine.high %v8689_v37, %v11846_v12  ;;  %v11874_v42 = vcombine.low %v11872_v33, %v11873_v60  ;;  %v11876_v34 = vld [vmem:[#allocation27_spill] sm:$0xff]  ;;  %v11878_v60 = vcombine.low %v8221_v7, %v8214_v35 }
 0x3b6   : > { %v8693_v41 = vpop.permute.xlu1 %964  ;;  %v2541_v45 = vcombine.high %v11876_v34, %v11846_v12  ;;  %v11880_v34 = vld [vmem:[#allocation24_spill] sm:$0xff] }
 0x3b7   : > { %v8697_v49 = vpop.permute.xlu0 %1677  ;;  %v8705_v9 = vrot.slane %v11874_v42, %v7496_v6  ;;  %v8721_v33 = vrot.slane %v11878_v60, %v7496_v6 }
 0x3b8   : > { %11871 = vst [vmem:[#allocation23_spill] sm:$0xff] %v8697_v49  ;;  %2803 = vrot.lane.b32.xlu1 %v2770_v48, %s11610_s15 }
 0x3b9   : > { %2573 = vrot.lane.b32.xlu0 %v2540_v11, %s11610_s15  ;;  %v2088_v49 = vcombine.high %v8705_v9, %v11846_v12  ;;  %v11879_v11 = vld [vmem:[#allocation25_spill] sm:$0xff]  ;;  %v2702_v35 = vcombine.high %v8721_v33, %v11846_v12 }
 0x3ba   : > { %v8709_v23 = vpop.permute.xlu1 %1669  ;;  %v2771_v42 = vcombine.high %v11879_v11, %v11846_v12  ;;  %v11887_v11 = vld [vmem:[#allocation26_spill] sm:$0xff] }
 0x3bb   : > { %11875 = vst [vmem:[#allocation18_spill] sm:$0xff] %v8709_v23  ;;  %v8713_v54 = vpop.permute.xlu0 %980 }
 0x3bc   : > { %11877 = vst [vmem:[#allocation17_spill] sm:$0xff] %v8713_v54  ;;  %2581 = vrot.lane.b32.xlu1 %v2541_v45, %s11612_s13  ;;  %v11881_v54 = vcombine.low %v8281_v30, %v11880_v34  ;;  %v11885_v30 = vld [vmem:[#allocation30_spill] sm:$0xff] }
 0x3bd   : > { %2121 = vrot.lane.b32.xlu0 %v2088_v49, %s11610_s15 }
 0x3be   : > { %v8725_v48 = vpop.permute.xlu1 %2359  ;;  %v8733_v23 = vrot.slane %v11881_v54, %v7496_v6  ;;  %v2473_v54 = vcombine.high %v11885_v30, %v11846_v12 }
 0x3bf   : > { %v8735_v4 = vpop.permute.xlu0 %2097 }
 0x3c0   : > { %11882 = vst [vmem:[#allocation22_spill] sm:$0xff] %v8735_v4  ;;  %2811 = vrot.lane.b32.xlu1 %v2771_v42, %s11612_s13  ;;  %v1858_v49 = vcombine.high %v8733_v23, %v11846_v12  ;;  %v2089_v42 = vcombine.high %v11887_v11, %v11846_v12  ;;  %v11892_v11 = vcombine.low %v8347_v16, %v8330_v20 }
 0x3c1   : > { %2775 = vrot.lane.b32.xlu0 %v2702_v35, %s11610_s15  ;;  %v2703_v35 = vcombine.high %v8418_v17, %v11846_v12 }
 0x3c2   : > { %v8741_v7 = vpop.permute.xlu1 %1193 }
 0x3c3   : > { %11883 = vst [vmem:[#allocation21_spill] sm:$0xff] %v8741_v7  ;;  %v8745_v45 = vpop.permute.xlu0 %1867 }
 0x3c4   : > { %11884 = vst [vmem:[#allocation27_spill] sm:$0xff] %v8745_v45  ;;  %1891 = vrot.lane.b32.xlu1 %v1858_v49, %s11610_s15  ;;  %v11890_v49 = vld [vmem:[#allocation28_spill] sm:$0xff] }
 0x3c5   : > { %2553 = vrot.lane.b32.xlu0 %v2473_v54, %s11612_s13  ;;  %v2542_v30 = vcombine.high %v11890_v49, %v11846_v12  ;;  %v11896_v49 = vcombine.low %v8404_v15, %v8398_v44  ;;  %v2704_v44 = vcombine.high %v8503_v53, %v11846_v12  ;;  %v2090_v53 = vcombine.high %v8431_v5, %v11846_v12 }
 0x3c6   : > { %v8751_v60 = vpop.permute.xlu1 %1423 }
 0x3c7   : > { %11886 = vst [vmem:[#allocation25_spill] sm:$0xff] %v8751_v60  ;;  %v8755_v34 = vpop.permute.xlu0 %2105  ;;  %v2474_v60 = vcombine.high %v8440_v27, %v11846_v12  ;;  %v8785_v27 = vrot.slane %v11896_v49, %v7496_v6  ;;  %v2475_v49 = vcombine.high %v8521_v21, %v11846_v12  ;;  %v2543_v21 = vcombine.high %v8454_v50, %v11846_v12 }
 0x3c8   : > { %11888 = vst [vmem:[#allocation24_spill] sm:$0xff] %v8755_v34  ;;  %2129 = vrot.lane.b32.xlu1 %v2089_v42, %s11612_s13  ;;  %v8773_v34 = vrot.slane %v11892_v11, %v7496_v6  ;;  %v11895_v42 = vld [vmem:[#allocation31_spill] sm:$0xff]  ;;  %v11901_v11 = vld [vmem:[#allocation33_spill] sm:$0xff] }
 0x3c9   : > { %2783 = vrot.lane.b32.xlu0 %v2703_v35, %s11612_s13  ;;  %v2772_v35 = vcombine.high %v11895_v42, %v11846_v12  ;;  %11897 = vst [vmem:[#allocation31_spill] sm:$0xff] %v8785_v27  ;;  %v1859_v42 = vcombine.high %v11901_v11, %v11846_v12 }
 0x3ca   : > { %v8761_v7 = vpop.permute.xlu1 %1883  ;;  %11893 = vst [vmem:[#allocation28_spill] sm:$0xff] %v8773_v34  ;;  %v1176_v20 = vcombine.high %v8773_v34, %v11846_v12 }
 0x3cb   : > { %11889 = vst [vmem:[#allocation30_spill] sm:$0xff] %v8761_v7  ;;  %v8765_v54 = vpop.permute.xlu0 %1185 }
 0x3cc   : > { %11891 = vst [vmem:[#allocation26_spill] sm:$0xff] %v8765_v54  ;;  %2589 = vrot.lane.b32.xlu1 %v2542_v30, %s11616_s30 }
 0x3cd   : > { %2561 = vrot.lane.b32.xlu0 %v2474_v60, %s11616_s30  ;;  %v1406_v60 = vcombine.high %v8785_v27, %v11846_v12 }
 0x3ce   : > { %v8777_v17 = vpop.permute.xlu1 %1201 }
 0x3cf   : > { %11894 = vst [vmem:[#allocation47_spill] sm:$0xff] %v8777_v17  ;;  %v8787_v7 = vpop.permute.xlu0 %1415 }
 0x3d0   : > { %11898 = vst [vmem:[#allocation48_spill] sm:$0xff] %v8787_v7  ;;  %2819 = vrot.lane.b32.xlu1 %v2772_v35, %s11616_s30 }
 0x3d1   : > { %1209 = vrot.lane.b32.xlu0 %v1176_v20, %s11610_s15 }
 0x3d2   : > { %v8793_v16 = vpop.permute.xlu1 %1431 }
 0x3d3   : > { %11899 = vst [vmem:[#allocation49_spill] sm:$0xff] %v8793_v16  ;;  %v8797_v30 = vpop.permute.xlu0 %1875 }
 0x3d4   : > { %11900 = vst [vmem:[#allocation50_spill] sm:$0xff] %v8797_v30  ;;  %1439 = vrot.lane.b32.xlu1 %v1406_v60, %s11610_s15  ;;  %s12009_s15 = smov 32  }
 0x3d5   : > { %2791 = vrot.lane.b32.xlu0 %v2704_v44, %s11616_s30  ;;  %v2773_v44 = vcombine.high %v8474_v61, %v11846_v12  ;;  %v1177_v61 = vcombine.high %v8494_v22, %v11846_v12 }
 0x3d6   : > { %v8803_v15 = vpop.permute.xlu1 %2807 }
 0x3d7   : > { %v8807_v35 = vpop.permute.xlu0 %2113 }
 0x3d8   : > { %11902 = vst [vmem:[#allocation33_spill] sm:$0xff] %v8807_v35  ;;  %1899 = vrot.lane.b32.xlu1 %v1859_v42, %s11612_s13 }
 0x3d9   : > { %2569 = vrot.lane.b32.xlu0 %v2475_v49, %s7283_s29  ;;  %v2705_v49 = vcombine.high %v8568_v59, %v11846_v12  ;;  %v1407_v59 = vcombine.high %v8514_v2, %v11846_v12 }
 0x3da   : > { %v8813_v20 = vpop.permute.xlu1 %2125 }
 0x3db   : > { %11903 = vst [vmem:[#allocation51_spill] sm:$0xff] %v8813_v20  ;;  %v8817_v60 = vpop.permute.xlu0 %2577 }
 0x3dc   : > { %2137 = vrot.lane.b32.xlu1 %v2090_v53, %s11616_s30 }
 0x3dd   : > { %2827 = vrot.lane.b32.xlu0 %v2773_v44, %s7283_s29  ;;  %v1178_v44 = vcombine.high %v8600_v56, %v11846_v12  ;;  %v1860_v56 = vcombine.high %v8535_v14, %v11846_v12 }
 0x3de   : > { %v8823_v11 = vpop.permute.xlu1 %2585 }
 0x3df   : > { %v8827_v42 = vpop.permute.xlu0 %2549 }
 0x3e0   : > { %2597 = vrot.lane.b32.xlu1 %v2543_v21, %s7283_s29 }
 0x3e1   : > { %2799 = vrot.lane.b32.xlu0 %v2705_v49, %s7283_s29  ;;  %v1408_v49 = vcombine.high %v8614_v13, %v11846_v12  ;;  %v2091_v13 = vcombine.high %v8550_v51, %v11846_v12  ;;  %v1409_v51 = vcombine.high %v8650_v28, %v11846_v12  ;;  %v2962_v28 = vld [vmem:[%s11566_s5] sm:$0xff] }
 0x3e2   : > { %v8833_v5 = vpop.permute.xlu1 %2815 }
 0x3e3   : > { %v8837_v53 = vpop.permute.xlu0 %2093 }
 0x3e4   : > { %1217 = vrot.lane.b32.xlu1 %v1177_v61, %s11612_s13 }
 0x3e5   : > { %1225 = vrot.lane.b32.xlu0 %v1178_v44, %s11616_s30  ;;  %v1861_v44 = vcombine.high %v8626_v26, %v11846_v12  ;;  %v11907_v26 = vld [vmem:[#allocation9_spill] sm:$0xff] }
 0x3e6   : > { %v8843_v50 = vpop.permute.xlu1 %1895 }
 0x3e7   : > { %11904 = vst [vmem:[#allocation52_spill] sm:$0xff] %v8843_v50  ;;  %v8847_v21 = vpop.permute.xlu0 %2779 }
 0x3e8   : > { %1447 = vrot.lane.b32.xlu1 %v1407_v59, %s11612_s13  ;;  %s12007_s13 = smov 64  }
 0x3e9   : > { %1455 = vrot.lane.b32.xlu0 %v1408_v49, %s11616_s30  ;;  %v1179_v49 = vcombine.high %v8638_v38, %v11846_v12 }
 0x3ea   : > { %v8853_v22 = vpop.permute.xlu1 %2133 }
 0x3eb   : > { %11905 = vst [vmem:[#allocation53_spill] sm:$0xff] %v8853_v22  ;;  %v8857_v61 = vpop.permute.xlu0 %2557 }
 0x3ec   : > { %1907 = vrot.lane.b32.xlu1 %v1860_v56, %s11616_s30  ;;  %v11908_v56 = vld [vmem:[#allocation10_spill] sm:$0xff]  ;;  %s12015_s30 = smov 127  }
 0x3ed   : > { %1915 = vrot.lane.b32.xlu0 %v1861_v44, %s7283_s29  ;;  %v11909_v44 = vcombine.high %v11907_v26, %v11908_v56 }
 0x3ee   : > { %v8863_v2 = vpop.permute.xlu1 %2593 }
 0x3ef   : > { %v8867_v59 = vpop.permute.xlu0 %1863  ;;  %v862_v16 = vrot.slane %v11909_v44, %v7496_v6 }
 0x3f0   : > { %11906 = vst [vmem:[#allocation54_spill] sm:$0xff] %v8867_v59  ;;  %2145 = vrot.lane.b32.xlu1 %v2091_v13, %s7283_s29 }
 0x3f1   : > { %1233 = vrot.lane.b32.xlu0 %v1179_v49, %s7283_s29  ;;  %v866_v13 = vcombine.high %v862_v16, %v11846_v12  ;;  %v11912_v49 = vld [vmem:[#allocation13_spill] sm:$0xff] }
 0x3f2   : > { %v8873_v14 = vpop.permute.xlu1 %2823  ;;  %v934_v35 = vcombine.high %v11912_v49, %v11846_v12  ;;  %v387_v12 = vld [vmem:[%s11571_s10] sm:$0xff] }
 0x3f3   : > { %v8879_v17 = vpop.permute.xlu0 %2101 }
 0x3f4   : > { %11910 = vst [vmem:[#allocation9_spill] sm:$0xff] %v8879_v17  ;;  %956 = vrot.lane.b32.xlu1 %v862_v16, %s7282_s25  ;;  %v790_v16 = vld [vmem:[%s11565_s4] sm:$0xff] }
 0x3f5   : > { %1463 = vrot.lane.b32.xlu0 %v1409_v51, %s7283_s29 }
 0x3f6   : > { %v8885_v38 = vpop.permute.xlu1 %1213 }
 0x3f7   : > { %11911 = vst [vmem:[#allocation10_spill] sm:$0xff] %v8885_v38  ;;  %v8890_v30 = vpop.permute.xlu0 %2787 }
 0x3f8   : > { %960 = vrot.lane.b32.xlu1 %v866_v13, %s7283_s29 }
 0x3f9   : > { %988 = vrot.lane.b32.xlu0 %v934_v35, %s7283_s29  ;;  %v2963_v35 = vld [vmem:[%s11567_s6] sm:$0xff] }
 0x3fa   : > { %v8897_v26 = vpop.permute.xlu1 %1443 }
 0x3fb   : > { %11913 = vst [vmem:[#allocation13_spill] sm:$0xff] %v8897_v26  ;;  %v8899_v56 = vpop.permute.xlu0 %2565 }
 0x3fc   : > { %2995 = vperm.xlu1 %7145, %v2962_v28  }
 0x3fd   : > { %2878 = vperm.xlu0 %7146, %v790_v16  }
 0x3fe   : > { %v8907_v44 = vpop.permute.xlu1 %1903 }
 0x3ff   : > { %11914 = vst [vmem:[#allocation55_spill] sm:$0xff] %v8907_v44  ;;  %v8912_v51 = vpop.permute.xlu0 %1181 }
 0x400   : > { %11915 = vst [vmem:[#allocation56_spill] sm:$0xff] %v8912_v51  ;;  %390 = vperm.xlu1 %7145, %v387_v12  }
 0x401   : > { %3002 = vperm.xlu0 %7146, %v2963_v35  }
 0x402   : > { %v8914_v13 = vpop.permute.xlu1 %2141 }
 0x403   : > { %11916 = vst [vmem:[#allocation57_spill] sm:$0xff] %v8914_v13  ;;  %v8916_v49 = vpop.permute.xlu0 %1411 }
 0x404   : > { %11917 = vst [vmem:[#allocation58_spill] sm:$0xff] %v8916_v49 }
 0x406   : > { %v8918_v28 = vpop.permute.xlu1 %2795 }
 0x407   : > { %v8920_v6 = vpop.permute.xlu0 %1871 }
 0x408   : > { %11918 = vst [vmem:[#allocation59_spill] sm:$0xff] %v8920_v6 }
 0x40a   : > { %v8922_v22 = vpop.permute.xlu1 %1189 }
 0x40b   : > { %11919 = vst [vmem:[#allocation60_spill] sm:$0xff] %v8922_v22  ;;  %v8924_v16 = vpop.permute.xlu0 %2109 }
 0x40c   : > { %11920 = vst [vmem:[#allocation61_spill] sm:$0xff] %v8924_v16 }
 0x40e   : > { %v8926_v44 = vpop.permute.xlu1 %1419 }
 0x40f   : > { %11921 = vst [vmem:[#allocation62_spill] sm:$0xff] %v8926_v44  ;;  %v8928_v26 = vpop.permute.xlu0 %1221 }
 0x410   : > { %11922 = vst [vmem:[#allocation63_spill] sm:$0xff] %v8928_v26 }
 0x412   : > { %v8930_v38 = vpop.permute.xlu1 %1879 }
 0x413   : > { %11923 = vst [vmem:[#allocation64_spill] sm:$0xff] %v8930_v38  ;;  %v8932_v12 = vpop.permute.xlu0 %1451 }
 0x414   : > { %11924 = vst [vmem:[#allocation65_spill] sm:$0xff] %v8932_v12 }
 0x416   : > { %v8934_v35 = vpop.permute.xlu1 %2117 }
 0x417   : > { %11925 = vst [vmem:[#allocation66_spill] sm:$0xff] %v8934_v35  ;;  %v8936_v13 = vpop.permute.xlu0 %1911 }
 0x418   : > { %11926 = vst [vmem:[#allocation67_spill] sm:$0xff] %v8936_v13 }
 0x41a   : > { %v8938_v7 = vpop.permute.xlu1 %1197 }
 0x41b   : > { %11927 = vst [vmem:[#allocation68_spill] sm:$0xff] %v8938_v7  ;;  %v8940_v54 = vpop.permute.xlu0 %1229 }
 0x41c   : > { %11928 = vst [vmem:[#allocation69_spill] sm:$0xff] %v8940_v54 }
 0x41e   : > { %v8942_v6 = vpop.permute.xlu1 %1427 }
 0x41f   : > { %11929 = vst [vmem:[#allocation70_spill] sm:$0xff] %v8942_v6  ;;  %v8944_v22 = vpop.permute.xlu0 %1459 }
 0x420   : > { %11930 = vst [vmem:[#allocation71_spill] sm:$0xff] %v8944_v22 }
 0x422   : > { %v8946_v16 = vpop.permute.xlu1 %1205 }
 0x423   : > { %11931 = vst [vmem:[#allocation72_spill] sm:$0xff] %v8946_v16  ;;  %v8948_v44 = vpop.permute.xlu0 %1887 }
 0x424   : > { %11932 = vst [vmem:[#allocation73_spill] sm:$0xff] %v8948_v44 }
 0x426   : > { %v2546_v26 = vpop.permute.xlu1 %2545 }
 0x427   : > { %v8950_v38 = vpop.permute.xlu0 %1435 }
 0x428   : > { %11933 = vst [vmem:[#allocation74_spill] sm:$0xff] %v8950_v38  ;;  %v2600_v38 = vsel %vm991_vm5, %v8663_v32, %v2546_v26  ;;  %v11936_v26 = vld [vmem:[#allocation16_spill] sm:$0xff] }
 0x429   : > { %v2601_v4 = vsel %vm993_vm6, %v2600_v38, %v8827_v42  ;;  %v11938_v42 = vld [vmem:[#allocation14_spill] sm:$0xff] }
 0x42a   : > { %v2804_v12 = vpop.permute.xlu1 %2803  ;;  %v2362_v38 = vsel %vm991_vm5, %v11938_v42, %v8611_v63 }
 0x42b   : > { %v2574_v45 = vpop.permute.xlu0 %2573  ;;  %v2837_v49 = vsel %vm991_vm5, %v8679_v43, %v2804_v12 }
 0x42c   : > { %v2838_v51 = vsel %vm993_vm6, %v2837_v49, %v8803_v15  ;;  %v11939_v49 = vld [vmem:[#allocation34_spill] sm:$0xff] }
 0x42e   : > { %v2582_v35 = vpop.permute.xlu1 %2581 }
 0x42f   : > { %v8952_v50 = vpop.permute.xlu0 %2121 }
 0x432   : > { %v2812_v13 = vpop.permute.xlu1 %2811 }
 0x433   : > { %v2776_v7 = vpop.permute.xlu0 %2775  ;;  %v2839_v59 = vsel %vm995_vm7, %v2838_v51, %v2812_v13 }
 0x434   : > { %v2830_v32 = vsel %vm991_vm5, %v8721_v33, %v2776_v7 }
 0x436   : > { %v8954_v27 = vpop.permute.xlu1 %1891 }
 0x437   : > { %v2554_v54 = vpop.permute.xlu0 %2553 }
 0x438   : > { %v2602_v43 = vsel %vm995_vm7, %v2601_v4, %v2554_v54  ;;  %v2831_v54 = vsel %vm993_vm6, %v2830_v32, %v8847_v21  ;;  %v2363_v21 = vsel %vm993_vm6, %v2362_v38, %v8458_v36 }
 0x43a   : > { %v8956_v6 = vpop.permute.xlu1 %2129 }
 0x43b   : > { %11934 = vst [vmem:[#allocation75_spill] sm:$0xff] %v8956_v6  ;;  %v2784_v22 = vpop.permute.xlu0 %2783  ;;  %v2607_v6 = vsel %vm991_vm5, %v8689_v37, %v2574_v45  ;;  %v2369_v37 = vsel %vm991_vm5, %v11936_v26, %v8631_v55  ;;  %v11937_v45 = vld [vmem:[#allocation11_spill] sm:$0xff]  ;;  %v2603_v55 = vsel %vm997_vm8, %v2602_v43, %v8857_v61 }
 0x43c   : > { %v1680_v15 = vsel %vm991_vm5, %v11937_v45, %v8476_v0  ;;  %v2608_v33 = vsel %vm993_vm6, %v2607_v6, %v8817_v60  ;;  %v2840_v0 = vsel %vm997_vm8, %v2839_v59, %v8833_v5  ;;  %v2370_v63 = vsel %vm993_vm6, %v2369_v37, %v8471_v29  ;;  %v11940_v29 = vld [vmem:[#allocation12_spill] sm:$0xff] }
 0x43d   : > { %v2609_v4 = vsel %vm995_vm7, %v2608_v33, %v2582_v35  ;;  %v2832_v13 = vsel %vm995_vm7, %v2831_v54, %v2784_v22  ;;  %v1681_v12 = vsel %vm993_vm6, %v1680_v15, %v11939_v49  ;;  %v2371_v5 = vsel %vm995_vm7, %v2370_v63, %v8643_v19 }
 0x43e   : > { %v2590_v34 = vpop.permute.xlu1 %2589  ;;  %v1682_v61 = vsel %vm995_vm7, %v1681_v12, %v8518_v58  ;;  %v992_v22 = vsel %vm991_vm5, %v11940_v29, %v8563_v31  ;;  %v2610_v59 = vsel %vm997_vm8, %v2609_v4, %v8823_v11  ;;  %v2833_v19 = vsel %vm997_vm8, %v2832_v13, %v8890_v30  ;;  %v11941_v30 = vld [vmem:[#allocation15_spill] sm:$0xff]  ;;  %v11948_v12 = vld [vmem:[#allocation54_spill] sm:$0xff] }
 0x43f   : > { %v2562_v16 = vpop.permute.xlu0 %2561  ;;  %v2611_v36 = vsel %vm999_vm9, %v2610_v59, %v2590_v34  ;;  %v1683_v34 = vsel %vm997_vm8, %v1682_v61, %v8437_v10  ;;  %v11950_v61 = vld [vmem:[#allocation22_spill] sm:$0xff] }
 0x440   : > { %v2604_v6 = vsel %vm999_vm9, %v2603_v55, %v2562_v16 }
 0x441   : > { %v2605_v58 = vsel %vm1001_vm10, %v2604_v6, %v8899_v56  ;;  %v1687_v56 = vsel %vm991_vm5, %v11941_v30, %v8623_v39  ;;  %v2612_v39 = vsel %vm1001_vm10, %v2611_v36, %v8863_v2  ;;  %v1925_v6 = vsel %vm991_vm5, %v8733_v23, %v8954_v27  ;;  %v11953_v23 = vld [vmem:[#allocation41_spill] sm:$0xff]  ;;  %v11961_v30 = vld [vmem:[#allocation31_spill] sm:$0xff] }
 0x442   : > { %v2820_v20 = vpop.permute.xlu1 %2819  ;;  %v1688_v38 = vsel %vm993_vm6, %v1687_v56, %v8491_v47  ;;  %v11944_v47 = vld [vmem:[#allocation35_spill] sm:$0xff]  ;;  %v11955_v36 = vld [vmem:[#allocation9_spill] sm:$0xff] }
 0x443   : > { %v8958_v44 = vpop.permute.xlu0 %1209  ;;  %v2841_v60 = vsel %vm999_vm9, %v2840_v0, %v2820_v20  ;;  %v2364_v20 = vsel %vm995_vm7, %v2363_v21, %v8635_v46  ;;  %v2372_v46 = vsel %vm997_vm8, %v2371_v5, %v8511_v57  ;;  %v1684_v57 = vsel %vm999_vm9, %v1683_v34, %v8581_v3  ;;  %v11949_v21 = vld [vmem:[#allocation36_spill] sm:$0xff] }
 0x444   : > { %11935 = vst [vmem:[#allocation76_spill] sm:$0xff] %v8958_v44  ;;  %v2842_v35 = vsel %vm1001_vm10, %v2841_v60, %v8873_v14  ;;  %v2365_v14 = vsel %vm997_vm8, %v2364_v20, %v8500_v1  ;;  %v2373_v26 = vsel %vm999_vm9, %v2372_v46, %v8671_v24  ;;  %v1689_v2 = vsel %vm995_vm7, %v1688_v38, %v8655_v62  ;;  %v11945_v62 = vld [vmem:[#allocation19_spill] sm:$0xff]  ;;  %v11954_v20 = vld [vmem:[#allocation18_spill] sm:$0xff] }
 0x445   : > { %v2366_v10 = vsel %vm999_vm9, %v2365_v14, %v8647_v25  ;;  %v2374_v25 = vsel %vm1001_vm10, %v2373_v26, %v8547_v40  ;;  %v1685_v40 = vsel %vm1001_vm10, %v1684_v57, %v11944_v47  ;;  %v1918_v5 = vsel %vm991_vm5, %v11949_v21, %v11948_v12  ;;  %v11958_v46 = vld [vmem:[#allocation51_spill] sm:$0xff]  ;;  %v11962_v14 = vld [vmem:[#allocation52_spill] sm:$0xff]  ;;  %v11977_v21 = vld [vmem:[#allocation50_spill] sm:$0xff] }
 0x446   : > { %v8964_v17 = vpop.permute.xlu1 %1439  ;;  %v2375_v54 = vsel %vm1003_vm11, %v2374_v25, %v8725_v48  ;;  %v11946_v48 = vld [vmem:[#allocation37_spill] sm:$0xff]  ;;  %v1926_v26 = vsel %vm993_vm6, %v1925_v6, %v11962_v14  ;;  %v11968_v25 = vld [vmem:[#allocation24_spill] sm:$0xff]  ;;  %v11975_v6 = vld [vmem:[#allocation55_spill] sm:$0xff] }
 0x447   : > { %v2792_v44 = vpop.permute.xlu0 %2791  ;;  %v1473_v56 = vsel %vm991_vm5, %v11961_v30, %v8964_v17 }
 0x448   : > { %v2834_v32 = vsel %vm999_vm9, %v2833_v19, %v2792_v44  ;;  %v11942_v44 = vld [vmem:[#allocation32_spill] sm:$0xff] }
 0x449   : > { %v994_v37 = vsel %vm993_vm6, %v992_v22, %v11942_v44  ;;  %v2835_v42 = vsel %vm1001_vm10, %v2834_v32, %v8918_v28  ;;  %v11943_v28 = vld [vmem:[#allocation29_spill] sm:$0xff]  ;;  %v11951_v22 = vld [vmem:[#allocation56_spill] sm:$0xff]  ;;  %v11963_v44 = vld [vmem:[#allocation27_spill] sm:$0xff] }
 0x44a   : > { %v8987_v7 = vpop.permute.xlu1 %1899  ;;  %v996_v1 = vsel %vm995_vm7, %v994_v37, %v8593_v18  ;;  %v2367_v18 = vsel %vm1001_vm10, %v2366_v10, %v8537_v8  ;;  %v2148_v55 = vsel %vm991_vm5, %v11943_v28, %v8837_v53  ;;  %v2155_v53 = vsel %vm991_vm5, %v8705_v9, %v8952_v50  ;;  %v11952_v9 = vld [vmem:[#allocation38_spill] sm:$0xff] }
 0x44b   : > { %v2570_v51 = vpop.permute.xlu0 %2569  ;;  %v2368_v0 = vsel %vm1003_vm11, %v2367_v18, %v8665_v52  ;;  %v9078_v13 = vsel %vm997_vm8, %v996_v1, %v11946_v48  ;;  %v2149_v29 = vsel %vm993_vm6, %v2148_v55, %v11950_v61  ;;  %v1236_v50 = vsel %vm991_vm5, %v11952_v9, %v11951_v22  ;;  %v11964_v10 = vld [vmem:[#allocation26_spill] sm:$0xff]  ;;  %v11970_v18 = vld [vmem:[#allocation61_spill] sm:$0xff] }
 0x44c   : > { %v2606_v11 = vsel %vm1003_vm11, %v2605_v58, %v2570_v51  ;;  %v1005_v51 = vsel %vm991_vm5, %v11945_v62, %v8693_v41  ;;  %v11947_v41 = vld [vmem:[#allocation39_spill] sm:$0xff]  ;;  %v2150_v19 = vsel %vm995_vm7, %v2149_v29, %v11955_v36  ;;  %v11956_v58 = vld [vmem:[#allocation58_spill] sm:$0xff]  ;;  %v2156_v32 = vsel %vm993_vm6, %v2155_v53, %v11958_v46 }
 0x44d   : > { %v2864_v15 = vrot.slane %v2606_v11, 4  ;;  %v1690_v49 = vsel %vm997_vm8, %v1689_v2, %v11947_v41  ;;  %v1006_v27 = vsel %vm993_vm6, %v1005_v51, %v11953_v23  ;;  %v11959_v11 = vld [vmem:[#allocation76_spill] sm:$0xff]  ;;  %v1919_v37 = vsel %vm993_vm6, %v1918_v5, %v11963_v44  ;;  %v11971_v28 = vld [vmem:[#allocation62_spill] sm:$0xff]  ;;  %v11974_v51 = vld [vmem:[#allocation53_spill] sm:$0xff] }
 0x44e   : > { %v9016_v16 = vpop.permute.xlu1 %2137  ;;  %v1691_v59 = vsel %vm999_vm9, %v1690_v49, %v11954_v20  ;;  %v11976_v49 = vld [vmem:[#allocation45_spill] sm:$0xff]  ;;  %v11978_v9 = vld [vmem:[#allocation42_spill] sm:$0xff]  ;;  %v11980_v20 = vld [vmem:[#allocation64_spill] sm:$0xff] }
 0x44f   : > { %v2828_v31 = vpop.permute.xlu0 %2827  ;;  %v2874_v60 = vsel %vm399_vm0, %v2368_v0, %v2864_v15  ;;  %v1927_v15 = vsel %vm995_vm7, %v1926_v26, %v8987_v7  ;;  %v11972_v7 = vld [vmem:[#allocation10_spill] sm:$0xff]  ;;  %v11973_v0 = vld [vmem:[#allocation13_spill] sm:$0xff]  ;;  %v1686_v12 = vsel %vm1003_vm11, %v1685_v40, %v11976_v49  ;;  %v11984_v46 = vld [vmem:[#allocation63_spill] sm:$0xff] }
 0x450   : > { %v2843_v43 = vsel %vm1003_vm11, %v2842_v35, %v2828_v31  ;;  %v11957_v35 = vld [vmem:[#allocation40_spill] sm:$0xff]  ;;  %v1474_v62 = vsel %vm993_vm6, %v1473_v56, %v11973_v0  ;;  %v11988_v56 = vld [vmem:[#allocation67_spill] sm:$0xff] }
 0x451   : > { %7078 = vmatprep.subr.msk.mxu1 %vm399_vm0, %v2843_v43  ;;  %v1466_v31 = vsel %vm991_vm5, %v11957_v35, %v11956_v58  ;;  %v11960_v43 = vld [vmem:[#allocation28_spill] sm:$0xff]  ;;  %v11982_v58 = vld [vmem:[#allocation33_spill] sm:$0xff] }
 0x452   : > { %v2598_v45 = vpop.permute.xlu1 %2597  ;;  %v1243_v34 = vsel %vm991_vm5, %v11960_v43, %v11959_v11  ;;  %v11985_v11 = vld [vmem:[#allocation65_spill] sm:$0xff]  ;;  %v11986_v43 = vld [vmem:[#allocation66_spill] sm:$0xff] }
 0x453   : > { %v2613_v24 = vsel %vm1003_vm11, %v2612_v39, %v2598_v45  ;;  %v2800_v3 = vpop.permute.xlu0 %2799  ;;  %v1237_v45 = vsel %vm993_vm6, %v1236_v50, %v11964_v10  ;;  %v11965_v39 = vld [vmem:[#allocation75_spill] sm:$0xff]  ;;  %v1244_v47 = vsel %vm993_vm6, %v1243_v34, %v11972_v7  ;;  %v11979_v50 = vld [vmem:[#allocation20_spill] sm:$0xff] }
 0x454   : > { %v2865_v33 = vrot.slane %v2613_v24, 4  ;;  %v2836_v4 = vsel %vm1003_vm11, %v2835_v42, %v2800_v3  ;;  %v2157_v1 = vsel %vm995_vm7, %v2156_v32, %v11965_v39  ;;  %v11966_v42 = vld [vmem:[#allocation59_spill] sm:$0xff]  ;;  %v11967_v3 = vld [vmem:[#allocation60_spill] sm:$0xff]  ;;  %v1007_v23 = vsel %vm995_vm7, %v1006_v27, %v11979_v50  ;;  %v12002_v50 = vld [vmem:[#allocation46_spill] sm:$0xff] }
 0x455   : > { %7079 = vmatpush1.msk.msra.mxu1 %vm399_vm0, %v2836_v4  ;;  %v1920_v17 = vsel %vm995_vm7, %v1919_v37, %v11966_v42  ;;  %v1238_v38 = vsel %vm995_vm7, %v1237_v45, %v11967_v3  ;;  %v11969_v4 = vld [vmem:[#allocation48_spill] sm:$0xff]  ;;  %v11990_v37 = vld [vmem:[#allocation23_spill] sm:$0xff]  ;;  %v11991_v45 = vld [vmem:[#allocation70_spill] sm:$0xff] }
 0x456   : > { %v1218_v8 = vpop.permute.xlu1 %1217  ;;  %v2875_v63 = vsel %vm399_vm0, %v2375_v54, %v2865_v33  ;;  %v2151_v33 = vsel %vm997_vm8, %v2150_v19, %v11968_v25  ;;  %v1467_v2 = vsel %vm993_vm6, %v1466_v31, %v11969_v4  ;;  %v1921_v5 = vsel %vm997_vm8, %v1920_v17, %v11977_v21  ;;  %v11981_v19 = vld [vmem:[#allocation21_spill] sm:$0xff]  ;;  %v11987_v34 = vld [vmem:[#allocation68_spill] sm:$0xff] }
 0x457   : > { %v1226_v52 = vpop.permute.xlu0 %1225  ;;  %2915 = vmatprep.subr.mxu1 %v2875_v63  ;;  %v2152_v54 = vsel %vm999_vm9, %v2151_v33, %v11970_v18  ;;  %v1468_v55 = vsel %vm995_vm7, %v1467_v2, %v11971_v28  ;;  %v2158_v63 = vsel %vm997_vm8, %v2157_v1, %v11974_v51  ;;  %v1245_v48 = vsel %vm995_vm7, %v1244_v47, %v1218_v8  ;;  %v11983_v31 = vld [vmem:[#allocation25_spill] sm:$0xff]  ;;  %v11992_v1 = vld [vmem:[#allocation30_spill] sm:$0xff]  ;;  %v11994_v2 = vld [vmem:[#allocation43_spill] sm:$0xff] }
 0x458   : > { %2916 = vmatpush1.msra.mxu1 %v2874_v60  ;;  %v1928_v60 = vsel %vm997_vm8, %v1927_v15, %v11975_v6  ;;  %v2159_v61 = vsel %vm999_vm9, %v2158_v63, %v9016_v16  ;;  %v1692_v8 = vsel %vm1001_vm10, %v1691_v59, %v11978_v9  ;;  %v1922_v36 = vsel %vm999_vm9, %v1921_v5, %v11980_v20  ;;  %v11993_v3 = vld [vmem:[#allocation73_spill] sm:$0xff]  ;;  %v11995_v28 = vld [vmem:[#allocation47_spill] sm:$0xff]  ;;  %v11996_v47 = vld [vmem:[#allocation72_spill] sm:$0xff] }
 0x459   : > { %v1239_v40 = vsel %vm997_vm8, %v1238_v38, %v11981_v19  ;;  %v2153_v35 = vsel %vm1001_vm10, %v2152_v54, %v11982_v58  ;;  %v1469_v16 = vsel %vm997_vm8, %v1468_v55, %v11983_v31  ;;  %v1246_v32 = vsel %vm997_vm8, %v1245_v48, %v11984_v46  ;;  %v11998_v48 = vld [vmem:[#allocation74_spill] sm:$0xff]  ;;  %v11999_v6 = vld [vmem:[#allocation69_spill] sm:$0xff]  ;;  %v12003_v31 = vld [vmem:[#allocation44_spill] sm:$0xff] }
 0x45a   : > { %v1448_v57 = vpop.permute.xlu1 %1447  ;;  %v2154_v27 = vsel %vm1003_vm11, %v2153_v35, %v11986_v43  ;;  %v1240_v30 = vsel %vm999_vm9, %v1239_v40, %v11987_v34  ;;  %v1693_v10 = vsel %vm1003_vm11, %v1692_v8, %v11990_v37  ;;  %v1470_v39 = vsel %vm999_vm9, %v1469_v16, %v11991_v45  ;;  %v9224_v43 = vpop.f32.mrf.mxu1 }
 0x45b   : > { %v1456_v24 = vpop.permute.xlu0 %1455  ;;  %v1475_v53 = vsel %vm995_vm7, %v1474_v62, %v1448_v57  ;;  %v11989_v57 = vld [vmem:[#allocation57_spill] sm:$0xff]  ;;  %v1923_v15 = vsel %vm1001_vm10, %v1922_v36, %v11992_v1  ;;  %v1247_v25 = vsel %vm999_vm9, %v1246_v32, %v1226_v52  ;;  %v1008_v18 = vsel %vm997_vm8, %v1007_v23, %v11994_v2  ;;  %12004 = vst [vmem:[#allocation16_spill] sm:$0xff] %v9224_v43 }
 0x45c   : > { %v1476_v59 = vsel %vm997_vm8, %v1475_v53, %v11985_v11  ;;  %v2160_v44 = vsel %vm1001_vm10, %v2159_v61, %v11989_v57  ;;  %v1924_v38 = vsel %vm1003_vm11, %v1923_v15, %v11993_v3  ;;  %v2858_v54 = vrot.slane %v2154_v27, 4  ;;  %v11997_v62 = vld [vmem:[#allocation49_spill] sm:$0xff]  ;;  %v9226_v27 = vpop.f32.mrf.mxu1 }
 0x45d   : > { %v1477_v33 = vsel %vm999_vm9, %v1476_v59, %v1456_v24  ;;  %v1241_v55 = vsel %vm1001_vm10, %v1240_v30, %v11995_v28  ;;  %v1471_v51 = vsel %vm1001_vm10, %v1470_v39, %v11997_v62  ;;  %v2853_v24 = vrot.slane %v1693_v10, 4  ;;  %v789_v59 = vld [vmem:[%s11564_s3] sm:$0xff]  ;;  %12005 = vst [vmem:[#allocation11_spill] sm:$0xff] %v9226_v27 }
 0x45e   : > { %v1908_v41 = vpop.permute.xlu1 %1907  ;;  %v1242_v0 = vsel %vm1003_vm11, %v1241_v55, %v11996_v47  ;;  %v1472_v53 = vsel %vm1003_vm11, %v1471_v51, %v11998_v48  ;;  %v2872_v5 = vsel %vm399_vm0, %v1924_v38, %v2858_v54  ;;  %v2852_v61 = vrot.slane %v1686_v12, 4 }
 0x45f   : > { %v1929_v29 = vsel %vm999_vm9, %v1928_v60, %v1908_v41  ;;  %v1916_v22 = vpop.permute.xlu0 %1915  ;;  %v1248_v60 = vsel %vm1001_vm10, %v1247_v25, %v11999_v6  ;;  %v12000_v41 = vld [vmem:[#allocation71_spill] sm:$0xff]  ;;  %v1000_v23 = vsel %vm999_vm9, %v9078_v13, %v12002_v50  ;;  %v2846_v36 = vrot.slane %v1242_v0, 4 }
 0x460   : > { %v1930_v14 = vsel %vm1001_vm10, %v1929_v29, %v11988_v56  ;;  %v1478_v49 = vsel %vm1001_vm10, %v1477_v33, %v12000_v41  ;;  %v12001_v29 = vld [vmem:[#allocation17_spill] sm:$0xff]  ;;  %v2870_v12 = vsel %vm399_vm0, %v1472_v53, %v2852_v61 }
 0x461   : > { %v1931_v7 = vsel %vm1003_vm11, %v1930_v14, %v1916_v22  ;;  %v1009_v22 = vsel %vm999_vm9, %v1008_v18, %v12001_v29 }
 0x462   : > { %v2146_v26 = vpop.permute.xlu1 %2145  ;;  %v1010_v16 = vsel %vm1001_vm10, %v1009_v22, %v12003_v31 }
 0x463   : > { %v2161_v42 = vsel %vm1003_vm11, %v2160_v44, %v2146_v26  ;;  %v1234_v17 = vpop.permute.xlu0 %1233 }
 0x464   : > { %v2859_v4 = vrot.slane %v2161_v42, 4  ;;  %v1249_v9 = vsel %vm1003_vm11, %v1248_v60, %v1234_v17 }
 0x465   : > { %v2847_v58 = vrot.slane %v1249_v9, 4 }
 0x466   : > { %v957_v63 = vpop.permute.xlu1 %956  ;;  %v2873_v52 = vsel %vm399_vm0, %v1931_v7, %v2859_v4 }
 0x467   : > { %v1464_v21 = vpop.permute.xlu0 %1463  ;;  %2917 = vmatprep.subr.mxu1 %v2873_v52  ;;  %v1002_v19 = vsel %vm1001_vm10, %v1000_v23, %v957_v63 }
 0x468   : > { %v1479_v8 = vsel %vm1003_vm11, %v1478_v49, %v1464_v21  ;;  %2918 = vmatpush1.msra.mxu1 %v2872_v5 }
 0x469   : > { %v2871_v20 = vsel %vm399_vm0, %v1479_v8, %v2853_v24 }
 0x46a   : > { %2919 = vmatprep.subr.mxu1 %v2871_v20  ;;  %v961_v40 = vpop.permute.xlu1 %960 }
 0x46b   : > { %v1004_v35 = vsel %vm1003_vm11, %v1002_v19, %v961_v40  ;;  %v989_v46 = vpop.permute.xlu0 %988  ;;  %2920 = vmatpush1.msra.mxu1 %v2870_v12 }
 0x46c   : > { %v1011_v32 = vsel %vm1003_vm11, %v1010_v16, %v989_v46  ;;  %v2868_v13 = vsel %vm399_vm0, %v1004_v35, %v2846_v36  ;;  %v12012_v16 = vld [vmem:[#allocation7_spill] sm:$0xff] }
 0x46d   : > { %v2869_v11 = vsel %vm399_vm0, %v1011_v32, %v2847_v58 }
 0x46e   : > { %2921 = vmatprep.subr.mxu1 %v2869_v11 }
 0x46f   : > { %2922 = vmatpush1.msra.mxu1 %v2868_v13 }
 0x470   : > { %7080 = vmatmul.mubr.msk.f32.vlgmr.msra.gmra.mxu1 %vm2881_vm12, %v789_v59 }
 0x477   : > { %v2996_v44 = vpop.permute.xlu1 %2995 }
 0x478   : > { %v2879_v30 = vpop.permute.xlu0 %2878 }
 0x47b   : > { %v9228_v37 = vpop.permute.xlu1 %390 }
 0x47c   : > { %12006 = vst [vmem:[#allocation14_spill] sm:$0xff] %v9228_v37  ;;  %v3003_v18 = vpop.permute.xlu0 %3002 }
 0x530   : > { %v2957_v34 = vpop.f32.mrf.mxu1 }
 0x531   : > { %v2958_v14 = vadd.f32 %v2957_v34, %v2879_v30 }
 0x532   : > { %v2959_v56 = vpop.f32.mrf.mxu1 }
 0x533   : > { %v2960_v26 = vadd.f32 %v2959_v56, %v2879_v30 }
 0x535   : > { %v2964_v57 = vadd.f32 %v2960_v26, %v2958_v14 }
 0x537   : > { %2965 = vadd.xlane.f32.xlu1 %v2964_v57 }
 0x5c0   : > { %v2966_v10 = vpop.xlane.xlu1 %2965 }
 0x5c1   : > { %v2967_v45 = vrot.slane %v2966_v10, 4 }
 0x5c3   : > { %v2968_v39 = vadd.f32 %v2967_v45, %v2966_v10 }
 0x5c5   : > { %v2969_v1 = vrot.slane %v2968_v39, 2 }
 0x5c7   : > { %v2970_v15 = vadd.f32 %v2969_v1, %v2968_v39  ;;  %v12013_v39 = vld [vmem:[#allocation8_spill] sm:$0xff] }
 0x5c9   : > { %v2971_v42 = vrot.slane %v2970_v15, 1 }
 0x5cb   : > { %v2972_v17 = vadd.f32 %v2971_v42, %v2970_v15 }
 0x5cd   : > { %v2974_v3 = vmul.f32 0.00048828125, %v2972_v17 }
 0x5cf   : > { %v2975_v38 = vsub.f32 %v2958_v14, %v2974_v3  ;;  %v2976_v25 = vsub.f32 %v2960_v26, %v2974_v3 }
 0x5d1   : > { %v2977_v33 = vmul.f32 %v2975_v38, %v2975_v38  ;;  %v2978_v4 = vmul.f32 %v2976_v25, %v2976_v25 }
 0x5d3   : > { %v2979_v2 = vadd.f32 %v2978_v4, %v2977_v33 }
 0x5d5   : > { %2980 = vadd.xlane.f32.xlu0 %v2979_v2 }
 0x65e   : > { %v2981_v54 = vpop.xlane.xlu0 %2980 }
 0x65f   : > { %v2982_v28 = vrot.slane %v2981_v54, 4 }
 0x661   : > { %v2983_v55 = vadd.f32 %v2982_v28, %v2981_v54 }
 0x663   : > { %v2984_v7 = vrot.slane %v2983_v55, 2 }
 0x665   : > { %v2985_v47 = vadd.f32 %v2984_v7, %v2983_v55 }
 0x667   : > { %v2986_v0 = vrot.slane %v2985_v47, 1 }
 0x669   : > { %v2987_v62 = vadd.f32 %v2986_v0, %v2985_v47 }
 0x66b   : > { %v2988_v51 = vmul.f32 0.00048828125, %v2987_v62 }
 0x66d   : > { %v2989_v63 = vadd.f32 1e-06, %v2988_v51 }
 0x66f   : > { %7208 = vrsqrt.f32 %v2989_v63 }
 0x67c   : > { %v7209_v52 = vpop.eup %7208 }
 0x67d   : > { %v2991_v24 = vmul.f32 %v7209_v52, %v2975_v38  ;;  %v2992_v48 = vmul.f32 %v7209_v52, %v2976_v25 }
 0x67f   : > { %v2998_v53 = vmul.f32 %v2996_v44, %v2991_v24  ;;  %v2999_v6 = vmul.f32 %v2996_v44, %v2992_v48 }
 0x681   : > { %v3005_v60 = vadd.f32 %v3003_v18, %v2998_v53  ;;  %v3006_v41 = vadd.f32 %v3003_v18, %v2999_v6 }
 0x683   : > { %v7081_v49 = vmul.f32 -1.442695, %v3005_v60  ;;  %v7082_v21 = vmul.f32 -1.442695, %v3006_v41 }
 0x685   : > { %7210 = vpow2.f32 %v7081_v49 }
 0x686   : > { %7212 = vpow2.f32 %v7082_v21 }
 0x692   : > { %v7211_v5 = vpop.eup %7210 }
 0x693   : > { %v3013_v61 = vadd.f32 1.0, %v7211_v5  ;;  %v7213_v29 = vpop.eup %7212 }
 0x694   : > { %v3014_v22 = vadd.f32 1.0, %v7213_v29 }
 0x695   : > { %7214 = vrcp.f32 %v3013_v61 }
 0x696   : > { %7216 = vrcp.f32 %v3014_v22 }
 0x6a2   : > { %v7215_v9 = vpop.eup %7214 }
 0x6a3   : > { %v9230_v8 = vmul.f32 %v7215_v9, %v3005_v60  ;;  %v7217_v50 = vpop.eup %7216 }
 0x6a4   : > { %v9244_v23 = vmul.f32 %v7217_v50, %v3006_v41 }
 0x6a5   : > { %3049 = vrot.lane.b32.xlu0 %v9230_v8, %s7282_s25  ;;  %3046 = vrot.lane.b32.xlu1 %v9230_v8, %s7283_s29 }
 0x6a9   : > { %3055 = vrot.lane.b32.xlu0 %v9230_v8, %s12007_s13  ;;  %3052 = vrot.lane.b32.xlu1 %v9230_v8, %s12008_s14 }
 0x6ad   : > { %3061 = vrot.lane.b32.xlu0 %v9230_v8, %s12009_s15  ;;  %3058 = vrot.lane.b32.xlu1 %v9230_v8, %s12010_s16 }
 0x6b1   : > { %3068 = vrot.lane.b32.xlu0 %v9244_v23, %s7283_s29  ;;  %3064 = vrot.lane.b32.xlu1 %v9230_v8, %s12011_s22 }
 0x6b5   : > { %3074 = vrot.lane.b32.xlu0 %v9244_v23, %s12008_s14  ;;  %3071 = vrot.lane.b32.xlu1 %v9244_v23, %s7282_s25 }
 0x6b9   : > { %3080 = vrot.lane.b32.xlu0 %v9244_v23, %s12010_s16  ;;  %3077 = vrot.lane.b32.xlu1 %v9244_v23, %s12007_s13 }
 0x6bd   : > { %3086 = vrot.lane.b32.xlu0 %v9244_v23, %s12011_s22  ;;  %3083 = vrot.lane.b32.xlu1 %v9244_v23, %s12009_s15 }
 0x717   : > { %v3050_v20 = vpop.permute.xlu0 %3049  ;;  %v3047_v36 = vpop.permute.xlu1 %3046 }
 0x718   : > { %v3089_v31 = vcombine.low %v9230_v8, %v3050_v20  ;;  %v3090_v28 = vcombine.high %v9230_v8, %v3050_v20 }
 0x71a   : > { %v3097_v59 = vrot.slane %v3089_v31, %v12012_v16  ;;  %v3104_v41 = vrot.slane %v3090_v28, %v12012_v16 }
 0x71b   : > { %v3056_v19 = vpop.permute.xlu0 %3055  ;;  %v3053_v40 = vpop.permute.xlu1 %3052 }
 0x71c   : > { %v3105_v12 = vcombine.low %v3047_v36, %v3053_v40  ;;  %v3106_v33 = vcombine.high %v3047_v36, %v3053_v40 }
 0x71e   : > { %v3113_v46 = vrot.slane %v3105_v12, %v12012_v16  ;;  %v3120_v52 = vrot.slane %v3106_v33, %v12012_v16 }
 0x71f   : > { %v3062_v58 = vpop.permute.xlu0 %3061  ;;  %v3059_v35 = vpop.permute.xlu1 %3058 }
 0x720   : > { %v3121_v32 = vcombine.low %v3056_v19, %v3062_v58  ;;  %v3153_v30 = vcombine.low %v3097_v59, %v3113_v46  ;;  %v3122_v4 = vcombine.high %v3056_v19, %v3062_v58  ;;  %v3154_v2 = vcombine.high %v3097_v59, %v3113_v46 }
 0x721   : > { %v3169_v61 = vcombine.low %v3104_v41, %v3120_v52 }
 0x722   : > { %v3129_v56 = vrot.slane %v3121_v32, %v12012_v16  ;;  %v3161_v1 = vrot.slane %v3153_v30, %v12013_v39  ;;  %v3136_v24 = vrot.slane %v3122_v4, %v12012_v16  ;;  %v3168_v60 = vrot.slane %v3154_v2, %v12013_v39 }
 0x723   : > { %v9264_v13 = vpop.permute.xlu0 %3068  ;;  %v3065_v11 = vpop.permute.xlu1 %3064  ;;  %v3177_v40 = vrot.slane %v3169_v61, %v12013_v39  ;;  %v3170_v30 = vcombine.high %v3104_v41, %v3120_v52 }
 0x724   : > { %v3137_v34 = vcombine.low %v3059_v35, %v3065_v11  ;;  %v3138_v42 = vcombine.high %v3059_v35, %v3065_v11 }
 0x726   : > { %v3145_v14 = vrot.slane %v3137_v34, %v12012_v16  ;;  %v3152_v55 = vrot.slane %v3138_v42, %v12012_v16 }
 0x727   : > { %v3075_v26 = vpop.permute.xlu0 %3074  ;;  %v3072_v57 = vpop.permute.xlu1 %3071 }
 0x728   : > { %v3185_v44 = vcombine.low %v3129_v56, %v3145_v14  ;;  %v3241_v10 = vcombine.low %v9264_v13, %v3075_v26  ;;  %v3225_v45 = vcombine.low %v9244_v23, %v3072_v57  ;;  %v3186_v38 = vcombine.high %v3129_v56, %v3145_v14 }
 0x729   : > { %v3201_v49 = vcombine.low %v3136_v24, %v3152_v55  ;;  %v3242_v12 = vcombine.high %v9264_v13, %v3075_v26  ;;  %v3226_v58 = vcombine.high %v9244_v23, %v3072_v57  ;;  %v3202_v31 = vcombine.high %v3136_v24, %v3152_v55 }
 0x72a   : > { %v3193_v15 = vrot.slane %v3185_v44, %v12013_v39  ;;  %v3249_v18 = vrot.slane %v3241_v10, %v12012_v16  ;;  %v3233_v54 = vrot.slane %v3225_v45, %v12012_v16  ;;  %v3200_v63 = vrot.slane %v3186_v38, %v12013_v39 }
 0x72b   : > { %v3081_v17 = vpop.permute.xlu0 %3080  ;;  %v3078_v3 = vpop.permute.xlu1 %3077  ;;  %v3209_v8 = vrot.slane %v3201_v49, %v12013_v39  ;;  %v3256_v56 = vrot.slane %v3242_v12, %v12012_v16  ;;  %v3240_v13 = vrot.slane %v3226_v58, %v12012_v16  ;;  %v3216_v44 = vrot.slane %v3202_v31, %v12013_v39 }
 0x72c   : > { %v3217_v25 = vcombine.low %v3161_v1, %v3193_v15  ;;  %v3218_v51 = vcombine.high %v3161_v1, %v3193_v15  ;;  %v3289_v48 = vcombine.low %v3233_v54, %v3249_v18  ;;  %v3219_v5 = vcombine.low %v3168_v60, %v3200_v63 }
 0x72d   : > { %v3220_v9 = vcombine.high %v3168_v60, %v3200_v63  ;;  %v3290_v35 = vcombine.high %v3233_v54, %v3249_v18  ;;  %v3221_v46 = vcombine.low %v3177_v40, %v3209_v8  ;;  %v3222_v26 = vcombine.high %v3177_v40, %v3209_v8 }
 0x72e   : > { %3377 = vrot.lane.b32.xlu1 %v3217_v25, %s12014_s24  ;;  %v3297_v29 = vrot.slane %v3289_v48, %v12013_v39  ;;  %v3305_v10 = vcombine.low %v3240_v13, %v3256_v56  ;;  %v3184_v45 = vrot.slane %v3170_v30, %v12013_v39  ;;  %v3306_v33 = vcombine.high %v3240_v13, %v3256_v56 }
 0x72f   : > { %v3087_v7 = vpop.permute.xlu0 %3086  ;;  %v3084_v47 = vpop.permute.xlu1 %3083  ;;  %v3304_v23 = vrot.slane %v3290_v35, %v12013_v39 }
 0x730   : > { %v3273_v0 = vcombine.low %v3081_v17, %v3087_v7  ;;  %v3257_v62 = vcombine.low %v3078_v3, %v3084_v47  ;;  %v3274_v50 = vcombine.high %v3081_v17, %v3087_v7  ;;  %v3258_v20 = vcombine.high %v3078_v3, %v3084_v47 }
 0x731   : > { %v3223_v1 = vcombine.low %v3184_v45, %v3216_v44  ;;  %v3313_v17 = vrot.slane %v3305_v10, %v12013_v39  ;;  %v3224_v38 = vcombine.high %v3184_v45, %v3216_v44  ;;  %v3320_v18 = vrot.slane %v3306_v33, %v12013_v39 }
 0x732   : > { %v3281_v53 = vrot.slane %v3273_v0, %v12012_v16  ;;  %v3265_v6 = vrot.slane %v3257_v62, %v12012_v16  ;;  %3381 = vrot.lane.b32.xlu1 %v3218_v51, %s12014_s24  ;;  %v3288_v32 = vrot.slane %v3274_v50, %v12012_v16  ;;  %v3272_v11 = vrot.slane %v3258_v20, %v12012_v16 }
 0x734   : > { %v3321_v21 = vcombine.low %v3265_v6, %v3281_v53  ;;  %v3322_v36 = vcombine.high %v3265_v6, %v3281_v53  ;;  %v3337_v14 = vcombine.low %v3272_v11, %v3288_v32  ;;  %v3338_v3 = vcombine.high %v3272_v11, %v3288_v32 }
 0x736   : > { %3385 = vrot.lane.b32.xlu1 %v3219_v5, %s12014_s24  ;;  %v3329_v22 = vrot.slane %v3321_v21, %v12013_v39  ;;  %v3336_v34 = vrot.slane %v3322_v36, %v12013_v39  ;;  %v3345_v42 = vrot.slane %v3337_v14, %v12013_v39  ;;  %v3352_v2 = vrot.slane %v3338_v3, %v12013_v39 }
 0x738   : > { %v3353_v19 = vcombine.low %v3297_v29, %v3329_v22  ;;  %v3354_v59 = vcombine.high %v3297_v29, %v3329_v22  ;;  %v3355_v57 = vcombine.low %v3304_v23, %v3336_v34  ;;  %v3356_v15 = vcombine.high %v3304_v23, %v3336_v34 }
 0x739   : > { %v3357_v25 = vcombine.low %v3313_v17, %v3345_v42  ;;  %v3358_v4 = vcombine.high %v3313_v17, %v3345_v42  ;;  %v3359_v54 = vcombine.low %v3320_v18, %v3352_v2  ;;  %v3360_v28 = vcombine.high %v3320_v18, %v3352_v2 }
 0x73a   : > { %3389 = vrot.lane.b32.xlu1 %v3220_v9, %s12014_s24  ;;  %3379 = vrot.lane.b32.xlu0 %v3353_v19, %s12014_s24 }
 0x73e   : > { %3393 = vrot.lane.b32.xlu1 %v3221_v46, %s12014_s24  ;;  %3383 = vrot.lane.b32.xlu0 %v3354_v59, %s12014_s24 }
 0x742   : > { %3397 = vrot.lane.b32.xlu1 %v3222_v26, %s12014_s24  ;;  %3387 = vrot.lane.b32.xlu0 %v3355_v57, %s12014_s24 }
 0x746   : > { %3401 = vrot.lane.b32.xlu1 %v3223_v1, %s12014_s24  ;;  %3391 = vrot.lane.b32.xlu0 %v3356_v15, %s12014_s24 }
 0x74a   : > { %3405 = vrot.lane.b32.xlu1 %v3224_v38, %s12014_s24  ;;  %3395 = vrot.lane.b32.xlu0 %v3357_v25, %s12014_s24 }
 0x74e   : > { %3399 = vrot.lane.b32.xlu0 %v3358_v4, %s12014_s24 }
 0x752   : > { %3403 = vrot.lane.b32.xlu0 %v3359_v54, %s12014_s24 }
 0x756   : > { %3407 = vrot.lane.b32.xlu0 %v3360_v28, %s12014_s24 }
 0x7a0   : > { %v3378_v55 = vpop.permute.xlu1 %3377 }
 0x7a1   : > { %3425 = vst.msk [vmem:[#allocation3 + $0x1] sm:$0xff] %vm780_vm3, %v3378_v55 }
 0x7a4   : > { %v3382_v7 = vpop.permute.xlu1 %3381 }
 0x7a5   : > { %3427 = vst.msk [vmem:[#allocation3 + $0x19] sm:$0xff] %vm780_vm3, %v3382_v7 }
 0x7a8   : > { %v3386_v47 = vpop.permute.xlu1 %3385  ;;  %v9320_v0 = vld [vmem:[#allocation3] sm:$0xff] }
 0x7a9   : > { %3429 = vst.msk [vmem:[#allocation3 + $0x31] sm:$0xff] %vm780_vm3, %v3386_v47  ;;  %3817 = vrot.lane.b32.xlu1 %v9320_v0, %s12015_s30 }
 0x7ac   : > { %v3380_v62 = vpop.permute.xlu0 %3379  ;;  %v3390_v51 = vpop.permute.xlu1 %3389  ;;  %v9325_v63 = vld [vmem:[#allocation3 + $0x18] sm:$0xff] }
 0x7ad   : > { %3426 = vst.msk [vmem:[#allocation3 + $0x9] sm:$0xff] %vm780_vm3, %v3380_v62  ;;  %3431 = vst.msk [vmem:[#allocation3 + $0x49] sm:$0xff] %vm780_vm3, %v3390_v51  ;;  %3821 = vrot.lane.b32.xlu1 %v9325_v63, %s12015_s30 }
 0x7b0   : > { %v3384_v52 = vpop.permute.xlu0 %3383  ;;  %v3394_v24 = vpop.permute.xlu1 %3393  ;;  %v9331_v48 = vld [vmem:[#allocation3 + $0x30] sm:$0xff] }
 0x7b1   : > { %3428 = vst.msk [vmem:[#allocation3 + $0x21] sm:$0xff] %vm780_vm3, %v3384_v52  ;;  %3433 = vst.msk [vmem:[#allocation3 + $0x61] sm:$0xff] %vm780_vm3, %v3394_v24  ;;  %3825 = vrot.lane.b32.xlu1 %v9331_v48, %s12015_s30  ;;  %v3459_v53 = vcombine.low %v9320_v0, %v9331_v48  ;;  %v3460_v6 = vcombine.high %v9320_v0, %v9331_v48 }
 0x7b3   : > { %v9356_v29 = vrot.slane %v3459_v53, %v12012_v16  ;;  %v9359_v22 = vrot.slane %v3460_v6, %v12012_v16 }
 0x7b4   : > { %v3388_v60 = vpop.permute.xlu0 %3387  ;;  %v3398_v41 = vpop.permute.xlu1 %3397  ;;  %v9341_v49 = vld [vmem:[#allocation3 + $0x8] sm:$0xff] }
 0x7b5   : > { %v9343_v21 = vld [vmem:[#allocation3 + $0x48] sm:$0xff]  ;;  %3430 = vst.msk [vmem:[#allocation3 + $0x39] sm:$0xff] %vm780_vm3, %v3388_v60  ;;  %3435 = vst.msk [vmem:[#allocation3 + $0x79] sm:$0xff] %vm780_vm3, %v3398_v41  ;;  %3819 = vrot.lane.b32.xlu0 %v9341_v49, %s12015_s30 }
 0x7b6   : > { %3829 = vrot.lane.b32.xlu1 %v9343_v21, %s12015_s30  ;;  %v3475_v5 = vcombine.low %v9325_v63, %v9343_v21  ;;  %v3476_v61 = vcombine.high %v9325_v63, %v9343_v21  ;;  %v9452_v62 = vld [vmem:[#allocation3 + $0x49] sm:$0xff] }
 0x7b8   : > { %v9362_v9 = vrot.slane %v3475_v5, %v12012_v16  ;;  %v9365_v8 = vrot.slane %v3476_v61, %v12012_v16  ;;  %v3392_v50 = vpop.permute.xlu0 %3391  ;;  %v3402_v20 = vpop.permute.xlu1 %3401  ;;  %v9367_v36 = vld [vmem:[#allocation3 + $0x20] sm:$0xff] }
 0x7b9   : > { %v9369_v19 = vld [vmem:[#allocation3 + $0x60] sm:$0xff]  ;;  %3432 = vst.msk [vmem:[#allocation3 + $0x51] sm:$0xff] %vm780_vm3, %v3392_v50  ;;  %3437 = vst.msk [vmem:[#allocation3 + $0x91] sm:$0xff] %vm780_vm3, %v3402_v20  ;;  %3823 = vrot.lane.b32.xlu0 %v9367_v36, %s12015_s30  ;;  %v9478_v50 = vld [vmem:[#allocation3 + $0xa] sm:$0xff] }
 0x7ba   : > { %3833 = vrot.lane.b32.xlu1 %v9369_v19, %s12015_s30  ;;  %v3523_v40 = vcombine.low %v9356_v29, %v9362_v9  ;;  %v3524_v12 = vcombine.high %v9356_v29, %v9362_v9  ;;  %v3539_v58 = vcombine.low %v9359_v22, %v9365_v8  ;;  %v3540_v35 = vcombine.high %v9359_v22, %v9365_v8  ;;  %v9474_v5 = vld [vmem:[#allocation3 + $0x19] sm:$0xff]  ;;  %v9476_v61 = vld [vmem:[#allocation3 + $0x22] sm:$0xff] }
 0x7bb   : > { %v4629_v20 = vcombine.low %v9474_v5, %v9452_v62 }
 0x7bc   : > { %v3396_v31 = vpop.permute.xlu0 %3395  ;;  %v3406_v46 = vpop.permute.xlu1 %3405  ;;  %v9385_v32 = vld [vmem:[#allocation3 + $0x38] sm:$0xff]  ;;  %v9510_v29 = vrot.slane %v3540_v35, %v12013_v39 }
 0x7bd   : > { %v9387_v11 = vld [vmem:[#allocation3 + $0x78] sm:$0xff]  ;;  %3434 = vst.msk [vmem:[#allocation3 + $0x69] sm:$0xff] %vm780_vm3, %v3396_v31  ;;  %3439 = vst.msk [vmem:[#allocation3 + $0xa9] sm:$0xff] %vm780_vm3, %v3406_v46  ;;  %3827 = vrot.lane.b32.xlu0 %v9385_v32, %s12015_s30  ;;  %v3595_v59 = vcombine.low %v9341_v49, %v9385_v32  ;;  %v3596_v34 = vcombine.high %v9341_v49, %v9385_v32  ;;  %v9486_v31 = vrot.slane %v3523_v40, %v12013_v39 }
 0x7be   : > { %3837 = vrot.lane.b32.xlu1 %v9387_v11, %s12015_s30  ;;  %v9504_v40 = vrot.slane %v3539_v58, %v12013_v39  ;;  %12024 = vst [vmem:[#allocation37_spill] sm:$0xff] %v9510_v29  ;;  %v9686_v27 = vld [vmem:[#allocation3 + $0x79] sm:$0xff] }
 0x7bf   : > { %v9442_v18 = vrot.slane %v3595_v59, %v12012_v16  ;;  %v9445_v54 = vrot.slane %v3596_v34, %v12012_v16  ;;  %12021 = vst [vmem:[#allocation29_spill] sm:$0xff] %v9486_v31 }
 0x7c0   : > { %v3400_v30 = vpop.permute.xlu0 %3399  ;;  %v9399_v56 = vld [vmem:[#allocation3 + $0x50] sm:$0xff]  ;;  %12023 = vst [vmem:[#allocation19_spill] sm:$0xff] %v9504_v40 }
 0x7c1   : > { %v9401_v13 = vld [vmem:[#allocation3 + $0x90] sm:$0xff]  ;;  %3436 = vst.msk [vmem:[#allocation3 + $0x81] sm:$0xff] %vm780_vm3, %v3400_v30  ;;  %3831 = vrot.lane.b32.xlu0 %v9399_v56, %s12015_s30  ;;  %v3611_v23 = vcombine.low %v9367_v36, %v9399_v56  ;;  %v3612_v14 = vcombine.high %v9367_v36, %v9399_v56 }
 0x7c2   : > { %12016 = vst [vmem:[#allocation34_spill] sm:$0xff] %v9401_v13  ;;  %3841 = vrot.lane.b32.xlu1 %v9401_v13, %s12015_s30  ;;  %v3491_v26 = vcombine.low %v9369_v19, %v9401_v13  ;;  %v3492_v57 = vcombine.high %v9369_v19, %v9401_v13  ;;  %v9462_v6 = vld [vmem:[#allocation3 + $0x52] sm:$0xff] }
 0x7c3   : > { %v9430_v42 = vrot.slane %v3611_v23, %v12012_v16  ;;  %v9433_v17 = vrot.slane %v3612_v14, %v12012_v16  ;;  %v5919_v46 = vcombine.low %v9476_v61, %v9462_v6 }
 0x7c4   : > { %v3404_v44 = vpop.permute.xlu0 %3403  ;;  %v9416_v10 = vld [vmem:[#allocation3 + $0x68] sm:$0xff]  ;;  %v3499_v3 = vrot.slane %v3491_v26, %v12012_v16  ;;  %v3506_v33 = vrot.slane %v3492_v57, %v12012_v16 }
 0x7c5   : > { %v9418_v45 = vld [vmem:[#allocation3 + $0xa8] sm:$0xff]  ;;  %3438 = vst.msk [vmem:[#allocation3 + $0x99] sm:$0xff] %vm780_vm3, %v3404_v44  ;;  %3835 = vrot.lane.b32.xlu0 %v9416_v10, %s12015_s30  ;;  %v3660_v51 = vcombine.high %v9442_v18, %v9430_v42  ;;  %v3675_v52 = vcombine.low %v9445_v54, %v9433_v17  ;;  %v3659_v24 = vcombine.low %v9442_v18, %v9430_v42 }
 0x7c6   : > { %12017 = vst [vmem:[#allocation12_spill] sm:$0xff] %v9418_v45  ;;  %3845 = vrot.lane.b32.xlu1 %v9418_v45, %s12015_s30  ;;  %v3507_v1 = vcombine.low %v9387_v11, %v9418_v45  ;;  %v3508_v15 = vcombine.high %v9387_v11, %v9418_v45  ;;  %v3676_v60 = vcombine.high %v9445_v54, %v9433_v17  ;;  %v9498_v34 = vld [vmem:[#allocation3 + $0x6a] sm:$0xff] }
 0x7c7   : > { %v9722_v40 = vld [vmem:[#allocation3 + $0x69] sm:$0xff] }
 0x7c8   : > { %v3515_v38 = vrot.slane %v3507_v1, %v12012_v16  ;;  %v3522_v25 = vrot.slane %v3508_v15, %v12012_v16  ;;  %v3408_v4 = vpop.permute.xlu0 %3407  ;;  %v9439_v2 = vld [vmem:[#allocation3 + $0x80] sm:$0xff] }
 0x7c9   : > { %12018 = vst [vmem:[#allocation15_spill] sm:$0xff] %v9439_v2  ;;  %3440 = vst.msk [vmem:[#allocation3 + $0xb1] sm:$0xff] %vm780_vm3, %v3408_v4  ;;  %3839 = vrot.lane.b32.xlu0 %v9439_v2, %s12015_s30  ;;  %v9518_v23 = vld [vmem:[#allocation3 + $0x82] sm:$0xff]  ;;  %v5927_v4 = vrot.slane %v5919_v46, %v12012_v16  ;;  %v9577_v46 = vrot.slane %v3660_v51, %v12013_v39 }
 0x7ca   : > { %4207 = vrot.lane.b32.xlu1 %v9320_v0, %s12019_s12  ;;  %v3555_v28 = vcombine.low %v3499_v3, %v3515_v38  ;;  %v3556_v55 = vcombine.high %v3499_v3, %v3515_v38  ;;  %v3571_v7 = vcombine.low %v3506_v33, %v3522_v25  ;;  %v3572_v47 = vcombine.high %v3506_v33, %v3522_v25  ;;  %v9464_v0 = vld [vmem:[#allocation3 + $0x3a] sm:$0xff] }
 0x7cb   : > { %v5903_v59 = vcombine.low %v9478_v50, %v9464_v0  ;;  %v5904_v17 = vcombine.high %v9478_v50, %v9464_v0  ;;  %12030 = vst [vmem:[#allocation38_spill] sm:$0xff] %v9577_v46 }
 0x7cc   : > { %v9460_v53 = vld [vmem:[#allocation3 + $0x98] sm:$0xff]  ;;  %v9525_v26 = vrot.slane %v3555_v28, %v12013_v39  ;;  %v9540_v44 = vrot.slane %v3556_v55, %v12013_v39  ;;  %v9543_v1 = vrot.slane %v3571_v7, %v12013_v39  ;;  %v9546_v15 = vrot.slane %v3572_v47, %v12013_v39  ;;  %v9677_v47 = vld [vmem:[#allocation3 + $0x61] sm:$0xff] }
 0x7cd   : > { %12020 = vst [vmem:[#allocation32_spill] sm:$0xff] %v9460_v53  ;;  %3843 = vrot.lane.b32.xlu0 %v9460_v53, %s12015_s30  ;;  %v9472_v41 = vld [vmem:[#allocation3 + $0x9a] sm:$0xff]  ;;  %v3627_v9 = vcombine.low %v9416_v10, %v9460_v53  ;;  %v5911_v3 = vrot.slane %v5903_v59, %v12012_v16  ;;  %12044 = vst [vmem:[#allocation59_spill] sm:$0xff] %v9677_v47  ;;  %v9684_v28 = vld [vmem:[#allocation3 + $0x92] sm:$0xff] }
 0x7ce   : > { %4211 = vrot.lane.b32.xlu1 %v9325_v63, %s12019_s12  ;;  %v9492_v63 = vrot.slane %v3524_v12, %v12013_v39  ;;  %v3628_v12 = vcombine.high %v9416_v10, %v9460_v53  ;;  %v5935_v58 = vcombine.low %v9498_v34, %v9472_v41  ;;  %12026 = vst [vmem:[#allocation54_spill] sm:$0xff] %v9525_v26  ;;  %12027 = vst [vmem:[#allocation36_spill] sm:$0xff] %v9540_v44  ;;  %v9682_v55 = vld [vmem:[#allocation3 + $0x7a] sm:$0xff] }
 0x7cf   : > { %12028 = vst [vmem:[#allocation22_spill] sm:$0xff] %v9543_v1  ;;  %12029 = vst [vmem:[#allocation56_spill] sm:$0xff] %v9546_v15  ;;  %v3635_v38 = vrot.slane %v3627_v9, %v12012_v16  ;;  %v9720_v1 = vld [vmem:[#allocation3 + $0x21] sm:$0xff] }
 0x7d0   : > { %12022 = vst [vmem:[#allocation35_spill] sm:$0xff] %v9492_v63  ;;  %v9516_v30 = vld [vmem:[#allocation3 + $0xb0] sm:$0xff]  ;;  %v3642_v25 = vrot.slane %v3628_v12, %v12012_v16  ;;  %v5943_v54 = vrot.slane %v5935_v58, %v12012_v16  ;;  %v9582_v12 = vrot.slane %v3675_v52, %v12013_v39 }
 0x7d1   : > { %12025 = vst [vmem:[#allocation39_spill] sm:$0xff] %v9516_v30  ;;  %v9520_v14 = vld [vmem:[#allocation3 + $0xb2] sm:$0xff]  ;;  %3847 = vrot.lane.b32.xlu0 %v9516_v30, %s12015_s30  ;;  %v3643_v22 = vcombine.low %v9439_v2, %v9516_v30  ;;  %v3644_v8 = vcombine.high %v9439_v2, %v9516_v30 }
 0x7d2   : > { %4215 = vrot.lane.b32.xlu1 %v9331_v48, %s12019_s12  ;;  %v5951_v35 = vcombine.low %v9518_v23, %v9520_v14  ;;  %v5952_v57 = vcombine.high %v9518_v23, %v9520_v14  ;;  %v5920_v48 = vcombine.high %v9476_v61, %v9462_v6  ;;  %12031 = vst [vmem:[#allocation41_spill] sm:$0xff] %v9582_v12 }
 0x7d3   : > { %v3651_v42 = vrot.slane %v3643_v22, %v12012_v16  ;;  %v3658_v33 = vrot.slane %v3644_v8, %v12012_v16  ;;  %v9585_v22 = vrot.slane %v3659_v24, %v12013_v39 }
 0x7d4   : > { %v5959_v18 = vrot.slane %v5951_v35, %v12012_v16  ;;  %v9595_v35 = vrot.slane %v3676_v60, %v12013_v39  ;;  %v5968_v60 = vcombine.high %v5911_v3, %v5927_v4 }
 0x7d5   : > { %4209 = vrot.lane.b32.xlu0 %v9341_v49, %s12019_s12  ;;  %v3692_v59 = vcombine.high %v3635_v38, %v3651_v42  ;;  %v3707_v58 = vcombine.low %v3642_v25, %v3658_v33  ;;  %12032 = vst [vmem:[#allocation18_spill] sm:$0xff] %v9585_v22  ;;  %v3691_v8 = vcombine.low %v3635_v38, %v3651_v42  ;;  %v9649_v49 = vld [vmem:[#allocation3 + $0x39] sm:$0xff] }
 0x7d6   : > { %4219 = vrot.lane.b32.xlu1 %v9343_v21, %s12019_s12  ;;  %12034 = vst [vmem:[#allocation58_spill] sm:$0xff] %v9595_v35  ;;  %v3708_v9 = vcombine.high %v3642_v25, %v3658_v33  ;;  %v5967_v42 = vcombine.low %v5911_v3, %v5927_v4  ;;  %v5999_v38 = vcombine.low %v5943_v54, %v5959_v18  ;;  %v9637_v33 = vld [vmem:[#allocation3 + $0x32] sm:$0xff]  ;;  %v9643_v25 = vld [vmem:[#allocation3 + $0x2] sm:$0xff] }
 0x7d7   : > { %v9592_v51 = vrot.slane %v3692_v59, %v12013_v39  ;;  %v9598_v52 = vrot.slane %v3707_v58, %v12013_v39  ;;  %v9601_v24 = vrot.slane %v3691_v8, %v12013_v39  ;;  %v5934_v3 = vrot.slane %v5920_v48, %v12012_v16  ;;  %v9631_v59 = vld [vmem:[#allocation3 + $0x31] sm:$0xff]  ;;  %v9639_v48 = vld [vmem:[#allocation3 + $0x1] sm:$0xff]  ;;  %v9647_v21 = vld [vmem:[#allocation3 + $0x9] sm:$0xff] }
 0x7d8   : > { %v9615_v58 = vrot.slane %v5967_v42, %v12013_v39  ;;  %v9618_v8 = vrot.slane %v5999_v38, %v12013_v39  ;;  %v5936_v42 = vcombine.high %v9498_v34, %v9472_v41  ;;  %12040 = vst [vmem:[#allocation52_spill] sm:$0xff] %v9631_v59  ;;  %12041 = vst [vmem:[#allocation27_spill] sm:$0xff] %v9639_v48  ;;  %v9667_v38 = vld [vmem:[#allocation3 + $0xb1] sm:$0xff] }
 0x7d9   : > { %4213 = vrot.lane.b32.xlu0 %v9367_v36, %s12019_s12  ;;  %12033 = vst [vmem:[#allocation9_spill] sm:$0xff] %v9592_v51  ;;  %12035 = vst [vmem:[#allocation40_spill] sm:$0xff] %v9598_v52  ;;  %v5918_v4 = vrot.slane %v5904_v17, %v12012_v16  ;;  %v9645_v36 = vld [vmem:[#allocation3 + $0xaa] sm:$0xff]  ;;  %v9698_v52 = vld [vmem:[#allocation3 + $0x81] sm:$0xff]  ;;  %v4749_v12 = vcombine.low %v9647_v21, %v9649_v49 }
 0x7da   : > { %4223 = vrot.lane.b32.xlu1 %v9369_v19, %s12019_s12  ;;  %12036 = vst [vmem:[#allocation51_spill] sm:$0xff] %v9601_v24  ;;  %v9606_v19 = vrot.slane %v3708_v9, %v12013_v39  ;;  %12038 = vst [vmem:[#allocation28_spill] sm:$0xff] %v9615_v58  ;;  %v5966_v9 = vrot.slane %v5952_v57, %v12012_v16  ;;  %v9663_v57 = vld [vmem:[#allocation3 + $0x1a] sm:$0xff]  ;;  %v9665_v17 = vld [vmem:[#allocation3 + $0x4a] sm:$0xff]  ;;  %v5950_v7 = vrot.slane %v5936_v42, %v12012_v16 }
 0x7db   : > { %12039 = vst [vmem:[#allocation31_spill] sm:$0xff] %v9618_v8  ;;  %v5983_v37 = vcombine.low %v5918_v4, %v5934_v3  ;;  %v5815_v35 = vcombine.low %v9682_v55, %v9645_v36  ;;  %v9696_v42 = vld [vmem:[#allocation3 + $0x51] sm:$0xff]  ;;  %v9702_v51 = vld [vmem:[#allocation3 + $0x99] sm:$0xff]  ;;  %v5984_v45 = vcombine.high %v5918_v4, %v5934_v3 }
 0x7dc   : > { %12037 = vst [vmem:[#allocation76_spill] sm:$0xff] %v9606_v19  ;;  %v5767_v19 = vcombine.low %v9643_v25, %v9637_v33  ;;  %v6015_v15 = vcombine.low %v5950_v7, %v5966_v9  ;;  %v6016_v44 = vcombine.high %v5950_v7, %v5966_v9  ;;  %v4765_v63 = vcombine.low %v9720_v1, %v9696_v42 }
 0x7dd   : > { %4217 = vrot.lane.b32.xlu0 %v9385_v32, %s12019_s12  ;;  %v6000_v32 = vcombine.high %v5943_v54, %v5959_v18  ;;  %v9651_v18 = vld [vmem:[#allocation3 + $0xa9] sm:$0xff]  ;;  %v9654_v54 = vrot.slane %v5968_v60, %v12013_v39  ;;  %v9673_v60 = vrot.slane %v4629_v20, %v12012_v16  ;;  %v5783_v20 = vcombine.low %v9663_v57, %v9665_v17 }
 0x7de   : > { %4227 = vrot.lane.b32.xlu1 %v9387_v11, %s12019_s12  ;;  %v4661_v43 = vcombine.low %v9686_v27, %v9651_v18  ;;  %v4781_v30 = vcombine.low %v9722_v40, %v9702_v51  ;;  %v9732_v2 = vrot.slane %v6015_v15, %v12013_v39  ;;  %v9735_v13 = vrot.slane %v5815_v35, %v12012_v16 }
 0x7df   : > { %12042 = vst [vmem:[#allocation26_spill] sm:$0xff] %v9654_v54  ;;  %v9657_v11 = vrot.slane %v6000_v32, %v12013_v39  ;;  %v4613_v32 = vcombine.low %v9639_v48, %v9631_v59  ;;  %v4797_v54 = vcombine.low %v9698_v52, %v9667_v38  ;;  %v9741_v7 = vrot.slane %v5984_v45, %v12013_v39 }
 0x7e0   : > { %v9738_v53 = vrot.slane %v4661_v43, %v12012_v16  ;;  %v9744_v3 = vrot.slane %v6016_v44, %v12013_v39  ;;  %v9747_v4 = vrot.slane %v5783_v20, %v12012_v16  ;;  %v9769_v9 = vrot.slane %v4765_v63, %v12012_v16 }
 0x7e1   : > { %12043 = vst [vmem:[#allocation75_spill] sm:$0xff] %v9657_v11  ;;  %4221 = vrot.lane.b32.xlu0 %v9399_v56, %s12019_s12  ;;  %v9679_v56 = vld [vmem:[#allocation3 + $0x91] sm:$0xff]  ;;  %v9708_v11 = vld [vmem:[#allocation3 + $0x62] sm:$0xff]  ;;  %v9777_v35 = vrot.slane %v5767_v19, %v12012_v16  ;;  %v9787_v63 = vrot.slane %v4749_v12, %v12012_v16 }
 0x7e2   : > { %6521 = vrot.lane.b32.xlu1 %v9476_v61, %s12019_s12  ;;  %v4645_v46 = vcombine.low %v9677_v47, %v9679_v56  ;;  %v5799_v29 = vcombine.low %v9708_v11, %v9684_v28  ;;  %12046 = vst [vmem:[#allocation24_spill] sm:$0xff] %v9769_v9 }
 0x7e3   : > { %12049 = vst [vmem:[#allocation62_spill] sm:$0xff] %v9787_v63  ;;  %v5831_v19 = vcombine.low %v9777_v35, %v9747_v4  ;;  %v4813_v20 = vcombine.low %v9787_v63, %v9769_v9 }
 0x7e4   : > { %v9761_v43 = vrot.slane %v5799_v29, %v12012_v16  ;;  %v9764_v45 = vrot.slane %v4645_v46, %v12012_v16  ;;  %v9780_v29 = vrot.slane %v4613_v32, %v12012_v16 }
 0x7e5   : > { %4225 = vrot.lane.b32.xlu0 %v9416_v10, %s12019_s12  ;;  %v9729_v10 = vrot.slane %v5983_v37, %v12013_v39  ;;  %v9750_v37 = vrot.slane %v4797_v54, %v12012_v16  ;;  %v9772_v54 = vrot.slane %v4781_v30, %v12012_v16 }
 0x7e6   : > { %6529 = vrot.lane.b32.xlu1 %v9462_v6, %s12019_s12  ;;  %12048 = vst [vmem:[#allocation61_spill] sm:$0xff] %v9780_v29  ;;  %v5863_v46 = vcombine.low %v9761_v43, %v9735_v13  ;;  %v4709_v44 = vcombine.low %v9764_v45, %v9738_v53  ;;  %v4677_v32 = vcombine.low %v9780_v29, %v9673_v60 }
 0x7e7   : > { %12045 = vst [vmem:[#allocation60_spill] sm:$0xff] %v9750_v37  ;;  %12047 = vst [vmem:[#allocation48_spill] sm:$0xff] %v9772_v54  ;;  %v4845_v30 = vcombine.low %v9772_v54, %v9750_v37  ;;  %v9815_v37 = vrot.slane %v5831_v19, %v12013_v39 }
 0x7e8   : > { %v9802_v12 = vrot.slane %v5863_v46, %v12013_v39  ;;  %v9805_v15 = vrot.slane %v4709_v44, %v12013_v39  ;;  %v9818_v63 = vrot.slane %v4677_v32, %v12013_v39  ;;  %v9821_v46 = vrot.slane %v4813_v20, %v12013_v39 }
 0x7e9   : > { %6517 = vrot.lane.b32.xlu0 %v9478_v50, %s12019_s12  ;;  %v9808_v54 = vrot.slane %v4845_v30, %v12013_v39  ;;  %12053 = vst [vmem:[#allocation55_spill] sm:$0xff] %v9815_v37 }
 0x7ea   : > { %6537 = vrot.lane.b32.xlu1 %v9518_v23, %s12019_s12  ;;  %12050 = vst [vmem:[#allocation10_spill] sm:$0xff] %v9802_v12  ;;  %12051 = vst [vmem:[#allocation13_spill] sm:$0xff] %v9805_v15 }
 0x7eb   : > { %12052 = vst [vmem:[#allocation53_spill] sm:$0xff] %v9808_v54  ;;  %12054 = vst [vmem:[#allocation45_spill] sm:$0xff] %v9818_v63 }
 0x7ec   : > { %12055 = vst [vmem:[#allocation50_spill] sm:$0xff] %v9821_v46 }
 0x7ed   : > { %6525 = vrot.lane.b32.xlu0 %v9464_v0, %s12019_s12 }
 0x7ee   : > { %6545 = vrot.lane.b32.xlu1 %v9520_v14, %s12019_s12 }
 0x7f1   : > { %6533 = vrot.lane.b32.xlu0 %v9498_v34, %s12019_s12 }
 0x7f2   : > { %6519 = vrot.lane.b32.xlu1 %v9663_v57, %s12019_s12 }
 0x7f5   : > { %6541 = vrot.lane.b32.xlu0 %v9472_v41, %s12019_s12 }
 0x7f6   : > { %6527 = vrot.lane.b32.xlu1 %v9665_v17, %s12019_s12 }
 0x7f9   : > { %6515 = vrot.lane.b32.xlu0 %v9643_v25, %s12019_s12 }
 0x7fa   : > { %6535 = vrot.lane.b32.xlu1 %v9682_v55, %s12019_s12 }
 0x7fd   : > { %6523 = vrot.lane.b32.xlu0 %v9637_v33, %s12019_s12 }
 0x7fe   : > { %6543 = vrot.lane.b32.xlu1 %v9645_v36, %s12019_s12 }
 0x801   : > { %6531 = vrot.lane.b32.xlu0 %v9708_v11, %s12019_s12 }
 0x802   : > { %6131 = vrot.lane.b32.xlu1 %v9476_v61, %s12015_s30 }
 0x805   : > { %6539 = vrot.lane.b32.xlu0 %v9684_v28, %s12019_s12 }
 0x806   : > { %6139 = vrot.lane.b32.xlu1 %v9462_v6, %s12015_s30 }
 0x809   : > { %6127 = vrot.lane.b32.xlu0 %v9478_v50, %s12015_s30 }
 0x80a   : > { %6147 = vrot.lane.b32.xlu1 %v9518_v23, %s12015_s30 }
 0x80d   : > { %6135 = vrot.lane.b32.xlu0 %v9464_v0, %s12015_s30 }
 0x80e   : > { %6155 = vrot.lane.b32.xlu1 %v9520_v14, %s12015_s30 }
 0x811   : > { %6143 = vrot.lane.b32.xlu0 %v9498_v34, %s12015_s30 }
 0x812   : > { %6129 = vrot.lane.b32.xlu1 %v9663_v57, %s12015_s30 }
 0x815   : > { %6151 = vrot.lane.b32.xlu0 %v9472_v41, %s12015_s30 }
 0x816   : > { %6137 = vrot.lane.b32.xlu1 %v9665_v17, %s12015_s30 }
 0x819   : > { %6125 = vrot.lane.b32.xlu0 %v9643_v25, %s12015_s30 }
 0x81a   : > { %6145 = vrot.lane.b32.xlu1 %v9682_v55, %s12015_s30 }
 0x81b   : > { %v9875_v6 = vpop.permute.xlu1 %3817 }
 0x81c   : > { %12056 = vst [vmem:[#allocation42_spill] sm:$0xff] %v9875_v6 }
 0x81d   : > { %6133 = vrot.lane.b32.xlu0 %v9637_v33, %s12015_s30 }
 0x81e   : > { %6153 = vrot.lane.b32.xlu1 %v9645_v36, %s12015_s30 }
 0x81f   : > { %v9881_v0 = vpop.permute.xlu1 %3821 }
 0x820   : > { %12057 = vst [vmem:[#allocation20_spill] sm:$0xff] %v9881_v0 }
 0x821   : > { %6141 = vrot.lane.b32.xlu0 %v9708_v11, %s12015_s30 }
 0x822   : > { %5367 = vrot.lane.b32.xlu1 %v9720_v1, %s12019_s12 }
 0x823   : > { %v9887_v41 = vpop.permute.xlu1 %3825 }
 0x824   : > { %12058 = vst [vmem:[#allocation64_spill] sm:$0xff] %v9887_v41  ;;  %v3865_v32 = vcombine.low %v9875_v6, %v9887_v41 }
 0x825   : > { %6149 = vrot.lane.b32.xlu0 %v9684_v28, %s12015_s30 }
 0x826   : > { %5375 = vrot.lane.b32.xlu1 %v9696_v42, %s12019_s12  ;;  %v9945_v6 = vrot.slane %v3865_v32, %v12012_v16 }
 0x827   : > { %v9893_v61 = vpop.permute.xlu0 %3819 }
 0x828   : > { %12059 = vst [vmem:[#allocation21_spill] sm:$0xff] %v9893_v61  ;;  %v9895_v50 = vpop.permute.xlu1 %3829  ;;  %12070 = vst [vmem:[#allocation30_spill] sm:$0xff] %v9945_v6 }
 0x829   : > { %12060 = vst [vmem:[#allocation33_spill] sm:$0xff] %v9895_v50  ;;  %5363 = vrot.lane.b32.xlu0 %v9647_v21, %s12019_s12  ;;  %v3881_v9 = vcombine.low %v9881_v0, %v9895_v50 }
 0x82a   : > { %5383 = vrot.lane.b32.xlu1 %v9698_v52, %s12019_s12 }
 0x82b   : > { %v9901_v34 = vpop.permute.xlu0 %3823  ;;  %v9936_v54 = vrot.slane %v3881_v9, %v12012_v16 }
 0x82c   : > { %12061 = vst [vmem:[#allocation25_spill] sm:$0xff] %v9901_v34  ;;  %v9903_v23 = vpop.permute.xlu1 %3833 }
 0x82d   : > { %12062 = vst [vmem:[#allocation63_spill] sm:$0xff] %v9903_v23  ;;  %5371 = vrot.lane.b32.xlu0 %v9649_v49, %s12019_s12  ;;  %12069 = vst [vmem:[#allocation70_spill] sm:$0xff] %v9936_v54  ;;  %v3929_v50 = vcombine.low %v9945_v6, %v9936_v54 }
 0x82e   : > { %5391 = vrot.lane.b32.xlu1 %v9667_v38, %s12019_s12 }
 0x82f   : > { %v9909_v14 = vpop.permute.xlu0 %3827  ;;  %v9977_v6 = vrot.slane %v3929_v50, %v12013_v39 }
 0x830   : > { %12063 = vst [vmem:[#allocation65_spill] sm:$0xff] %v9909_v14  ;;  %v9911_v20 = vpop.permute.xlu1 %3837  ;;  %v4001_v54 = vcombine.low %v9893_v61, %v9909_v14 }
 0x831   : > { %12064 = vst [vmem:[#allocation66_spill] sm:$0xff] %v9911_v20  ;;  %5379 = vrot.lane.b32.xlu0 %v9722_v40, %s12019_s12  ;;  %12078 = vst [vmem:[#allocation71_spill] sm:$0xff] %v9977_v6 }
 0x832   : > { %5365 = vrot.lane.b32.xlu1 %v9474_v5, %s12019_s12  ;;  %v9999_v61 = vrot.slane %v4001_v54, %v12012_v16 }
 0x833   : > { %v9917_v44 = vpop.permute.xlu0 %3831 }
 0x834   : > { %12065 = vst [vmem:[#allocation68_spill] sm:$0xff] %v9917_v44  ;;  %v9919_v30 = vpop.permute.xlu1 %3841  ;;  %12082 = vst [vmem:[#allocation7_spill] sm:$0xff] %v9999_v61 }
 0x835   : > { %12066 = vst [vmem:[#allocation67_spill] sm:$0xff] %v9919_v30  ;;  %5387 = vrot.lane.b32.xlu0 %v9702_v51, %s12019_s12  ;;  %v3897_v19 = vcombine.low %v9903_v23, %v9919_v30 }
 0x836   : > { %5373 = vrot.lane.b32.xlu1 %v9452_v62, %s12019_s12 }
 0x837   : > { %v9931_v29 = vpop.permute.xlu0 %3835  ;;  %v9948_v41 = vrot.slane %v3897_v19, %v12012_v16 }
 0x838   : > { %12067 = vst [vmem:[#allocation57_spill] sm:$0xff] %v9931_v29  ;;  %v9933_v46 = vpop.permute.xlu1 %3845 }
 0x839   : > { %12068 = vst [vmem:[#allocation23_spill] sm:$0xff] %v9933_v46  ;;  %v3913_v0 = vcombine.low %v9911_v20, %v9933_v46  ;;  %5361 = vrot.lane.b32.xlu0 %v9639_v48, %s12019_s12  ;;  %12071 = vst [vmem:[#allocation73_spill] sm:$0xff] %v9948_v41 }
 0x83a   : > { %5381 = vrot.lane.b32.xlu1 %v9686_v27, %s12019_s12 }
 0x83b   : > { %v9951_v23 = vrot.slane %v3913_v0, %v12012_v16  ;;  %v9953_v9 = vpop.permute.xlu0 %3839 }
 0x83c   : > { %12073 = vst [vmem:[#allocation47_spill] sm:$0xff] %v9953_v9  ;;  %v9955_v30 = vpop.permute.xlu1 %4207 }
 0x83d   : > { %12072 = vst [vmem:[#allocation43_spill] sm:$0xff] %v9951_v23  ;;  %12074 = vst [vmem:[#allocation72_spill] sm:$0xff] %v9955_v30  ;;  %v3961_v20 = vcombine.low %v9948_v41, %v9951_v23  ;;  %5369 = vrot.lane.b32.xlu0 %v9631_v59, %s12019_s12  ;;  %v4017_v30 = vcombine.low %v9901_v34, %v9917_v44 }
 0x83e   : > { %5389 = vrot.lane.b32.xlu1 %v9651_v18, %s12019_s12 }
 0x83f   : > { %v9965_v19 = vpop.permute.xlu0 %3843  ;;  %v9970_v0 = vrot.slane %v3961_v20, %v12013_v39  ;;  %v9992_v44 = vrot.slane %v4017_v30, %v12012_v16 }
 0x840   : > { %12075 = vst [vmem:[#allocation49_spill] sm:$0xff] %v9965_v19  ;;  %v9967_v32 = vpop.permute.xlu1 %4211  ;;  %v4033_v41 = vcombine.low %v9931_v29, %v9965_v19 }
 0x841   : > { %12076 = vst [vmem:[#allocation74_spill] sm:$0xff] %v9967_v32  ;;  %12077 = vst [vmem:[#allocation69_spill] sm:$0xff] %v9970_v0  ;;  %5377 = vrot.lane.b32.xlu0 %v9677_v47, %s12019_s12  ;;  %v4065_v29 = vcombine.low %v9999_v61, %v9992_v44 }
 0x842   : > { %4977 = vrot.lane.b32.xlu1 %v9720_v1, %s12015_s30  ;;  %12081 = vst [vmem:[#allocation44_spill] sm:$0xff] %v9992_v44  ;;  %v10002_v14 = vrot.slane %v4033_v41, %v12012_v16 }
 0x843   : > { %v9985_v20 = vpop.permute.xlu0 %3847 }
 0x844   : > { %12079 = vst [vmem:[#allocation17_spill] sm:$0xff] %v9985_v20  ;;  %v9987_v32 = vpop.permute.xlu1 %4215  ;;  %v4049_v50 = vcombine.low %v9953_v9, %v9985_v20  ;;  %12083 = vst [vmem:[#allocation8_spill] sm:$0xff] %v10002_v14  ;;  %v12104_v9 = vld [vmem:[#allocation34_spill] sm:$0xff] }
 0x845   : > { %12080 = vst [vmem:[#allocation46_spill] sm:$0xff] %v9987_v32  ;;  %5385 = vrot.lane.b32.xlu0 %v9679_v56, %s12019_s12 }
 0x846   : > { %v10005_v32 = vrot.slane %v4049_v50, %v12012_v16  ;;  %4985 = vrot.lane.b32.xlu1 %v9696_v42, %s12015_s30 }
 0x847   : > { %v10009_v30 = vpop.permute.xlu0 %4209 }
 0x848   : > { %12084 = vst [vmem:[#allocation77_spill] sm:$0xff] %v10005_v32  ;;  %12085 = vst [vmem:[#allocation78_spill] sm:$0xff] %v10009_v30  ;;  %v10011_v34 = vpop.permute.xlu1 %4219  ;;  %v4097_v54 = vcombine.low %v10002_v14, %v10005_v32 }
 0x849   : > { %12086 = vst [vmem:[#allocation79_spill] sm:$0xff] %v10011_v34  ;;  %4973 = vrot.lane.b32.xlu0 %v9647_v21, %s12015_s30  ;;  %v10029_v34 = vrot.slane %v4065_v29, %v12013_v39 }
 0x84a   : > { %4993 = vrot.lane.b32.xlu1 %v9698_v52, %s12015_s30  ;;  %v10022_v41 = vrot.slane %v4097_v54, %v12013_v39 }
 0x84b   : > { %v10024_v50 = vpop.permute.xlu0 %4213  ;;  %12090 = vst [vmem:[#allocation83_spill] sm:$0xff] %v10029_v34  ;;  %v12101_v34 = vld [vmem:[#allocation32_spill] sm:$0xff] }
 0x84c   : > { %12087 = vst [vmem:[#allocation80_spill] sm:$0xff] %v10022_v41  ;;  %12088 = vst [vmem:[#allocation81_spill] sm:$0xff] %v10024_v50  ;;  %v10026_v30 = vpop.permute.xlu1 %4223 }
 0x84d   : > { %12089 = vst [vmem:[#allocation82_spill] sm:$0xff] %v10026_v30  ;;  %4981 = vrot.lane.b32.xlu0 %v9649_v49, %s12015_s30 }
 0x84e   : > { %5001 = vrot.lane.b32.xlu1 %v9667_v38, %s12015_s30 }
 0x84f   : > { %v10037_v44 = vpop.permute.xlu0 %4217 }
 0x850   : > { %12091 = vst [vmem:[#allocation84_spill] sm:$0xff] %v10037_v44  ;;  %v10039_v54 = vpop.permute.xlu1 %4227 }
 0x851   : > { %12092 = vst [vmem:[#allocation85_spill] sm:$0xff] %v10039_v54  ;;  %4989 = vrot.lane.b32.xlu0 %v9722_v40, %s12015_s30 }
 0x852   : > { %4975 = vrot.lane.b32.xlu1 %v9474_v5, %s12015_s30 }
 0x853   : > { %v10045_v29 = vpop.permute.xlu0 %4221 }
 0x854   : > { %12093 = vst [vmem:[#allocation86_spill] sm:$0xff] %v10045_v29  ;;  %v10047_v30 = vpop.permute.xlu1 %6521 }
 0x855   : > { %12094 = vst [vmem:[#allocation87_spill] sm:$0xff] %v10047_v30  ;;  %4997 = vrot.lane.b32.xlu0 %v9702_v51, %s12015_s30 }
 0x856   : > { %4983 = vrot.lane.b32.xlu1 %v9452_v62, %s12015_s30 }
 0x857   : > { %v10053_v61 = vpop.permute.xlu0 %4225 }
 0x858   : > { %12095 = vst [vmem:[#allocation88_spill] sm:$0xff] %v10053_v61  ;;  %v10055_v44 = vpop.permute.xlu1 %6529 }
 0x859   : > { %12096 = vst [vmem:[#allocation89_spill] sm:$0xff] %v10055_v44  ;;  %4971 = vrot.lane.b32.xlu0 %v9639_v48, %s12015_s30  ;;  %v6715_v20 = vcombine.low %v10047_v30, %v10055_v44  ;;  %v12111_v30 = vcombine.high %v9486_v31, %v9525_v26  ;;  %v12117_v26 = vld [vmem:[#allocation36_spill] sm:$0xff] }
 0x85a   : > { %4991 = vrot.lane.b32.xlu1 %v9686_v27, %s12015_s30  ;;  %v12131_v48 = vld [vmem:[#allocation56_spill] sm:$0xff] }
 0x85b   : > { %v10061_v54 = vpop.permute.xlu0 %6517  ;;  %v10113_v44 = vrot.slane %v6715_v20, %v12012_v16 }
 0x85c   : > { %12097 = vst [vmem:[#allocation90_spill] sm:$0xff] %v10061_v54  ;;  %v10063_v50 = vpop.permute.xlu1 %6537 }
 0x85d   : > { %12098 = vst [vmem:[#allocation91_spill] sm:$0xff] %v10063_v50  ;;  %4979 = vrot.lane.b32.xlu0 %v9631_v59, %s12015_s30  ;;  %12112 = vst [vmem:[#allocation98_spill] sm:$0xff] %v10113_v44 }
 0x85e   : > { %4999 = vrot.lane.b32.xlu1 %v9651_v18, %s12015_s30 }
 0x85f   : > { %v10069_v29 = vpop.permute.xlu0 %6525 }
 0x860   : > { %12099 = vst [vmem:[#allocation92_spill] sm:$0xff] %v10069_v29  ;;  %v10071_v61 = vpop.permute.xlu1 %6545  ;;  %v6699_v32 = vcombine.low %v10061_v54, %v10069_v29  ;;  %v12108_v29 = vld [vmem:[#allocation15_spill] sm:$0xff] }
 0x861   : > { %12100 = vst [vmem:[#allocation93_spill] sm:$0xff] %v10071_v61  ;;  %4987 = vrot.lane.b32.xlu0 %v9677_v47, %s12015_s30  ;;  %v6747_v19 = vcombine.low %v10063_v50, %v10071_v61 }
 0x862   : > { %4233 = vrot.lane.b32.xlu1 %v12101_v34, %s12019_s12  ;;  %v10098_v54 = vrot.slane %v6699_v32, %v12012_v16 }
 0x863   : > { %v10077_v41 = vpop.permute.xlu0 %6533  ;;  %v10103_v50 = vrot.slane %v6747_v19, %v12012_v16 }
 0x864   : > { %12102 = vst [vmem:[#allocation32_spill] sm:$0xff] %v10077_v41  ;;  %v10079_v14 = vpop.permute.xlu1 %6519  ;;  %12107 = vst [vmem:[#allocation96_spill] sm:$0xff] %v10098_v54  ;;  %v6763_v19 = vcombine.low %v10098_v54, %v10113_v44  ;;  %v12125_v44 = vld [vmem:[#allocation22_spill] sm:$0xff] }
 0x865   : > { %12103 = vst [vmem:[#allocation94_spill] sm:$0xff] %v10079_v14  ;;  %4995 = vrot.lane.b32.xlu0 %v9679_v56, %s12015_s30  ;;  %12109 = vst [vmem:[#allocation15_spill] sm:$0xff] %v10103_v50 }
 0x866   : > { %4231 = vrot.lane.b32.xlu1 %v12104_v9, %s12019_s12  ;;  %v10139_v54 = vrot.slane %v6763_v19, %v12013_v39 }
 0x867   : > { %v10091_v34 = vpop.permute.xlu0 %6541 }
 0x868   : > { %12105 = vst [vmem:[#allocation34_spill] sm:$0xff] %v10091_v34  ;;  %v10093_v6 = vpop.permute.xlu1 %6527  ;;  %v6731_v0 = vcombine.low %v10077_v41, %v10091_v34  ;;  %v12116_v41 = vld [vmem:[#allocation35_spill] sm:$0xff] }
 0x869   : > { %12106 = vst [vmem:[#allocation95_spill] sm:$0xff] %v10093_v6  ;;  %4229 = vrot.lane.b32.xlu0 %v12108_v29, %s12019_s12  ;;  %v6579_v47 = vcombine.low %v10079_v14, %v10093_v6  ;;  %v12138_v14 = vld [vmem:[#allocation38_spill] sm:$0xff]  ;;  %v12139_v6 = vld [vmem:[#allocation9_spill] sm:$0xff] }
 0x86a   : > { %v10106_v9 = vrot.slane %v6731_v0, %v12012_v16  ;;  %3732 = vrot.lane.b32.xlu1 %v12111_v30, %s12011_s22  ;;  %v12115_v0 = vld [vmem:[#allocation39_spill] sm:$0xff]  ;;  %v12118_v30 = vcombine.high %v12116_v41, %v12117_v26 }
 0x86b   : > { %v10115_v61 = vpop.permute.xlu0 %6515 }
 0x86c   : > { %12110 = vst [vmem:[#allocation97_spill] sm:$0xff] %v10106_v9  ;;  %12113 = vst [vmem:[#allocation99_spill] sm:$0xff] %v10115_v61  ;;  %v10117_v32 = vpop.permute.xlu1 %6535  ;;  %v6795_v29 = vcombine.low %v10106_v9, %v10103_v50  ;;  %v12122_v9 = vld [vmem:[#allocation12_spill] sm:$0xff] }
 0x86d   : > { %12114 = vst [vmem:[#allocation100_spill] sm:$0xff] %v10117_v32  ;;  %4237 = vrot.lane.b32.xlu0 %v12115_v0, %s12019_s12  ;;  %12123 = vst [vmem:[#allocation12_spill] sm:$0xff] %v10139_v54  ;;  %v12124_v0 = vld [vmem:[#allocation19_spill] sm:$0xff] }
 0x86e   : > { %3740 = vrot.lane.b32.xlu1 %v12118_v30, %s12010_s16  ;;  %v10134_v34 = vrot.slane %v6795_v29, %v12013_v39  ;;  %v12126_v50 = vcombine.high %v12124_v0, %v12125_v44 }
 0x86f   : > { %v10129_v20 = vpop.permute.xlu0 %6523 }
 0x870   : > { %12119 = vst [vmem:[#allocation39_spill] sm:$0xff] %v10129_v20  ;;  %v10131_v31 = vpop.permute.xlu1 %6543  ;;  %12121 = vst [vmem:[#allocation36_spill] sm:$0xff] %v10134_v34  ;;  %v6563_v29 = vcombine.low %v10115_v61, %v10129_v20 }
 0x871   : > { %12120 = vst [vmem:[#allocation35_spill] sm:$0xff] %v10131_v31  ;;  %4235 = vrot.lane.b32.xlu0 %v12122_v9, %s12019_s12  ;;  %v12129_v9 = vcombine.low %v12116_v41, %v12117_v26  ;;  %v6611_v19 = vcombine.low %v10117_v32, %v10131_v31  ;;  %v12136_v41 = vcombine.low %v12124_v0, %v12125_v44 }
 0x872   : > { %3748 = vrot.lane.b32.xlu1 %v12126_v50, %s12008_s14  ;;  %v12130_v50 = vld [vmem:[#allocation37_spill] sm:$0xff]  ;;  %v10172_v26 = vrot.slane %v6563_v29, %v12012_v16  ;;  %v12140_v32 = vcombine.low %v12138_v14, %v12139_v6  ;;  %v10189_v31 = vrot.slane %v6579_v47, %v12012_v16 }
 0x873   : > { %v10145_v23 = vpop.permute.xlu0 %6531  ;;  %v12132_v59 = vcombine.high %v12130_v50, %v12131_v48 }
 0x874   : > { %12127 = vst [vmem:[#allocation19_spill] sm:$0xff] %v10145_v23  ;;  %v10147_v30 = vpop.permute.xlu1 %6131  ;;  %12135 = vst [vmem:[#allocation101_spill] sm:$0xff] %v10172_v26  ;;  %v6627_v0 = vcombine.low %v10172_v26, %v10189_v31  ;;  %v12148_v26 = vcombine.high %v9585_v22, %v9601_v24 }
 0x875   : > { %12128 = vst [vmem:[#allocation22_spill] sm:$0xff] %v10147_v30  ;;  %3736 = vrot.lane.b32.xlu0 %v12129_v9, %s12009_s15  ;;  %12141 = vst [vmem:[#allocation38_spill] sm:$0xff] %v10189_v31 }
 0x876   : > { %3756 = vrot.lane.b32.xlu1 %v12132_v59, %s7283_s29  ;;  %v10179_v59 = vrot.slane %v6611_v19, %v12012_v16  ;;  %v12145_v19 = vld [vmem:[#allocation40_spill] sm:$0xff] }
 0x877   : > { %v10165_v46 = vpop.permute.xlu0 %6539 }
 0x878   : > { %12133 = vst [vmem:[#allocation37_spill] sm:$0xff] %v10165_v46  ;;  %v10167_v54 = vpop.permute.xlu1 %6139  ;;  %v6595_v61 = vcombine.low %v10145_v23, %v10165_v46 }
 0x879   : > { %12134 = vst [vmem:[#allocation56_spill] sm:$0xff] %v10167_v54  ;;  %3744 = vrot.lane.b32.xlu0 %v12136_v41, %s12007_s13 }
 0x87a   : > { %v10182_v9 = vrot.slane %v6595_v61, %v12012_v16  ;;  %3764 = vrot.lane.b32.xlu1 %v12140_v32, %s12009_s15  ;;  %v12143_v61 = vcombine.low %v12130_v50, %v12131_v48  ;;  %v12144_v32 = vld [vmem:[#allocation41_spill] sm:$0xff]  ;;  %v10219_v48 = vrot.slane %v6627_v0, %v12013_v39  ;;  %v12150_v50 = vld [vmem:[#allocation58_spill] sm:$0xff]  ;;  %v5784_v0 = vcombine.high %v9663_v57, %v9665_v17 }
 0x87b   : > { %v10191_v29 = vpop.permute.xlu0 %6127  ;;  %v12146_v47 = vcombine.low %v12144_v32, %v12145_v19  ;;  %v6325_v57 = vcombine.low %v10147_v30, %v10167_v54 }
 0x87c   : > { %12137 = vst [vmem:[#allocation102_spill] sm:$0xff] %v10182_v9  ;;  %v10193_v20 = vpop.permute.xlu1 %6147  ;;  %v6659_v44 = vcombine.low %v10182_v9, %v10179_v59  ;;  %12149 = vst [vmem:[#allocation40_spill] sm:$0xff] %v10219_v48  ;;  %v5816_v9 = vcombine.high %v9682_v55, %v9645_v36  ;;  %v5832_v36 = vcombine.high %v9777_v35, %v9747_v4 }
 0x87d   : > { %12142 = vst [vmem:[#allocation9_spill] sm:$0xff] %v10193_v20  ;;  %3752 = vrot.lane.b32.xlu0 %v12143_v61, %s7282_s25  ;;  %v12151_v61 = vld [vmem:[#allocation76_spill] sm:$0xff]  ;;  %v12157_v35 = vcombine.high %v12144_v32, %v12145_v19  ;;  %v10286_v22 = vrot.slane %v6325_v57, %v12012_v16 }
 0x87e   : > { %3772 = vrot.lane.b32.xlu1 %v12146_v47, %s12007_s13  ;;  %v10212_v46 = vrot.slane %v6659_v44, %v12013_v39  ;;  %v12152_v31 = vcombine.low %v12150_v50, %v12151_v61  ;;  %v5800_v44 = vcombine.high %v9708_v11, %v9684_v28  ;;  %v5768_v28 = vcombine.high %v9643_v25, %v9637_v33 }
 0x87f   : > { %v10207_v41 = vpop.permute.xlu0 %6135  ;;  %v5830_v11 = vrot.slane %v5816_v9, %v12012_v16  ;;  %v12158_v9 = vld [vmem:[#allocation26_spill] sm:$0xff] }
 0x880   : > { %v10209_v23 = vpop.permute.xlu1 %6155  ;;  %12147 = vst [vmem:[#allocation41_spill] sm:$0xff] %v10212_v46  ;;  %v6309_v24 = vcombine.low %v10191_v29, %v10207_v41 }
 0x881   : > { %3760 = vrot.lane.b32.xlu0 %v12148_v26, %s12011_s22  ;;  %v5864_v26 = vcombine.high %v9761_v43, %v9735_v13  ;;  %v6357_v55 = vcombine.low %v10193_v20, %v10209_v23  ;;  %v12155_v13 = vcombine.high %v9615_v58, %v9618_v8 }
 0x882   : > { %3780 = vrot.lane.b32.xlu1 %v12152_v31, %s7282_s25  ;;  %v12154_v31 = vcombine.high %v12138_v14, %v12139_v6  ;;  %v10267_v4 = vrot.slane %v6309_v24, %v12012_v16  ;;  %v5846_v24 = vrot.slane %v5832_v36, %v12013_v39  ;;  %v12162_v36 = vcombine.high %v12150_v50, %v12151_v61 }
 0x883   : > { %v10225_v47 = vpop.permute.xlu0 %6143  ;;  %v5878_v14 = vrot.slane %v5864_v26, %v12013_v39  ;;  %v10275_v25 = vrot.slane %v6357_v55, %v12012_v16  ;;  %v12159_v26 = vld [vmem:[#allocation75_spill] sm:$0xff] }
 0x884   : > { %v10227_v34 = vpop.permute.xlu1 %6129  ;;  %v6373_v8 = vcombine.low %v10267_v4, %v10286_v22 }
 0x885   : > { %12153 = vst [vmem:[#allocation58_spill] sm:$0xff] %v10227_v34  ;;  %3768 = vrot.lane.b32.xlu0 %v12154_v31, %s12010_s16  ;;  %v5798_v31 = vrot.slane %v5784_v0, %v12012_v16  ;;  %v12160_v0 = vcombine.low %v12158_v9, %v12159_v26  ;;  %v5898_v54 = vcombine.high %v5846_v24, %v5878_v14 }
 0x886   : > { %6068 = vrot.lane.b32.xlu1 %v12155_v13, %s12011_s22  ;;  %v5814_v13 = vrot.slane %v5800_v44, %v12012_v16  ;;  %v5782_v44 = vrot.slane %v5768_v28, %v12012_v16  ;;  %v5896_v28 = vcombine.high %v9815_v37, %v9802_v12  ;;  %v10314_v50 = vrot.slane %v6373_v8, %v12013_v39 }
 0x887   : > { %v10255_v17 = vpop.permute.xlu0 %6151  ;;  %v12166_v8 = vcombine.high %v12158_v9, %v12159_v26  ;;  %v4798_v37 = vcombine.high %v9698_v52, %v9667_v38  ;;  %v4782_v52 = vcombine.high %v9722_v40, %v9702_v51  ;;  %v12177_v38 = vld [vmem:[#allocation61_spill] sm:$0xff]  ;;  %v4750_v40 = vcombine.high %v9647_v21, %v9649_v49 }
 0x888   : > { %v10257_v43 = vpop.permute.xlu1 %6137  ;;  %v6341_v6 = vcombine.low %v10225_v47, %v10255_v17  ;;  %v5847_v57 = vcombine.low %v5782_v44, %v5798_v31  ;;  %12164 = vst [vmem:[#allocation103_spill] sm:$0xff] %v10314_v50 }
 0x889   : > { %12156 = vst [vmem:[#allocation76_spill] sm:$0xff] %v10257_v43  ;;  %3776 = vrot.lane.b32.xlu0 %v12157_v35, %s12008_s14  ;;  %v5879_v35 = vcombine.low %v5814_v13, %v5830_v11  ;;  %v4812_v51 = vrot.slane %v4798_v37, %v12012_v16  ;;  %v4662_v37 = vcombine.high %v9686_v27, %v9651_v18  ;;  %v12188_v27 = vld [vmem:[#allocation59_spill] sm:$0xff] }
 0x88a   : > { %v10278_v33 = vrot.slane %v6341_v6, %v12012_v16  ;;  %6072 = vrot.lane.b32.xlu1 %v12160_v0, %s12009_s15  ;;  %v5897_v6 = vcombine.low %v5846_v24, %v5878_v14  ;;  %v5855_v61 = vrot.slane %v5847_v57, %v12013_v39  ;;  %v5880_v14 = vcombine.high %v5814_v13, %v5830_v11 }
 0x88b   : > { %v10288_v32 = vpop.permute.xlu0 %6125  ;;  %v5887_v20 = vrot.slane %v5879_v35, %v12013_v39  ;;  %v5848_v35 = vcombine.high %v5782_v44, %v5798_v31  ;;  %v6189_v57 = vcombine.low %v10227_v34, %v10257_v43  ;;  %v4742_v34 = vcombine.high %v9818_v63, %v9805_v15  ;;  %v12183_v63 = vld [vmem:[#allocation48_spill] sm:$0xff] }
 0x88c   : > { %v10290_v19 = vpop.permute.xlu1 %6145  ;;  %v6405_v55 = vcombine.low %v10278_v33, %v10275_v25  ;;  %v5894_v9 = vrot.slane %v5880_v14, %v12013_v39  ;;  %v4710_v43 = vcombine.high %v9764_v45, %v9738_v53  ;;  %v4646_v18 = vcombine.high %v12188_v27, %v9679_v56  ;;  %v12191_v56 = vld [vmem:[#allocation27_spill] sm:$0xff] }
 0x88d   : > { %12161 = vst [vmem:[#allocation26_spill] sm:$0xff] %v10290_v19  ;;  %3784 = vrot.lane.b32.xlu0 %v12162_v36, %s7283_s29  ;;  %v5899_v12 = vcombine.low %v5855_v61, %v5887_v20  ;;  %v4676_v27 = vrot.slane %v4662_v37, %v12012_v16 }
 0x88e   : > { %6044 = vrot.lane.b32.xlu1 %v5897_v6, %s12009_s15  ;;  %v10309_v30 = vrot.slane %v6405_v55, %v12013_v39  ;;  %v5900_v55 = vcombine.high %v5855_v61, %v5887_v20  ;;  %v5862_v20 = vrot.slane %v5848_v35, %v12013_v39  ;;  %v10358_v61 = vrot.slane %v6189_v57, %v12012_v16 }
 0x88f   : > { %v10302_v0 = vpop.permute.xlu0 %6133 }
 0x890   : > { %v10304_v58 = vpop.permute.xlu1 %6153  ;;  %12163 = vst [vmem:[#allocation75_spill] sm:$0xff] %v10309_v30  ;;  %v6173_v24 = vcombine.low %v10288_v32, %v10302_v0 }
 0x891   : > { %6040 = vrot.lane.b32.xlu0 %v5896_v28, %s12011_s22 }
 0x892   : > { %6048 = vrot.lane.b32.xlu1 %v5898_v54, %s12010_s16  ;;  %v6221_v54 = vcombine.low %v10290_v19, %v10304_v58  ;;  %v10343_v26 = vrot.slane %v6173_v24, %v12012_v16 }
 0x893   : > { %v10318_v6 = vpop.permute.xlu0 %6141 }
 0x894   : > { %v10320_v36 = vpop.permute.xlu1 %5367  ;;  %v10350_v31 = vrot.slane %v6221_v54, %v12012_v16  ;;  %v6237_v54 = vcombine.low %v10343_v26, %v10358_v61 }
 0x895   : > { %12165 = vst [vmem:[#allocation104_spill] sm:$0xff] %v10320_v36  ;;  %6076 = vrot.lane.b32.xlu0 %v12166_v8, %s12010_s16 }
 0x896   : > { %6052 = vrot.lane.b32.xlu1 %v5899_v12, %s12007_s13  ;;  %v12168_v12 = vcombine.low %v9729_v10, %v9732_v2 }
 0x897   : > { %v10335_v28 = vpop.permute.xlu0 %6149 }
 0x898   : > { %v10337_v11 = vpop.permute.xlu1 %5375  ;;  %v6205_v13 = vcombine.low %v10318_v6, %v10335_v28 }
 0x899   : > { %12167 = vst [vmem:[#allocation105_spill] sm:$0xff] %v10337_v11  ;;  %6080 = vrot.lane.b32.xlu0 %v12168_v12, %s12007_s13  ;;  %v5901_v12 = vcombine.low %v5862_v20, %v5894_v9 }
 0x89a   : > { %v10353_v44 = vrot.slane %v6205_v13, %v12012_v16  ;;  %6056 = vrot.lane.b32.xlu1 %v5900_v55, %s12008_s14  ;;  %v12171_v55 = vcombine.high %v9729_v10, %v9732_v2  ;;  %v12175_v2 = vcombine.low %v9741_v7, %v9744_v3  ;;  %v10391_v10 = vrot.slane %v6237_v54, %v12013_v39  ;;  %v12182_v54 = vld [vmem:[#allocation60_spill] sm:$0xff] }
 0x89b   : > { %v10360_v14 = vpop.permute.xlu0 %5363  ;;  %v4846_v19 = vcombine.high %v12183_v63, %v12182_v54  ;;  %v4796_v54 = vrot.slane %v4782_v52, %v12012_v16 }
 0x89c   : > { %12169 = vst [vmem:[#allocation106_spill] sm:$0xff] %v10360_v14  ;;  %v10362_v24 = vpop.permute.xlu1 %5383  ;;  %v6269_v8 = vcombine.low %v10353_v44, %v10350_v31  ;;  %12176 = vst [vmem:[#allocation111_spill] sm:$0xff] %v10391_v10 }
 0x89d   : > { %12170 = vst [vmem:[#allocation107_spill] sm:$0xff] %v10362_v24  ;;  %6084 = vrot.lane.b32.xlu0 %v12171_v55, %s12008_s14  ;;  %v12180_v55 = vld [vmem:[#allocation53_spill] sm:$0xff] }
 0x89e   : > { %6060 = vrot.lane.b32.xlu1 %v5901_v12, %s7282_s25  ;;  %v10378_v13 = vrot.slane %v6269_v8, %v12013_v39  ;;  %v4766_v8 = vcombine.high %v9720_v1, %v9696_v42  ;;  %v4678_v12 = vcombine.high %v12177_v38, %v9673_v60  ;;  %v5902_v42 = vcombine.high %v5862_v20, %v5894_v9  ;;  %v12184_v38 = vld [vmem:[#allocation24_spill] sm:$0xff] }
 0x89f   : > { %v10373_v35 = vpop.permute.xlu0 %5371  ;;  %v4724_v60 = vrot.slane %v4710_v43, %v12013_v39  ;;  %v4860_v20 = vrot.slane %v4846_v19, %v12013_v39  ;;  %v12189_v19 = vcombine.high %v9741_v7, %v9744_v3 }
 0x8a0   : > { %12172 = vst [vmem:[#allocation108_spill] sm:$0xff] %v10373_v35  ;;  %v10375_v57 = vpop.permute.xlu1 %5391  ;;  %12174 = vst [vmem:[#allocation110_spill] sm:$0xff] %v10378_v13  ;;  %v4780_v63 = vrot.slane %v4766_v8, %v12012_v16  ;;  %v4692_v21 = vrot.slane %v4678_v12, %v12013_v39  ;;  %v4764_v8 = vrot.slane %v4750_v40, %v12012_v16 }
 0x8a1   : > { %12173 = vst [vmem:[#allocation109_spill] sm:$0xff] %v10375_v57  ;;  %6088 = vrot.lane.b32.xlu0 %v12175_v2, %s7282_s25  ;;  %v12181_v2 = vld [vmem:[#allocation50_spill] sm:$0xff]  ;;  %v5593_v49 = vcombine.low %v10362_v24, %v10375_v57  ;;  %v4630_v12 = vcombine.high %v9474_v5, %v9452_v62  ;;  %v12190_v5 = vld [vmem:[#allocation52_spill] sm:$0xff] }
 0x8a2   : > { %4886 = vrot.lane.b32.xlu1 %v4742_v34, %s12011_s22  ;;  %v4878_v15 = vcombine.high %v12181_v2, %v12180_v55  ;;  %v5545_v34 = vcombine.low %v10360_v14, %v10373_v35  ;;  %v12185_v55 = vld [vmem:[#allocation62_spill] sm:$0xff]  ;;  %v4829_v62 = vcombine.low %v4764_v8, %v4780_v63 }
 0x8a3   : > { %v10400_v53 = vpop.permute.xlu0 %5379  ;;  %v4814_v2 = vcombine.high %v12185_v55, %v12184_v38  ;;  %v4743_v55 = vcombine.low %v4692_v21, %v4724_v60  ;;  %v10450_v1 = vrot.slane %v5593_v49, %v12012_v16  ;;  %v4644_v24 = vrot.slane %v4630_v12, %v12012_v16 }
 0x8a4   : > { %12178 = vst [vmem:[#allocation61_spill] sm:$0xff] %v10400_v53  ;;  %v10402_v45 = vpop.permute.xlu1 %5365  ;;  %v10442_v38 = vrot.slane %v5545_v34, %v12012_v16  ;;  %v4614_v34 = vcombine.high %v12191_v56, %v12190_v5  ;;  %v4660_v5 = vrot.slane %v4646_v18, %v12012_v16  ;;  %v4830_v56 = vcombine.high %v4764_v8, %v4780_v63 }
 0x8a5   : > { %12179 = vst [vmem:[#allocation112_spill] sm:$0xff] %v10402_v45  ;;  %4914 = vrot.lane.b32.xlu0 %v4878_v15, %s12011_s22  ;;  %v5561_v15 = vcombine.low %v10320_v36, %v10337_v11  ;;  %v4828_v40 = vrot.slane %v4814_v2, %v12013_v39 }
 0x8a6   : > { %6064 = vrot.lane.b32.xlu1 %v5902_v42, %s7283_s29  ;;  %v4861_v42 = vcombine.low %v4796_v54, %v4812_v51  ;;  %v4628_v57 = vrot.slane %v4614_v34, %v12012_v16 }
 0x8a7   : > { %v10429_v43 = vpop.permute.xlu0 %5387  ;;  %v10460_v11 = vrot.slane %v5561_v15, %v12012_v16  ;;  %v4879_v2 = vcombine.low %v4828_v40, %v4860_v20  ;;  %v4837_v15 = vrot.slane %v4829_v62, %v12013_v39 }
 0x8a8   : > { %12186 = vst [vmem:[#allocation60_spill] sm:$0xff] %v10429_v43  ;;  %v10431_v9 = vpop.permute.xlu1 %5373  ;;  %v5577_v52 = vcombine.low %v10400_v53, %v10429_v43  ;;  %v4694_v8 = vcombine.high %v4628_v57, %v4644_v24 }
 0x8a9   : > { %12187 = vst [vmem:[#allocation48_spill] sm:$0xff] %v10431_v9  ;;  %6092 = vrot.lane.b32.xlu0 %v12189_v19, %s7283_s29  ;;  %v4862_v19 = vcombine.high %v4796_v54, %v4812_v51  ;;  %v5609_v37 = vcombine.low %v10442_v38, %v10460_v11  ;;  %v4725_v51 = vcombine.low %v4660_v5, %v4676_v27 }
 0x8aa   : > { %v10453_v36 = vrot.slane %v5577_v52, %v12012_v16  ;;  %4890 = vrot.lane.b32.xlu1 %v4743_v55, %s12009_s15  ;;  %v4744_v52 = vcombine.high %v4692_v21, %v4724_v60  ;;  %v4869_v55 = vrot.slane %v4861_v42, %v12013_v39  ;;  %v4880_v21 = vcombine.high %v4828_v40, %v4860_v20 }
 0x8ab   : > { %v10462_v7 = vpop.permute.xlu0 %5361  ;;  %v4876_v18 = vrot.slane %v4862_v19, %v12013_v39  ;;  %v10487_v63 = vrot.slane %v5609_v37, %v12013_v39  ;;  %v4844_v20 = vrot.slane %v4830_v56, %v12013_v39  ;;  %v4733_v34 = vrot.slane %v4725_v51, %v12013_v39  ;;  %v12199_v56 = vld [vmem:[#allocation66_spill] sm:$0xff] }
 0x8ac   : > { %12192 = vst [vmem:[#allocation24_spill] sm:$0xff] %v10462_v7  ;;  %v10464_v3 = vpop.permute.xlu1 %5381  ;;  %v5641_v49 = vcombine.low %v10453_v36, %v10450_v1  ;;  %v4882_v12 = vcombine.high %v4837_v15, %v4869_v55  ;;  %v4881_v62 = vcombine.low %v4837_v15, %v4869_v55  ;;  %v4708_v55 = vrot.slane %v4694_v8, %v12013_v39  ;;  %v12198_v15 = vld [vmem:[#allocation23_spill] sm:$0xff] }
 0x8ad   : > { %12193 = vst [vmem:[#allocation62_spill] sm:$0xff] %v10464_v3  ;;  %4918 = vrot.lane.b32.xlu0 %v4879_v2, %s12009_s15  ;;  %v4726_v2 = vcombine.high %v4660_v5, %v4676_v27  ;;  %v4883_v19 = vcombine.low %v4844_v20, %v4876_v18  ;;  %v5425_v51 = vcombine.low %v10402_v45, %v10431_v9  ;;  %v12205_v8 = vld [vmem:[#allocation63_spill] sm:$0xff] }
 0x8ae   : > { %4894 = vrot.lane.b32.xlu1 %v4744_v52, %s12010_s16  ;;  %v10480_v54 = vrot.slane %v5641_v49, %v12013_v39  ;;  %v4693_v52 = vcombine.low %v4628_v57, %v4644_v24 }
 0x8af   : > { %v10477_v60 = vpop.permute.xlu0 %5369  ;;  %v4740_v5 = vrot.slane %v4726_v2, %v12013_v39  ;;  %v10538_v14 = vrot.slane %v5425_v51, %v12012_v16  ;;  %v4884_v51 = vcombine.high %v4844_v20, %v4876_v18 }
 0x8b0   : > { %12194 = vst [vmem:[#allocation59_spill] sm:$0xff] %v10477_v60  ;;  %v10482_v42 = vpop.permute.xlu1 %5389  ;;  %v5409_v37 = vcombine.low %v10462_v7, %v10477_v60  ;;  %v4701_v24 = vrot.slane %v4693_v52, %v12013_v39  ;;  %v12204_v7 = vld [vmem:[#allocation67_spill] sm:$0xff] }
 0x8b1   : > { %12195 = vst [vmem:[#allocation52_spill] sm:$0xff] %v10482_v42  ;;  %4922 = vrot.lane.b32.xlu0 %v4880_v21, %s12010_s16  ;;  %v5457_v57 = vcombine.low %v10464_v3, %v10482_v42  ;;  %v3914_v21 = vcombine.high %v12199_v56, %v12198_v15  ;;  %v4747_v49 = vcombine.low %v4708_v55, %v4740_v5  ;;  %v12202_v3 = vld [vmem:[#allocation33_spill] sm:$0xff]  ;;  %v12203_v42 = vld [vmem:[#allocation20_spill] sm:$0xff]  ;;  %12213 = vst [vmem:[#allocation63_spill] sm:$0xff] %v10538_v14 }
 0x8b2   : > { %4930 = vrot.lane.b32.xlu1 %v4882_v12, %s12008_s14  ;;  %v4745_v2 = vcombine.low %v4701_v24, %v4733_v34  ;;  %v3898_v60 = vcombine.high %v12205_v8, %v12204_v7  ;;  %v10522_v15 = vrot.slane %v5409_v37, %v12012_v16  ;;  %v4746_v9 = vcombine.high %v4701_v24, %v4733_v34  ;;  %v12211_v7 = vld [vmem:[#allocation43_spill] sm:$0xff]  ;;  %v12212_v8 = vld [vmem:[#allocation73_spill] sm:$0xff]  ;;  %v12216_v24 = vld [vmem:[#allocation70_spill] sm:$0xff] }
 0x8b3   : > { %v10491_v40 = vpop.permute.xlu0 %5377  ;;  %v10526_v56 = vrot.slane %v5457_v57, %v12012_v16  ;;  %v3962_v37 = vcombine.high %v12212_v8, %v12211_v7 }
 0x8b4   : > { %12196 = vst [vmem:[#allocation27_spill] sm:$0xff] %v10491_v40  ;;  %v10496_v27 = vpop.permute.xlu1 %4977  ;;  %12206 = vst [vmem:[#allocation33_spill] sm:$0xff] %v10522_v15  ;;  %v5473_v7 = vcombine.low %v10522_v15, %v10538_v14 }
 0x8b5   : > { %12197 = vst [vmem:[#allocation113_spill] sm:$0xff] %v10496_v27  ;;  %4926 = vrot.lane.b32.xlu0 %v4881_v62, %s12007_s13  ;;  %12207 = vst [vmem:[#allocation20_spill] sm:$0xff] %v10526_v56 }
 0x8b6   : > { %4934 = vrot.lane.b32.xlu1 %v4883_v19, %s7282_s25  ;;  %v3882_v19 = vcombine.high %v12203_v42, %v12202_v3  ;;  %v3928_v42 = vrot.slane %v3914_v21, %v12012_v16  ;;  %v3912_v21 = vrot.slane %v3898_v60, %v12012_v16  ;;  %v12220_v60 = vld [vmem:[#allocation69_spill] sm:$0xff]  ;;  %v10568_v18 = vrot.slane %v5473_v7, %v12013_v39  ;;  %v12226_v7 = vld [vmem:[#allocation68_spill] sm:$0xff] }
 0x8b7   : > { %v10511_v12 = vpop.permute.xlu0 %5385 }
 0x8b8   : > { %12200 = vst [vmem:[#allocation23_spill] sm:$0xff] %v10511_v12  ;;  %v5441_v62 = vcombine.low %v10491_v40, %v10511_v12  ;;  %v10515_v52 = vpop.permute.xlu1 %4985  ;;  %v12209_v40 = vld [vmem:[#allocation64_spill] sm:$0xff]  ;;  %v12210_v12 = vld [vmem:[#allocation42_spill] sm:$0xff]  ;;  %v3896_v34 = vrot.slane %v3882_v19, %v12012_v16  ;;  %v3977_v35 = vcombine.low %v3912_v21, %v3928_v42  ;;  %v3978_v20 = vcombine.high %v3912_v21, %v3928_v42  ;;  %v12228_v21 = vld [vmem:[#allocation49_spill] sm:$0xff] }
 0x8b9   : > { %12201 = vst [vmem:[#allocation66_spill] sm:$0xff] %v10515_v52  ;;  %4898 = vrot.lane.b32.xlu0 %v4745_v2, %s12007_s13  ;;  %v3866_v3 = vcombine.high %v12210_v12, %v12209_v40  ;;  %v12217_v40 = vld [vmem:[#allocation30_spill] sm:$0xff] }
 0x8ba   : > { %v10529_v45 = vrot.slane %v5441_v62, %v12012_v16  ;;  %4906 = vrot.lane.b32.xlu1 %v4747_v49, %s7282_s25  ;;  %v4748_v49 = vcombine.high %v4708_v55, %v4740_v5  ;;  %v3930_v12 = vcombine.high %v12217_v40, %v12216_v24  ;;  %v3976_v5 = vrot.slane %v3962_v37, %v12013_v39  ;;  %v12221_v24 = vld [vmem:[#allocation71_spill] sm:$0xff] }
 0x8bb   : > { %v10540_v2 = vpop.permute.xlu0 %4973  ;;  %v3880_v8 = vrot.slane %v3866_v3, %v12012_v16  ;;  %v3994_v40 = vcombine.high %v12221_v24, %v12220_v60  ;;  %v12223_v60 = vld [vmem:[#allocation17_spill] sm:$0xff]  ;;  %v12224_v24 = vld [vmem:[#allocation47_spill] sm:$0xff] }
 0x8bc   : > { %12208 = vst [vmem:[#allocation67_spill] sm:$0xff] %v10529_v45  ;;  %12214 = vst [vmem:[#allocation64_spill] sm:$0xff] %v10540_v2  ;;  %v5505_v57 = vcombine.low %v10529_v45, %v10526_v56  ;;  %v10544_v62 = vpop.permute.xlu1 %4993  ;;  %v4050_v15 = vcombine.high %v12224_v24, %v12223_v60  ;;  %v12227_v45 = vld [vmem:[#allocation25_spill] sm:$0xff] }
 0x8bd   : > { %12215 = vst [vmem:[#allocation42_spill] sm:$0xff] %v10544_v62  ;;  %4902 = vrot.lane.b32.xlu0 %v4746_v9, %s12008_s14  ;;  %v3945_v43 = vcombine.low %v3880_v8, %v3896_v34  ;;  %v3944_v9 = vrot.slane %v3930_v12, %v12013_v39  ;;  %v3946_v14 = vcombine.high %v3880_v8, %v3896_v34  ;;  %v12231_v34 = vld [vmem:[#allocation21_spill] sm:$0xff] }
 0x8be   : > { %4910 = vrot.lane.b32.xlu1 %v4748_v49, %s7283_s29  ;;  %v10559_v55 = vrot.slane %v5505_v57, %v12013_v39  ;;  %v3985_v57 = vrot.slane %v3977_v35, %v12013_v39  ;;  %v4018_v56 = vcombine.high %v12227_v45, %v12226_v7  ;;  %v5171_v45 = vcombine.low %v10496_v27, %v10515_v52  ;;  %v12233_v7 = vld [vmem:[#allocation77_spill] sm:$0xff]  ;;  %v12237_v27 = vld [vmem:[#allocation44_spill] sm:$0xff] }
 0x8bf   : > { %v10555_v53 = vpop.permute.xlu0 %4981  ;;  %v3995_v37 = vcombine.low %v3944_v9, %v3976_v5  ;;  %v3996_v12 = vcombine.high %v3944_v9, %v3976_v5  ;;  %v3953_v35 = vrot.slane %v3945_v43, %v12013_v39  ;;  %v12230_v5 = vld [vmem:[#allocation65_spill] sm:$0xff]  ;;  %v4064_v43 = vrot.slane %v4050_v15, %v12012_v16  ;;  %v12238_v15 = vld [vmem:[#allocation7_spill] sm:$0xff] }
 0x8c0   : > { %12218 = vst [vmem:[#allocation43_spill] sm:$0xff] %v10555_v53  ;;  %v10561_v19 = vpop.permute.xlu1 %5001  ;;  %v5155_v42 = vcombine.low %v10540_v2, %v10555_v53  ;;  %v4002_v8 = vcombine.high %v12231_v34, %v12230_v5  ;;  %v4032_v5 = vrot.slane %v4018_v56, %v12012_v16  ;;  %v4066_v52 = vcombine.high %v12238_v15, %v12237_v27  ;;  %v12245_v15 = vld [vmem:[#allocation80_spill] sm:$0xff]  ;;  %v12246_v53 = vld [vmem:[#allocation83_spill] sm:$0xff] }
 0x8c1   : > { %12219 = vst [vmem:[#allocation73_spill] sm:$0xff] %v10561_v19  ;;  %4938 = vrot.lane.b32.xlu0 %v4884_v51, %s7283_s29  ;;  %v5203_v60 = vcombine.low %v10544_v62, %v10561_v19  ;;  %v3997_v9 = vcombine.low %v3953_v35, %v3985_v57  ;;  %v3998_v19 = vcombine.high %v3953_v35, %v3985_v57 }
 0x8c2   : > { %4138 = vrot.lane.b32.xlu1 %v3994_v40, %s12011_s22  ;;  %v12229_v40 = vld [vmem:[#allocation57_spill] sm:$0xff]  ;;  %v10607_v34 = vrot.slane %v5155_v42, %v12012_v16  ;;  %v4016_v56 = vrot.slane %v4002_v8, %v12012_v16  ;;  %v10623_v57 = vrot.slane %v5171_v45, %v12012_v16  ;;  %v4080_v45 = vrot.slane %v4066_v52, %v12013_v39 }
 0x8c3   : > { %v10571_v3 = vpop.permute.xlu0 %4989  ;;  %v4034_v49 = vcombine.high %v12229_v40, %v12228_v21  ;;  %v12234_v21 = vld [vmem:[#allocation8_spill] sm:$0xff] }
 0x8c4   : > { %12222 = vst [vmem:[#allocation70_spill] sm:$0xff] %v10571_v3  ;;  %v10578_v51 = vpop.permute.xlu1 %4975  ;;  %v4098_v40 = vcombine.high %v12234_v21, %v12233_v7  ;;  %12236 = vst [vmem:[#allocation68_spill] sm:$0xff] %v10607_v34  ;;  %v10615_v21 = vrot.slane %v5203_v60, %v12012_v16  ;;  %v4081_v8 = vcombine.low %v4016_v56, %v4032_v5 }
 0x8c5   : > { %12225 = vst [vmem:[#allocation30_spill] sm:$0xff] %v10578_v51  ;;  %4142 = vrot.lane.b32.xlu0 %v3995_v37, %s12009_s15  ;;  %v3992_v37 = vrot.slane %v3978_v20, %v12013_v39  ;;  %v3960_v20 = vrot.slane %v3946_v14, %v12013_v39  ;;  %v4048_v7 = vrot.slane %v4034_v49, %v12012_v16  ;;  %12241 = vst [vmem:[#allocation57_spill] sm:$0xff] %v10623_v57 }
 0x8c6   : > { %4146 = vrot.lane.b32.xlu1 %v3996_v12, %s12010_s16  ;;  %12239 = vst [vmem:[#allocation25_spill] sm:$0xff] %v10615_v21  ;;  %v4082_v52 = vcombine.high %v4016_v56, %v4032_v5 }
 0x8c7   : > { %v10595_v24 = vpop.permute.xlu0 %4997  ;;  %v3999_v14 = vcombine.low %v3960_v20, %v3992_v37  ;;  %v4113_v35 = vcombine.low %v4048_v7, %v4064_v43  ;;  %v4000_v60 = vcombine.high %v3960_v20, %v3992_v37  ;;  %v4114_v37 = vcombine.high %v4048_v7, %v4064_v43 }
 0x8c8   : > { %12232 = vst [vmem:[#allocation17_spill] sm:$0xff] %v10595_v24  ;;  %v5187_v62 = vcombine.low %v10571_v3, %v10595_v24  ;;  %v10603_v12 = vpop.permute.xlu1 %4983  ;;  %v4130_v3 = vcombine.high %v12246_v53, %v12245_v15 }
 0x8c9   : > { %12235 = vst [vmem:[#allocation47_spill] sm:$0xff] %v10603_v12  ;;  %4150 = vrot.lane.b32.xlu0 %v3997_v9, %s12007_s13  ;;  %v5035_v5 = vcombine.low %v10578_v51, %v10603_v12 }
 0x8ca   : > { %v10618_v2 = vrot.slane %v5187_v62, %v12012_v16  ;;  %4154 = vrot.lane.b32.xlu1 %v3998_v19, %s12008_s14  ;;  %v4112_v62 = vrot.slane %v4098_v40, %v12013_v39  ;;  %v5219_v19 = vcombine.low %v10607_v34, %v10623_v57  ;;  %v4121_v34 = vrot.slane %v4113_v35, %v12013_v39  ;;  %v12261_v57 = vld [vmem:[#allocation86_spill] sm:$0xff] }
 0x8cb   : > { %v10625_v42 = vpop.permute.xlu0 %4971 }
 0x8cc   : > { %12240 = vst [vmem:[#allocation49_spill] sm:$0xff] %v10618_v2  ;;  %12242 = vst [vmem:[#allocation65_spill] sm:$0xff] %v10625_v42  ;;  %v5251_v27 = vcombine.low %v10618_v2, %v10615_v21  ;;  %v10629_v49 = vpop.permute.xlu1 %4991  ;;  %v4131_v20 = vcombine.low %v4080_v45, %v4112_v62  ;;  %v10690_v2 = vrot.slane %v5035_v5, %v12012_v16  ;;  %v12271_v5 = vld [vmem:[#allocation102_spill] sm:$0xff] }
 0x8cd   : > { %12243 = vst [vmem:[#allocation21_spill] sm:$0xff] %v10629_v49  ;;  %4158 = vrot.lane.b32.xlu0 %v3999_v14, %s7282_s25  ;;  %v10649_v14 = vrot.slane %v5219_v19, %v12013_v39  ;;  %v4128_v19 = vrot.slane %v4114_v37, %v12013_v39 }
 0x8ce   : > { %4162 = vrot.lane.b32.xlu1 %v4000_v60, %s7283_s29  ;;  %v10642_v24 = vrot.slane %v5251_v27, %v12013_v39  ;;  %v4089_v60 = vrot.slane %v4081_v8, %v12013_v39  ;;  %v4132_v27 = vcombine.high %v4080_v45, %v4112_v62  ;;  %v4096_v62 = vrot.slane %v4082_v52, %v12013_v39  ;;  %v12252_v8 = vld [vmem:[#allocation15_spill] sm:$0xff]  ;;  %v12253_v45 = vld [vmem:[#allocation97_spill] sm:$0xff]  ;;  %v12260_v52 = vld [vmem:[#allocation74_spill] sm:$0xff] }
 0x8cf   : > { %v10637_v9 = vpop.permute.xlu0 %4979  ;;  %12249 = vst [vmem:[#allocation7_spill] sm:$0xff] %v10649_v14 }
 0x8d0   : > { %12244 = vst [vmem:[#allocation77_spill] sm:$0xff] %v10637_v9  ;;  %12247 = vst [vmem:[#allocation8_spill] sm:$0xff] %v10642_v24  ;;  %v10644_v40 = vpop.permute.xlu1 %4999  ;;  %v5019_v7 = vcombine.low %v10625_v42, %v10637_v9  ;;  %v4134_v53 = vcombine.high %v4089_v60, %v4121_v34  ;;  %v4135_v12 = vcombine.low %v4096_v62, %v4128_v19  ;;  %v12259_v42 = vld [vmem:[#allocation79_spill] sm:$0xff] }
 0x8d1   : > { %12248 = vst [vmem:[#allocation44_spill] sm:$0xff] %v10644_v40  ;;  %4166 = vrot.lane.b32.xlu0 %v4130_v3, %s12011_s22  ;;  %v4133_v3 = vcombine.low %v4089_v60, %v4121_v34  ;;  %v5067_v56 = vcombine.low %v10629_v49, %v10644_v40  ;;  %v12257_v49 = vld [vmem:[#allocation46_spill] sm:$0xff]  ;;  %v12258_v40 = vld [vmem:[#allocation72_spill] sm:$0xff]  ;;  %v4271_v9 = vcombine.low %v12260_v52, %v12259_v42 }
 0x8d2   : > { %4170 = vrot.lane.b32.xlu1 %v4131_v20, %s12009_s15  ;;  %v6796_v20 = vcombine.high %v12253_v45, %v12252_v8  ;;  %v10674_v37 = vrot.slane %v5019_v7, %v12012_v16  ;;  %v12262_v8 = vld [vmem:[#allocation81_spill] sm:$0xff]  ;;  %v12263_v34 = vld [vmem:[#allocation98_spill] sm:$0xff]  ;;  %v12264_v60 = vld [vmem:[#allocation96_spill] sm:$0xff] }
 0x8d3   : > { %v10653_v15 = vpop.permute.xlu0 %4987  ;;  %v4407_v45 = vcombine.low %v12262_v8, %v12261_v57  ;;  %v6764_v7 = vcombine.high %v12264_v60, %v12263_v34  ;;  %12265 = vst [vmem:[#allocation98_spill] sm:$0xff] %v10690_v2  ;;  %v12268_v52 = vld [vmem:[#allocation84_spill] sm:$0xff]  ;;  %v12269_v42 = vld [vmem:[#allocation78_spill] sm:$0xff]  ;;  %v6660_v34 = vcombine.high %v12271_v5, %v10179_v59 }
 0x8d4   : > { %12250 = vst [vmem:[#allocation114_spill] sm:$0xff] %v10653_v15  ;;  %v10659_v35 = vpop.permute.xlu1 %4233  ;;  %12255 = vst [vmem:[#allocation97_spill] sm:$0xff] %v10674_v37  ;;  %v10704_v8 = vrot.slane %v6796_v20, %v12013_v39  ;;  %v12274_v57 = vld [vmem:[#allocation12_spill] sm:$0xff]  ;;  %v12277_v59 = vld [vmem:[#allocation34_spill] sm:$0xff] }
 0x8d5   : > { %12251 = vst [vmem:[#allocation115_spill] sm:$0xff] %v10659_v35  ;;  %4174 = vrot.lane.b32.xlu0 %v4132_v27, %s12010_s16  ;;  %v12278_v20 = vld [vmem:[#allocation32_spill] sm:$0xff] }
 0x8d6   : > { %4178 = vrot.lane.b32.xlu1 %v4133_v3, %s12007_s13  ;;  %v4255_v3 = vcombine.low %v12258_v40, %v12257_v49  ;;  %v4391_v40 = vcombine.low %v12269_v42, %v12268_v52  ;;  %v6732_v5 = vcombine.high %v12278_v20, %v12277_v59  ;;  %v12284_v59 = vld [vmem:[#allocation90_spill] sm:$0xff] }
 0x8d7   : > { %v10671_v43 = vpop.permute.xlu0 %4995 }
 0x8d8   : > { %12254 = vst [vmem:[#allocation15_spill] sm:$0xff] %v10671_v43  ;;  %v5051_v27 = vcombine.low %v10653_v15, %v10671_v43  ;;  %v10678_v51 = vpop.permute.xlu1 %4231  ;;  %v10693_v15 = vrot.slane %v5067_v56, %v12012_v16  ;;  %v5083_v56 = vcombine.low %v10674_v37, %v10690_v2  ;;  %v10717_v52 = vrot.slane %v4255_v3, %v12012_v16  ;;  %v12279_v37 = vld [vmem:[#allocation38_spill] sm:$0xff]  ;;  %v12280_v2 = vld [vmem:[#allocation101_spill] sm:$0xff] }
 0x8d9   : > { %12256 = vst [vmem:[#allocation116_spill] sm:$0xff] %v10678_v51  ;;  %4182 = vrot.lane.b32.xlu0 %v4134_v53, %s12008_s14  ;;  %v4136_v53 = vcombine.high %v4096_v62, %v4128_v19  ;;  %v10720_v19 = vrot.slane %v4271_v9, %v12012_v16  ;;  %v10723_v62 = vrot.slane %v4407_v45, %v12012_v16 }
 0x8da   : > { %12266 = vst [vmem:[#allocation96_spill] sm:$0xff] %v10693_v15  ;;  %v10696_v43 = vrot.slane %v5051_v27, %v12012_v16  ;;  %4186 = vrot.lane.b32.xlu1 %v4135_v12, %s7282_s25  ;;  %v12273_v12 = vld [vmem:[#allocation36_spill] sm:$0xff]  ;;  %12275 = vst [vmem:[#allocation119_spill] sm:$0xff] %v10717_v52  ;;  %v6778_v3 = vrot.slane %v6764_v7, %v12013_v39  ;;  %v10738_v45 = vrot.slane %v4391_v40, %v12012_v16 }
 0x8db   : > { %v10701_v49 = vpop.permute.xlu0 %4229  ;;  %v6828_v42 = vcombine.high %v12274_v57, %v12273_v12  ;;  %12276 = vst [vmem:[#allocation120_spill] sm:$0xff] %v10720_v19  ;;  %v12283_v57 = vld [vmem:[#allocation92_spill] sm:$0xff]  ;;  %v10754_v40 = vrot.slane %v6660_v34, %v12013_v39 }
 0x8dc   : > { %12267 = vst [vmem:[#allocation117_spill] sm:$0xff] %v10696_v43  ;;  %12270 = vst [vmem:[#allocation118_spill] sm:$0xff] %v10701_v49  ;;  %v5115_v27 = vcombine.low %v10696_v43, %v10693_v15  ;;  %v10712_v60 = vpop.permute.xlu1 %3732  ;;  %v12281_v43 = vld [vmem:[#allocation88_spill] sm:$0xff]  ;;  %v6700_v20 = vcombine.high %v12284_v59, %v12283_v57  ;;  %v12286_v15 = vld [vmem:[#allocation91_spill] sm:$0xff]  ;;  %v10757_v57 = vrot.slane %v5083_v56, %v12013_v39 }
 0x8dd   : > { %12272 = vst [vmem:[#allocation102_spill] sm:$0xff] %v10712_v60  ;;  %4190 = vrot.lane.b32.xlu0 %v4136_v53, %s7283_s29  ;;  %v6628_v60 = vcombine.high %v12280_v2, %v12279_v37  ;;  %v4423_v12 = vcombine.low %v12281_v43, %v10659_v35  ;;  %v12285_v53 = vld [vmem:[#allocation93_spill] sm:$0xff]  ;;  %v6692_v37 = vcombine.high %v10219_v48, %v10212_v46  ;;  %v12290_v46 = vld [vmem:[#allocation87_spill] sm:$0xff] }
 0x8de   : > { %6864 = vrot.lane.b32.xlu1 %v6828_v42, %s12011_s22  ;;  %v10735_v9 = vrot.slane %v5115_v27, %v12013_v39  ;;  %v6748_v21 = vcombine.high %v12286_v15, %v12285_v53  ;;  %v6829_v27 = vcombine.low %v6778_v3, %v10704_v8  ;;  %12288 = vst [vmem:[#allocation38_spill] sm:$0xff] %v10757_v57  ;;  %v12289_v53 = vld [vmem:[#allocation89_spill] sm:$0xff] }
 0x8df   : > { %v10744_v2 = vpop.permute.xlu0 %4237  ;;  %v4319_v15 = vcombine.low %v10717_v52, %v10720_v19  ;;  %v4455_v59 = vcombine.low %v10738_v45, %v10723_v62  ;;  %v6716_v48 = vcombine.high %v12290_v46, %v12289_v53  ;;  %v10766_v43 = vrot.slane %v6732_v5, %v12012_v16  ;;  %v12291_v5 = vld [vmem:[#allocation82_spill] sm:$0xff] }
 0x8e0   : > { %12282 = vst [vmem:[#allocation34_spill] sm:$0xff] %v10735_v9  ;;  %v4439_v42 = vcombine.low %v10701_v49, %v10744_v2  ;;  %v10750_v7 = vpop.permute.xlu1 %3740  ;;  %v10770_v34 = vrot.slane %v4423_v12, %v12012_v16  ;;  %v6406_v46 = vcombine.high %v10278_v33, %v10275_v25  ;;  %v4287_v53 = vcombine.low %v12291_v5, %v10678_v51  ;;  %v12294_v5 = vld [vmem:[#allocation85_spill] sm:$0xff] }
 0x8e1   : > { %12287 = vst [vmem:[#allocation32_spill] sm:$0xff] %v10750_v7  ;;  %6836 = vrot.lane.b32.xlu0 %v6692_v37, %s12011_s22  ;;  %v6642_v7 = vrot.slane %v6628_v60, %v12013_v39  ;;  %v6438_v12 = vcombine.high %v10314_v50, %v10309_v30  ;;  %v6374_v33 = vcombine.high %v10267_v4, %v10286_v22  ;;  %v12295_v4 = vld [vmem:[#allocation37_spill] sm:$0xff]  ;;  %v12296_v50 = vld [vmem:[#allocation19_spill] sm:$0xff] }
 0x8e2   : > { %v10773_v56 = vrot.slane %v4439_v42, %v12012_v16  ;;  %6868 = vrot.lane.b32.xlu1 %v6829_v27, %s12009_s15  ;;  %v10788_v42 = vrot.slane %v6700_v20, %v12012_v16  ;;  %v10791_v27 = vrot.slane %v6748_v21, %v12012_v16  ;;  %v10804_v20 = vrot.slane %v4319_v15, %v12013_v39 }
 0x8e3   : > { %v10783_v37 = vpop.permute.xlu0 %4235  ;;  %v6693_v25 = vcombine.low %v6642_v7, %v10754_v40  ;;  %v10807_v21 = vrot.slane %v6716_v48, %v12012_v16  ;;  %v10814_v22 = vrot.slane %v4455_v59, %v12013_v39  ;;  %v6596_v19 = vcombine.high %v12296_v50, %v12295_v4 }
 0x8e4   : > { %12292 = vst [vmem:[#allocation101_spill] sm:$0xff] %v10783_v37  ;;  %v4487_v60 = vcombine.low %v10770_v34, %v10773_v56  ;;  %v10795_v52 = vpop.permute.xlu1 %3748  ;;  %v4303_v51 = vcombine.low %v12294_v5, %v10783_v37  ;;  %v6811_v30 = vcombine.low %v10766_v43, %v10791_v27  ;;  %v6420_v5 = vrot.slane %v6406_v46, %v12013_v39  ;;  %v12302_v37 = vld [vmem:[#allocation100_spill] sm:$0xff] }
 0x8e5   : > { %12293 = vst [vmem:[#allocation92_spill] sm:$0xff] %v10795_v52  ;;  %6474 = vrot.lane.b32.xlu0 %v6438_v12, %s12011_s22  ;;  %v6830_v52 = vcombine.high %v6778_v3, %v10704_v8  ;;  %v10819_v12 = vrot.slane %v4287_v53, %v12012_v16  ;;  %v6342_v8 = vcombine.high %v10225_v47, %v10255_v17  ;;  %v12300_v53 = vld [vmem:[#allocation99_spill] sm:$0xff] }
 0x8e6   : > { %6840 = vrot.lane.b32.xlu1 %v6693_v25, %s12009_s15  ;;  %v10822_v15 = vrot.slane %v4303_v51, %v12012_v16  ;;  %v6779_v25 = vcombine.low %v10788_v42, %v10807_v21  ;;  %v6302_v50 = vcombine.high %v10391_v10, %v10378_v13  ;;  %v10836_v59 = vrot.slane %v4487_v60, %v12013_v39  ;;  %v12299_v51 = vld [vmem:[#allocation39_spill] sm:$0xff]  ;;  %v12305_v13 = vld [vmem:[#allocation9_spill] sm:$0xff] }
 0x8e7   : > { %v10824_v48 = vpop.permute.xlu0 %3736  ;;  %v6564_v4 = vcombine.high %v12300_v53, %v12299_v51  ;;  %v6388_v47 = vrot.slane %v6374_v33, %v12013_v39  ;;  %v12303_v17 = vld [vmem:[#allocation95_spill] sm:$0xff]  ;;  %v6310_v60 = vcombine.high %v10191_v29, %v10207_v41  ;;  %v6358_v10 = vcombine.high %v12305_v13, %v10209_v23  ;;  %v12307_v29 = vld [vmem:[#allocation56_spill] sm:$0xff]  ;;  %v12308_v41 = vld [vmem:[#allocation22_spill] sm:$0xff] }
 0x8e8   : > { %12297 = vst [vmem:[#allocation90_spill] sm:$0xff] %v10824_v48  ;;  %v10831_v3 = vpop.permute.xlu1 %3756  ;;  %v12301_v48 = vld [vmem:[#allocation35_spill] sm:$0xff]  ;;  %v4351_v35 = vcombine.low %v10819_v12, %v10822_v15  ;;  %v6326_v53 = vcombine.high %v12308_v41, %v12307_v29  ;;  %v10867_v23 = vrot.slane %v6342_v8, %v12012_v16  ;;  %v6787_v8 = vrot.slane %v6779_v25, %v12013_v39 }
 0x8e9   : > { %12298 = vst [vmem:[#allocation93_spill] sm:$0xff] %v10831_v3  ;;  %v6612_v46 = vcombine.high %v12302_v37, %v12301_v48  ;;  %6872 = vrot.lane.b32.xlu0 %v6830_v52, %s12010_s16  ;;  %v12304_v3 = vld [vmem:[#allocation94_spill] sm:$0xff]  ;;  %v6819_v37 = vrot.slane %v6811_v30, %v12013_v39  ;;  %v10855_v48 = vrot.slane %v6596_v19, %v12012_v16 }
 0x8ea   : > { %v6580_v49 = vcombine.high %v12304_v3, %v12303_v17  ;;  %6446 = vrot.lane.b32.xlu1 %v6302_v50, %s12011_s22  ;;  %v6270_v52 = vcombine.high %v10353_v44, %v10350_v31  ;;  %v6439_v51 = vcombine.low %v6388_v47, %v6420_v5  ;;  %v10862_v3 = vrot.slane %v4351_v35, %v12013_v39 }
 0x8eb   : > { %v10859_v33 = vpop.permute.xlu0 %3744  ;;  %v6694_v30 = vcombine.high %v6642_v7, %v10754_v40  ;;  %v10875_v31 = vrot.slane %v6564_v4, %v12012_v16  ;;  %v10878_v44 = vrot.slane %v6612_v46, %v12012_v16  ;;  %v6238_v35 = vcombine.high %v10343_v26, %v10358_v61 }
 0x8ec   : > { %12306 = vst [vmem:[#allocation91_spill] sm:$0xff] %v10859_v33  ;;  %v10869_v13 = vpop.permute.xlu1 %3764  ;;  %v10885_v50 = vrot.slane %v6580_v49, %v12012_v16  ;;  %v10888_v7 = vrot.slane %v6310_v60, %v12012_v16  ;;  %v10891_v40 = vrot.slane %v6358_v10, %v12012_v16  ;;  %v6831_v26 = vcombine.low %v6787_v8, %v6819_v37 }
 0x8ed   : > { %12309 = vst [vmem:[#allocation89_spill] sm:$0xff] %v10869_v13  ;;  %6478 = vrot.lane.b32.xlu0 %v6439_v51, %s12009_s15  ;;  %v6675_v4 = vcombine.low %v10855_v48, %v10878_v44  ;;  %v6284_v61 = vrot.slane %v6270_v52, %v12013_v39  ;;  %v10902_v25 = vrot.slane %v6326_v53, %v12012_v16 }
 0x8ee   : > { %6844 = vrot.lane.b32.xlu1 %v6694_v30, %s12010_s16  ;;  %v6421_v10 = vcombine.low %v10867_v23, %v10891_v40  ;;  %v6206_v17 = vcombine.high %v10318_v6, %v10335_v28  ;;  %v6440_v51 = vcombine.high %v6388_v47, %v6420_v5  ;;  %v6643_v29 = vcombine.low %v10875_v31, %v10885_v50  ;;  %v12312_v30 = vld [vmem:[#allocation26_spill] sm:$0xff] }
 0x8ef   : > { %v10896_v46 = vpop.permute.xlu0 %3752  ;;  %v6252_v52 = vrot.slane %v6238_v35, %v12013_v39  ;;  %v6389_v41 = vcombine.low %v10888_v7, %v10902_v25  ;;  %v6174_v53 = vcombine.high %v10288_v32, %v10302_v0  ;;  %v6222_v49 = vcombine.high %v12312_v30, %v10304_v58  ;;  %v12314_v35 = vld [vmem:[#allocation76_spill] sm:$0xff] }
 0x8f0   : > { %12310 = vst [vmem:[#allocation87_spill] sm:$0xff] %v10896_v46  ;;  %v10908_v60 = vpop.permute.xlu1 %3772  ;;  %v6812_v6 = vcombine.high %v10766_v43, %v10791_v27  ;;  %v6683_v47 = vrot.slane %v6675_v4, %v12013_v39  ;;  %v10929_v46 = vrot.slane %v6206_v17, %v12012_v16  ;;  %v6832_v0 = vcombine.high %v6787_v8, %v6819_v37 }
 0x8f1   : > { %12311 = vst [vmem:[#allocation37_spill] sm:$0xff] %v10908_v60  ;;  %6876 = vrot.lane.b32.xlu0 %v6831_v26, %s12007_s13  ;;  %v6303_v5 = vcombine.low %v6252_v52, %v6284_v61  ;;  %v12315_v26 = vld [vmem:[#allocation58_spill] sm:$0xff]  ;;  %v6429_v58 = vrot.slane %v6421_v10, %v12013_v39  ;;  %v6651_v43 = vrot.slane %v6643_v29, %v12013_v39 }
 0x8f2   : > { %6482 = vrot.lane.b32.xlu1 %v6440_v51, %s12010_s16  ;;  %v6190_v19 = vcombine.high %v12315_v26, %v12314_v35  ;;  %v6780_v27 = vcombine.high %v10788_v42, %v10807_v21  ;;  %v10939_v4 = vrot.slane %v6174_v53, %v12012_v16  ;;  %v10942_v51 = vrot.slane %v6222_v49, %v12012_v16 }
 0x8f3   : > { %v10923_v28 = vpop.permute.xlu0 %3760  ;;  %v6397_v17 = vrot.slane %v6389_v41, %v12013_v39  ;;  %v6695_v8 = vcombine.low %v6651_v43, %v6683_v47  ;;  %v6826_v53 = vrot.slane %v6812_v6, %v12013_v39 }
 0x8f4   : > { %12313 = vst [vmem:[#allocation19_spill] sm:$0xff] %v10923_v28  ;;  %v10931_v32 = vpop.permute.xlu1 %3780  ;;  %v10949_v10 = vrot.slane %v6190_v19, %v12012_v16  ;;  %v6285_v29 = vcombine.low %v10929_v46, %v10942_v51  ;;  %v6794_v41 = vrot.slane %v6780_v27, %v12013_v39  ;;  %v6304_v19 = vcombine.high %v6252_v52, %v6284_v61 }
 0x8f5   : > { %12316 = vst [vmem:[#allocation39_spill] sm:$0xff] %v10931_v32  ;;  %6450 = vrot.lane.b32.xlu0 %v6303_v5, %s12009_s15  ;;  %v6441_v21 = vcombine.low %v6397_v17, %v6429_v58  ;;  %v6676_v5 = vcombine.high %v10855_v48, %v10878_v44  ;;  %v6696_v61 = vcombine.high %v6651_v43, %v6683_v47 }
 0x8f6   : > { %6880 = vrot.lane.b32.xlu1 %v6832_v0, %s12008_s14  ;;  %v6253_v49 = vcombine.low %v10939_v4, %v10949_v10  ;;  %v6833_v26 = vcombine.low %v6794_v41, %v6826_v53  ;;  %v6293_v6 = vrot.slane %v6285_v29, %v12013_v39  ;;  %v6644_v0 = vcombine.high %v10875_v31, %v10885_v50 }
 0x8f7   : > { %v10946_v37 = vpop.permute.xlu0 %3768  ;;  %v6690_v48 = vrot.slane %v6676_v5, %v12013_v39  ;;  %v5674_v31 = vcombine.high %v10487_v63, %v10480_v54  ;;  %v5642_v47 = vcombine.high %v10453_v36, %v10450_v1  ;;  %v6834_v36 = vcombine.high %v6794_v41, %v6826_v53  ;;  %v12326_v53 = vld [vmem:[#allocation33_spill] sm:$0xff] }
 0x8f8   : > { %12317 = vst [vmem:[#allocation99_spill] sm:$0xff] %v10946_v37  ;;  %v10953_v42 = vpop.permute.xlu1 %6068  ;;  %v6261_v27 = vrot.slane %v6253_v49, %v12013_v39  ;;  %v6658_v44 = vrot.slane %v6644_v0, %v12013_v39  ;;  %v6442_v49 = vcombine.high %v6397_v17, %v6429_v58  ;;  %v5610_v0 = vcombine.high %v10442_v38, %v10460_v11  ;;  %v12320_v58 = vld [vmem:[#allocation20_spill] sm:$0xff]  ;;  %v12321_v17 = vld [vmem:[#allocation67_spill] sm:$0xff] }
 0x8f9   : > { %6848 = vrot.lane.b32.xlu0 %v6695_v8, %s12007_s13  ;;  %v5656_v1 = vrot.slane %v5642_v47, %v12013_v39  ;;  %v6390_v11 = vcombine.high %v10888_v7, %v10902_v25  ;;  %v12322_v38 = vld [vmem:[#allocation55_spill] sm:$0xff]  ;;  %v6286_v7 = vcombine.high %v10929_v46, %v10942_v51 }
 0x8fa   : > { %6486 = vrot.lane.b32.xlu1 %v6441_v21, %s12007_s13  ;;  %v6305_v21 = vcombine.low %v6261_v27, %v6293_v6 }
 0x8fb   : > { %v10961_v30 = vpop.permute.xlu0 %3776 }
 0x8fc   : > { %12318 = vst [vmem:[#allocation35_spill] sm:$0xff] %v10961_v30  ;;  %v10965_v35 = vpop.permute.xlu1 %6072  ;;  %v12351_v30 = vld [vmem:[#allocation53_spill] sm:$0xff] }
 0x8fd   : > { %6454 = vrot.lane.b32.xlu0 %v6304_v19, %s12010_s16  ;;  %v6697_v19 = vcombine.low %v6658_v44, %v6690_v48 }
 0x8fe   : > { %6884 = vrot.lane.b32.xlu1 %v6833_v26, %s7282_s25  ;;  %v5538_v26 = vcombine.high %v10568_v18, %v10559_v55 }
 0x8ff   : > { %v10973_v8 = vpop.permute.xlu0 %3784 }
 0x900   : > { %12319 = vst [vmem:[#allocation100_spill] sm:$0xff] %v10973_v8  ;;  %v6045_v52 = vpop.permute.xlu1 %6044  ;;  %v6306_v8 = vcombine.high %v6261_v27, %v6293_v6 }
 0x901   : > { %6852 = vrot.lane.b32.xlu0 %v6696_v61, %s12008_s14  ;;  %v6422_v61 = vcombine.high %v10867_v23, %v10891_v40  ;;  %v5624_v23 = vrot.slane %v5610_v0, %v12013_v39  ;;  %v12325_v40 = vld [vmem:[#allocation63_spill] sm:$0xff] }
 0x902   : > { %6458 = vrot.lane.b32.xlu1 %v6305_v21, %s12007_s13  ;;  %v5474_v41 = vcombine.high %v12326_v53, %v12325_v40  ;;  %v12329_v53 = vld [vmem:[#allocation108_spill] sm:$0xff] }
 0x903   : > { %v6041_v29 = vpop.permute.xlu0 %6040  ;;  %v5675_v6 = vcombine.low %v5624_v23, %v5656_v1  ;;  %v11014_v27 = vrot.slane %v6422_v61, %v12013_v39 }
 0x904   : > { %v6049_v50 = vpop.permute.xlu1 %6048  ;;  %v5488_v61 = vrot.slane %v5474_v41, %v12013_v39  ;;  %v12330_v41 = vld [vmem:[#allocation106_spill] sm:$0xff] }
 0x905   : > { %5710 = vrot.lane.b32.xlu0 %v5674_v31, %s12011_s22  ;;  %v5506_v31 = vcombine.high %v12321_v17, %v12320_v58  ;;  %v11034_v58 = vrot.slane %v6286_v7, %v12013_v39  ;;  %v12328_v17 = vld [vmem:[#allocation61_spill] sm:$0xff] }
 0x906   : > { %6856 = vrot.lane.b32.xlu1 %v6697_v19, %s7282_s25  ;;  %v12331_v7 = vld [vmem:[#allocation109_spill] sm:$0xff] }
 0x907   : > { %v10985_v43 = vpop.permute.xlu0 %6076  ;;  %v11020_v0 = vrot.slane %v5506_v31, %v12013_v39 }
 0x908   : > { %v6053_v5 = vpop.permute.xlu1 %6052 }
 0x909   : > { %6490 = vrot.lane.b32.xlu0 %v6442_v49, %s12008_s14  ;;  %v12323_v49 = vld [vmem:[#allocation10_spill] sm:$0xff]  ;;  %v5540_v37 = vcombine.high %v5488_v61, %v11020_v0 }
 0x90a   : > { %5682 = vrot.lane.b32.xlu1 %v5538_v26, %s12011_s22  ;;  %v12324_v32 = vcombine.low %v12322_v38, %v12323_v49  ;;  %v5284_v49 = vcombine.high %v10649_v14, %v10642_v24  ;;  %v12372_v14 = vld [vmem:[#allocation30_spill] sm:$0xff] }
 0x90b   : > { %v10995_v21 = vpop.permute.xlu0 %6080 }
 0x90c   : > { %v6057_v19 = vpop.permute.xlu1 %6056  ;;  %v6095_v26 = vsel %vm991_vm5, %v12324_v32, %v6041_v29  ;;  %v6698_v29 = vcombine.high %v6658_v44, %v6690_v48  ;;  %v5539_v44 = vcombine.low %v5488_v61, %v11020_v0  ;;  %v12357_v0 = vld [vmem:[#allocation17_spill] sm:$0xff]  ;;  %v12358_v61 = vld [vmem:[#allocation70_spill] sm:$0xff] }
 0x90d   : > { %6888 = vrot.lane.b32.xlu0 %v6834_v36, %s7283_s29  ;;  %v6096_v25 = vsel %vm993_vm6, %v6095_v26, %v6045_v52  ;;  %v6254_v36 = vcombine.high %v10939_v4, %v10949_v10 }
 0x90e   : > { %6462 = vrot.lane.b32.xlu1 %v6306_v8, %s12008_s14  ;;  %v6404_v8 = vrot.slane %v6390_v11, %v12013_v39  ;;  %v6097_v46 = vsel %vm995_vm7, %v6096_v25, %v6049_v50  ;;  %v12327_v50 = vld [vmem:[#allocation60_spill] sm:$0xff]  ;;  %v12332_v25 = vld [vmem:[#allocation107_spill] sm:$0xff] }
 0x90f   : > { %v11011_v47 = vpop.permute.xlu0 %6084  ;;  %v6098_v4 = vsel %vm997_vm8, %v6097_v46, %v6053_v5  ;;  %v11040_v10 = vrot.slane %v6254_v36, %v12013_v39  ;;  %v5578_v31 = vcombine.high %v12328_v17, %v12327_v50  ;;  %v12333_v36 = vld [vmem:[#allocation105_spill] sm:$0xff]  ;;  %v12334_v46 = vld [vmem:[#allocation104_spill] sm:$0xff] }
 0x910   : > { %v6061_v32 = vpop.permute.xlu1 %6060  ;;  %v6443_v52 = vcombine.low %v6404_v8, %v11014_v27  ;;  %v6099_v11 = vsel %vm999_vm9, %v6098_v4, %v6057_v19  ;;  %v12336_v4 = vld [vmem:[#allocation49_spill] sm:$0xff] }
 0x911   : > { %5714 = vrot.lane.b32.xlu0 %v5675_v6, %s12009_s15  ;;  %v6100_v26 = vsel %vm1001_vm10, %v6099_v11, %v6061_v32  ;;  %v6307_v5 = vcombine.low %v11040_v10, %v11034_v58  ;;  %v5546_v6 = vcombine.high %v12330_v41, %v12329_v53  ;;  %v11062_v32 = vrot.slane %v5578_v31, %v12012_v16  ;;  %v12337_v53 = vld [vmem:[#allocation23_spill] sm:$0xff] }
 0x912   : > { %6860 = vrot.lane.b32.xlu1 %v6698_v29, %s7283_s29  ;;  %v5594_v29 = vcombine.high %v12332_v25, %v12331_v7  ;;  %v5676_v11 = vcombine.high %v5624_v23, %v5656_v1  ;;  %v12338_v41 = vld [vmem:[#allocation27_spill] sm:$0xff]  ;;  %v12339_v7 = vld [vmem:[#allocation45_spill] sm:$0xff]  ;;  %v12343_v1 = vld [vmem:[#allocation68_spill] sm:$0xff] }
 0x913   : > { %v11029_v51 = vpop.permute.xlu0 %6088  ;;  %v11077_v31 = vrot.slane %v5546_v6, %v12012_v16 }
 0x914   : > { %v4887_v48 = vpop.permute.xlu1 %4886 }
 0x915   : > { %6494 = vrot.lane.b32.xlu0 %v6443_v52, %s7282_s25  ;;  %v5562_v52 = vcombine.high %v12334_v46, %v12333_v36  ;;  %v11080_v46 = vrot.slane %v5594_v29, %v12012_v16  ;;  %v6444_v29 = vcombine.high %v6404_v8, %v11014_v27 }
 0x916   : > { %5686 = vrot.lane.b32.xlu1 %v5539_v44, %s12009_s15  ;;  %v12335_v44 = vld [vmem:[#allocation25_spill] sm:$0xff] }
 0x917   : > { %v4915_v38 = vpop.permute.xlu0 %4914  ;;  %v5252_v50 = vcombine.high %v12336_v4, %v12335_v44  ;;  %v12342_v44 = vld [vmem:[#allocation57_spill] sm:$0xff] }
 0x918   : > { %v6065_v40 = vpop.permute.xlu1 %6064  ;;  %v5220_v23 = vcombine.high %v12343_v1, %v12342_v44  ;;  %v5657_v44 = vcombine.low %v11062_v32, %v11080_v46  ;;  %v12348_v1 = vld [vmem:[#allocation48_spill] sm:$0xff] }
 0x919   : > { %5320 = vrot.lane.b32.xlu0 %v5284_v49, %s12011_s22  ;;  %v11056_v19 = vsel %vm1003_vm11, %v6100_v26, %v6065_v40  ;;  %v5442_v49 = vcombine.high %v12338_v41, %v12337_v53  ;;  %v12340_v26 = vld [vmem:[#allocation13_spill] sm:$0xff]  ;;  %v11087_v53 = vrot.slane %v5562_v52, %v12012_v16  ;;  %v12345_v41 = vld [vmem:[#allocation24_spill] sm:$0xff] }
 0x91a   : > { %6466 = vrot.lane.b32.xlu1 %v6307_v5, %s7282_s25  ;;  %v12341_v40 = vcombine.low %v12339_v7, %v12340_v26  ;;  %v5148_v5 = vcombine.high %v10757_v57, %v10735_v9  ;;  %v12346_v26 = vld [vmem:[#allocation52_spill] sm:$0xff] }
 0x91b   : > { %v11066_v17 = vpop.permute.xlu0 %6092 }
 0x91c   : > { %v4941_v25 = vsel %vm991_vm5, %v12341_v40, %v4887_v48  ;;  %v4891_v36 = vpop.permute.xlu1 %4890  ;;  %v12344_v48 = vld [vmem:[#allocation59_spill] sm:$0xff]  ;;  %v12347_v40 = vld [vmem:[#allocation62_spill] sm:$0xff] }
 0x91d   : > { %v4942_v4 = vsel %vm993_vm6, %v4941_v25, %v4891_v36  ;;  %5718 = vrot.lane.b32.xlu0 %v5676_v11, %s12010_s16  ;;  %v5410_v7 = vcombine.high %v12345_v41, %v12344_v48  ;;  %v5458_v6 = vcombine.high %v12347_v40, %v12346_v26  ;;  %v12349_v25 = vld [vmem:[#allocation112_spill] sm:$0xff]  ;;  %v12350_v11 = vld [vmem:[#allocation50_spill] sm:$0xff]  ;;  %v5266_v48 = vrot.slane %v5252_v50, %v12013_v39  ;;  %v12354_v26 = vld [vmem:[#allocation117_spill] sm:$0xff] }
 0x91e   : > { %5292 = vrot.lane.b32.xlu1 %v5148_v5, %s12011_s22  ;;  %v5426_v36 = vcombine.high %v12349_v25, %v12348_v1  ;;  %v12352_v52 = vcombine.low %v12350_v11, %v12351_v30  ;;  %v11105_v41 = vrot.slane %v5442_v49, %v12012_v16  ;;  %v12353_v5 = vld [vmem:[#allocation96_spill] sm:$0xff]  ;;  %v5625_v1 = vcombine.low %v11077_v31, %v11087_v53  ;;  %v12355_v25 = vld [vmem:[#allocation98_spill] sm:$0xff] }
 0x91f   : > { %v4919_v33 = vpop.permute.xlu0 %4918  ;;  %v5116_v27 = vcombine.high %v12354_v26, %v12353_v5  ;;  %v11117_v50 = vrot.slane %v5410_v7, %v12012_v16  ;;  %v11120_v49 = vrot.slane %v5458_v6, %v12012_v16  ;;  %v5188_v11 = vcombine.high %v12358_v61, %v12357_v0  ;;  %v12361_v0 = vld [vmem:[#allocation73_spill] sm:$0xff]  ;;  %v12362_v61 = vld [vmem:[#allocation42_spill] sm:$0xff] }
 0x920   : > { %v4948_v60 = vsel %vm991_vm5, %v12352_v52, %v4915_v38  ;;  %v4895_v40 = vpop.permute.xlu1 %4894  ;;  %v5234_v38 = vrot.slane %v5220_v23, %v12013_v39  ;;  %v5665_v23 = vrot.slane %v5657_v44, %v12013_v39  ;;  %v11131_v7 = vrot.slane %v5426_v36, %v12012_v16  ;;  %v12363_v36 = vld [vmem:[#allocation66_spill] sm:$0xff] }
 0x921   : > { %v4949_v8 = vsel %vm993_vm6, %v4948_v60, %v4919_v33  ;;  %v4943_v30 = vsel %vm995_vm7, %v4942_v4, %v4895_v40  ;;  %6498 = vrot.lane.b32.xlu0 %v6444_v29, %s7283_s29  ;;  %v12356_v33 = vld [vmem:[#allocation97_spill] sm:$0xff]  ;;  %v6308_v29 = vcombine.high %v11040_v10, %v11034_v58  ;;  %v5521_v6 = vcombine.low %v11105_v41, %v11120_v49  ;;  %v12359_v40 = vld [vmem:[#allocation43_spill] sm:$0xff] }
 0x922   : > { %v5084_v60 = vcombine.high %v12356_v33, %v12355_v25  ;;  %5690 = vrot.lane.b32.xlu1 %v5540_v37, %s12010_s16  ;;  %v5285_v4 = vcombine.low %v5234_v38, %v5266_v48  ;;  %v5130_v37 = vrot.slane %v5116_v27, %v12013_v39  ;;  %v12360_v25 = vld [vmem:[#allocation64_spill] sm:$0xff]  ;;  %v5204_v13 = vcombine.high %v12362_v61, %v12361_v0  ;;  %v12365_v0 = vld [vmem:[#allocation15_spill] sm:$0xff]  ;;  %v12366_v61 = vld [vmem:[#allocation114_spill] sm:$0xff] }
 0x923   : > { %v4923_v52 = vpop.permute.xlu0 %4922  ;;  %v5156_v33 = vcombine.high %v12360_v25, %v12359_v40  ;;  %v5633_v58 = vrot.slane %v5625_v1, %v12013_v39  ;;  %v5489_v10 = vcombine.low %v11117_v50, %v11131_v7  ;;  %v5529_v57 = vrot.slane %v5521_v6, %v12013_v39 }
 0x924   : > { %v4950_v5 = vsel %vm995_vm7, %v4949_v8, %v4923_v52  ;;  %v4931_v26 = vpop.permute.xlu1 %4930  ;;  %v5098_v44 = vrot.slane %v5084_v60, %v12013_v39  ;;  %v12364_v8 = vld [vmem:[#allocation113_spill] sm:$0xff]  ;;  %v11150_v52 = vrot.slane %v5188_v11, %v12012_v16  ;;  %v11160_v60 = vrot.slane %v5204_v13, %v12012_v16 }
 0x925   : > { %5324 = vrot.lane.b32.xlu0 %v5285_v4, %s12009_s15  ;;  %v5172_v27 = vcombine.high %v12364_v8, %v12363_v36  ;;  %v5677_v25 = vcombine.low %v5633_v58, %v5665_v23  ;;  %v5052_v4 = vcombine.high %v12366_v61, %v12365_v0  ;;  %v12367_v36 = vld [vmem:[#allocation77_spill] sm:$0xff]  ;;  %v12369_v0 = vld [vmem:[#allocation44_spill] sm:$0xff]  ;;  %v5497_v6 = vrot.slane %v5489_v10, %v12013_v39 }
 0x926   : > { %6470 = vrot.lane.b32.xlu1 %v6308_v29, %s7283_s29  ;;  %v5149_v9 = vcombine.low %v5098_v44, %v5130_v37  ;;  %v11157_v29 = vrot.slane %v5156_v33, %v12012_v16  ;;  %v12368_v8 = vld [vmem:[#allocation65_spill] sm:$0xff]  ;;  %v5267_v13 = vcombine.low %v11150_v52, %v11160_v60 }
 0x927   : > { %v4927_v40 = vpop.permute.xlu0 %4926  ;;  %v5020_v24 = vcombine.high %v12368_v8, %v12367_v36  ;;  %v12370_v61 = vld [vmem:[#allocation21_spill] sm:$0xff]  ;;  %v11172_v33 = vrot.slane %v5172_v27, %v12012_v16  ;;  %v11179_v8 = vrot.slane %v5052_v4, %v12012_v16 }
 0x928   : > { %v4951_v1 = vsel %vm997_vm8, %v4950_v5, %v4927_v40  ;;  %v4935_v28 = vpop.permute.xlu1 %4934  ;;  %v5068_v5 = vcombine.high %v12370_v61, %v12369_v0  ;;  %v5275_v4 = vrot.slane %v5267_v13, %v12013_v39 }
 0x929   : > { %v4952_v11 = vsel %vm999_vm9, %v4951_v1, %v4931_v26  ;;  %5722 = vrot.lane.b32.xlu0 %v5677_v25, %s12007_s13  ;;  %v5286_v25 = vcombine.high %v5234_v38, %v5266_v48  ;;  %v12371_v1 = vld [vmem:[#allocation47_spill] sm:$0xff]  ;;  %v5235_v10 = vcombine.low %v11157_v29, %v11172_v33  ;;  %v11186_v27 = vrot.slane %v5020_v24, %v12012_v16 }
 0x92a   : > { %v4953_v40 = vsel %vm1001_vm10, %v4952_v11, %v4935_v28  ;;  %5296 = vrot.lane.b32.xlu1 %v5149_v9, %s12009_s15  ;;  %v5036_v36 = vcombine.high %v12372_v14, %v12371_v1  ;;  %v5541_v9 = vcombine.low %v5497_v6, %v5529_v57  ;;  %v11189_v48 = vrot.slane %v5068_v5, %v12012_v16 }
 0x92b   : > { %v4899_v26 = vpop.permute.xlu0 %4898  ;;  %v5658_v14 = vcombine.high %v11062_v32, %v11080_v46  ;;  %v5150_v5 = vcombine.high %v5098_v44, %v5130_v37  ;;  %v5243_v32 = vrot.slane %v5235_v10, %v12013_v39  ;;  %v5542_v44 = vcombine.high %v5497_v6, %v5529_v57 }
 0x92c   : > { %v4944_v28 = vsel %vm997_vm8, %v4943_v30, %v4899_v26  ;;  %v4907_v11 = vpop.permute.xlu1 %4906  ;;  %v5678_v30 = vcombine.high %v5633_v58, %v5665_v23  ;;  %v11196_v0 = vrot.slane %v5036_v36, %v12012_v16  ;;  %v5131_v61 = vcombine.low %v11179_v8, %v11189_v48 }
 0x92d   : > { %5328 = vrot.lane.b32.xlu0 %v5286_v25, %s12010_s16  ;;  %v5626_v25 = vcombine.high %v11077_v31, %v11087_v53  ;;  %v5287_v1 = vcombine.low %v5243_v32, %v5275_v4  ;;  %v5672_v37 = vrot.slane %v5658_v14, %v12013_v39  ;;  %v5522_v31 = vcombine.high %v11105_v41, %v11120_v49 }
 0x92e   : > { %5694 = vrot.lane.b32.xlu1 %v5541_v9, %s12007_s13  ;;  %v5099_v23 = vcombine.low %v11186_v27, %v11196_v0  ;;  %v5139_v36 = vrot.slane %v5131_v61, %v12013_v39  ;;  %v12374_v9 = vld [vmem:[#allocation69_spill] sm:$0xff]  ;;  %v5490_v14 = vcombine.high %v11117_v50, %v11131_v7 }
 0x92f   : > { %v4903_v38 = vpop.permute.xlu0 %4902 }
 0x930   : > { %v4945_v24 = vsel %vm999_vm9, %v4944_v28, %v4903_v38  ;;  %v4911_v26 = vpop.permute.xlu1 %4910  ;;  %v5107_v57 = vrot.slane %v5099_v23, %v12013_v39  ;;  %v5504_v50 = vrot.slane %v5490_v14, %v12013_v39  ;;  %v12376_v14 = vld [vmem:[#allocation118_spill] sm:$0xff] }
 0x931   : > { %5726 = vrot.lane.b32.xlu0 %v5678_v30, %s12008_s14  ;;  %v4946_v46 = vsel %vm1001_vm10, %v4945_v24, %v4907_v11  ;;  %v12373_v11 = vld [vmem:[#allocation71_spill] sm:$0xff]  ;;  %v5640_v30 = vrot.slane %v5626_v25, %v12013_v39  ;;  %v5536_v24 = vrot.slane %v5522_v31, %v12013_v39 }
 0x932   : > { %5300 = vrot.lane.b32.xlu1 %v5150_v5, %s12010_s16  ;;  %v11210_v58 = vsel %vm1003_vm11, %v4946_v46, %v4911_v26  ;;  %v12375_v10 = vcombine.low %v12373_v11, %v12374_v9  ;;  %v5151_v61 = vcombine.low %v5107_v57, %v5139_v36  ;;  %v4520_v5 = vcombine.high %v10814_v22, %v10836_v59 }
 0x933   : > { %v4939_v13 = vpop.permute.xlu0 %4938  ;;  %v5679_v49 = vcombine.low %v5640_v30, %v5672_v37  ;;  %v5543_v23 = vcombine.low %v5504_v50, %v5536_v24  ;;  %v4384_v9 = vcombine.high %v10804_v20, %v10862_v3 }
 0x934   : > { %v4139_v53 = vpop.permute.xlu1 %4138  ;;  %v11217_v28 = vsel %vm1003_vm11, %v4953_v40, %v4939_v13 }
 0x935   : > { %v4193_v38 = vsel %vm991_vm5, %v12375_v10, %v4139_v53  ;;  %5332 = vrot.lane.b32.xlu0 %v5287_v1, %s12007_s13  ;;  %v4488_v1 = vcombine.high %v10770_v34, %v10773_v56  ;;  %v5288_v53 = vcombine.high %v5243_v32, %v5275_v4  ;;  %v4456_v10 = vcombine.high %v10738_v45, %v10723_v62 }
 0x936   : > { %5698 = vrot.lane.b32.xlu1 %v5542_v44, %s12008_s14  ;;  %v5268_v34 = vcombine.high %v11150_v52, %v11160_v60  ;;  %v5680_v4 = vcombine.high %v5640_v30, %v5672_v37  ;;  %v12380_v60 = vld [vmem:[#allocation86_spill] sm:$0xff]  ;;  %v12381_v37 = vld [vmem:[#allocation81_spill] sm:$0xff] }
 0x937   : > { %v4143_v41 = vpop.permute.xlu0 %4142  ;;  %v4502_v32 = vrot.slane %v4488_v1, %v12013_v39  ;;  %v4470_v52 = vrot.slane %v4456_v10, %v12013_v39  ;;  %v4408_v30 = vcombine.high %v12381_v37, %v12380_v60  ;;  %v5544_v10 = vcombine.high %v5504_v50, %v5536_v24  ;;  %v12394_v24 = vld [vmem:[#allocation116_spill] sm:$0xff]  ;;  %v12395_v50 = vld [vmem:[#allocation82_spill] sm:$0xff] }
 0x938   : > { %v4194_v40 = vsel %vm993_vm6, %v4193_v38, %v4143_v41  ;;  %v4147_v6 = vpop.permute.xlu1 %4146  ;;  %v4440_v41 = vcombine.high %v12376_v14, %v10744_v2  ;;  %v12382_v2 = vld [vmem:[#allocation115_spill] sm:$0xff]  ;;  %v5132_v37 = vcombine.high %v11179_v8, %v11189_v48 }
 0x939   : > { %v4195_v26 = vsel %vm995_vm7, %v4194_v40, %v4147_v6  ;;  %5730 = vrot.lane.b32.xlu0 %v5679_v49, %s7282_s25  ;;  %v12377_v49 = vld [vmem:[#allocation83_spill] sm:$0xff]  ;;  %v12378_v40 = vld [vmem:[#allocation80_spill] sm:$0xff] }
 0x93a   : > { %5304 = vrot.lane.b32.xlu1 %v5151_v61, %s12007_s13  ;;  %v12379_v62 = vcombine.low %v12377_v49, %v12378_v40  ;;  %v5152_v61 = vcombine.high %v5107_v57, %v5139_v36  ;;  %v4521_v57 = vcombine.low %v4470_v52, %v4502_v32  ;;  %v11278_v1 = vrot.slane %v4440_v41, %v12012_v16  ;;  %v12390_v49 = vld [vmem:[#allocation120_spill] sm:$0xff]  ;;  %v12391_v40 = vld [vmem:[#allocation119_spill] sm:$0xff] }
 0x93b   : > { %v4151_v7 = vpop.permute.xlu0 %4150  ;;  %v12392_v41 = vld [vmem:[#allocation79_spill] sm:$0xff] }
 0x93c   : > { %v4196_v25 = vsel %vm997_vm8, %v4195_v26, %v4151_v7  ;;  %v4155_v46 = vpop.permute.xlu1 %4154  ;;  %v5236_v26 = vcombine.high %v11157_v29, %v11172_v33  ;;  %v4352_v29 = vcombine.high %v10819_v12, %v10822_v15  ;;  %v4320_v12 = vcombine.high %v12391_v40, %v12390_v49 }
 0x93d   : > { %v4197_v13 = vsel %vm999_vm9, %v4196_v25, %v4155_v46  ;;  %4556 = vrot.lane.b32.xlu0 %v4520_v5, %s12011_s22  ;;  %v12383_v5 = vld [vmem:[#allocation88_spill] sm:$0xff] }
 0x93e   : > { %5702 = vrot.lane.b32.xlu1 %v5543_v23, %s7282_s25  ;;  %v4424_v25 = vcombine.high %v12383_v5, %v12382_v2  ;;  %v12384_v46 = vld [vmem:[#allocation84_spill] sm:$0xff]  ;;  %v12385_v23 = vld [vmem:[#allocation78_spill] sm:$0xff]  ;;  %v4334_v8 = vrot.slane %v4320_v12, %v12013_v39 }
 0x93f   : > { %v4159_v31 = vpop.permute.xlu0 %4158  ;;  %v4392_v36 = vcombine.high %v12385_v23, %v12384_v46 }
 0x940   : > { %v4198_v44 = vsel %vm1001_vm10, %v4197_v13, %v4159_v31  ;;  %v4163_v11 = vpop.permute.xlu1 %4162  ;;  %v5282_v13 = vrot.slane %v5268_v34, %v12013_v39  ;;  %v12386_v31 = vld [vmem:[#allocation101_spill] sm:$0xff]  ;;  %v5250_v34 = vrot.slane %v5236_v26, %v12013_v39  ;;  %v4366_v26 = vrot.slane %v4352_v29, %v12013_v39 }
 0x941   : > { %5336 = vrot.lane.b32.xlu0 %v5288_v53, %s12008_s14  ;;  %v11250_v38 = vsel %vm1003_vm11, %v4198_v44, %v4163_v11  ;;  %v12387_v53 = vld [vmem:[#allocation85_spill] sm:$0xff]  ;;  %v4406_v60 = vrot.slane %v4392_v36, %v12012_v16 }
 0x942   : > { %4528 = vrot.lane.b32.xlu1 %v4384_v9, %s12011_s22  ;;  %v4304_v44 = vcombine.high %v12387_v53, %v12386_v31  ;;  %v5289_v5 = vcombine.low %v5250_v34, %v5282_v13  ;;  %s7090_s22 = sshll.u32 %s7377_s21, 8  ;;  %s7295_s21 = smov [#allocation4]  }
 0x943   : > { %v4167_v56 = vpop.permute.xlu0 %4166 }
 0x944   : > { %v4200_v45 = vsel %vm991_vm5, %v12379_v62, %v4167_v56  ;;  %v4171_v6 = vpop.permute.xlu1 %4170  ;;  %v12388_v56 = vld [vmem:[#allocation46_spill] sm:$0xff] }
 0x945   : > { %v4201_v7 = vsel %vm993_vm6, %v4200_v45, %v4171_v6  ;;  %5734 = vrot.lane.b32.xlu0 %v5680_v4, %s7283_s29  ;;  %v12389_v4 = vld [vmem:[#allocation72_spill] sm:$0xff]  ;;  %v12393_v62 = vld [vmem:[#allocation74_spill] sm:$0xff]  ;;  %v4422_v6 = vrot.slane %v4408_v30, %v12012_v16  ;;  %v4318_v30 = vrot.slane %v4304_v44, %v12012_v16 }
 0x946   : > { %5308 = vrot.lane.b32.xlu1 %v5152_v61, %s12008_s14  ;;  %v4256_v14 = vcombine.high %v12389_v4, %v12388_v56  ;;  %v4272_v45 = vcombine.high %v12393_v62, %v12392_v41  ;;  %v4438_v61 = vrot.slane %v4424_v25, %v12012_v16  ;;  %v4386_v41 = vcombine.high %v4334_v8, %v4366_v26 }
 0x947   : > { %v4175_v33 = vpop.permute.xlu0 %4174  ;;  %v4471_v29 = vcombine.low %v4406_v60, %v4422_v6 }
 0x948   : > { %v4202_v11 = vsel %vm995_vm7, %v4201_v7, %v4175_v33  ;;  %v4179_v9 = vpop.permute.xlu1 %4178  ;;  %v4288_v7 = vcombine.high %v12395_v50, %v12394_v24  ;;  %v4503_v46 = vcombine.low %v4438_v61, %v11278_v1  ;;  %v4522_v33 = vcombine.high %v4470_v52, %v4502_v32 }
 0x949   : > { %v4203_v15 = vsel %vm997_vm8, %v4202_v11, %v4179_v9  ;;  %4560 = vrot.lane.b32.xlu0 %v4521_v57, %s12009_s15  ;;  %v5100_v57 = vcombine.high %v11186_v27, %v11196_v0  ;;  %v4286_v48 = vrot.slane %v4272_v45, %v12012_v16  ;;  %v4270_v53 = vrot.slane %v4256_v14, %v12012_v16 }
 0x94a   : > { %5706 = vrot.lane.b32.xlu1 %v5544_v10, %s7283_s29  ;;  %v4302_v31 = vrot.slane %v4288_v7, %v12012_v16  ;;  %v4385_v32 = vcombine.low %v4334_v8, %v4366_v26  ;;  %v5146_v52 = vrot.slane %v5132_v37, %v12013_v39  ;;  %v5290_v11 = vcombine.high %v5250_v34, %v5282_v13 }
 0x94b   : > { %v4183_v2 = vpop.permute.xlu0 %4182  ;;  %v4511_v9 = vrot.slane %v4503_v46, %v12013_v39  ;;  %v5114_v56 = vrot.slane %v5100_v57, %v12013_v39  ;;  %v4335_v4 = vcombine.low %v4270_v53, %v4286_v48  ;;  %v4479_v16 = vrot.slane %v4471_v29, %v12013_v39 }
 0x94c   : > { %v4204_v25 = vsel %vm999_vm9, %v4203_v15, %v4183_v2  ;;  %v4187_v23 = vpop.permute.xlu1 %4186  ;;  %v4367_v27 = vcombine.low %v4302_v31, %v4318_v30  ;;  %v4504_v62 = vcombine.high %v4438_v61, %v11278_v1  ;;  %v4472_v50 = vcombine.high %v4406_v60, %v4422_v6 }
 0x94d   : > { %v4205_v36 = vsel %vm1001_vm10, %v4204_v25, %v4187_v23  ;;  %5340 = vrot.lane.b32.xlu0 %v5289_v5, %s7282_s25  ;;  %v5153_v49 = vcombine.low %v5114_v56, %v5146_v52  ;;  %v4523_v12 = vcombine.low %v4479_v16, %v4511_v9  ;;  %v4343_v15 = vrot.slane %v4335_v4, %v12013_v39 }
 0x94e   : > { %4564 = vrot.lane.b32.xlu1 %v4522_v33, %s12010_s16  ;;  %v4375_v13 = vrot.slane %v4367_v27, %v12013_v39  ;;  %v5154_v37 = vcombine.high %v5114_v56, %v5146_v52  ;;  %v4518_v46 = vrot.slane %v4504_v62, %v12013_v39  ;;  %v4486_v1 = vrot.slane %v4472_v50, %v12013_v39 }
 0x94f   : > { %v4191_v44 = vpop.permute.xlu0 %4190  ;;  %v4368_v61 = vcombine.high %v4302_v31, %v4318_v30  ;;  %v4524_v25 = vcombine.high %v4479_v16, %v4511_v9  ;;  %v4336_v60 = vcombine.high %v4270_v53, %v4286_v48 }
 0x950   : > { %v11314_v0 = vpop.permute.xlu1 %6864  ;;  %v11318_v10 = vsel %vm1003_vm11, %v4205_v36, %v4191_v44  ;;  %v4387_v24 = vcombine.low %v4343_v15, %v4375_v13  ;;  %v4388_v5 = vcombine.high %v4343_v15, %v4375_v13  ;;  %v4526_v6 = vcombine.high %v4486_v1, %v4518_v46  ;;  %v3442_v36 = vld [vmem:[%s11569_s8] sm:$0xff] }
 0x951   : > { %4532 = vrot.lane.b32.xlu0 %v4385_v32, %s12009_s15  ;;  %v4525_v57 = vcombine.low %v4486_v1, %v4518_v46  ;;  %v4382_v8 = vrot.slane %v4368_v61, %v12013_v39  ;;  %v4350_v30 = vrot.slane %v4336_v60, %v12013_v39  ;;  %v12396_v39 = vld [vmem:[#allocation12_spill] sm:$0xff]  ;;  %v12400_v46 = vld [vmem:[#allocation41_spill] sm:$0xff]  ;;  %s7002_s15 = scalar_lea.hbm %s11572_s11, %s7090_s22 }
 0x952   : > { %5344 = vrot.lane.b32.xlu1 %v5290_v11, %s7283_s29 }
 0x953   : > { %v6837_v14 = vpop.permute.xlu0 %6836  ;;  %v4389_v48 = vcombine.low %v4350_v30, %v4382_v8  ;;  %v4390_v32 = vcombine.high %v4350_v30, %v4382_v8 }
 0x954   : > { %v6869_v40 = vpop.permute.xlu1 %6868 }
 0x955   : > { %5312 = vrot.lane.b32.xlu0 %v5153_v49, %s7282_s25  ;;  %v12397_v49 = vld [vmem:[#allocation36_spill] sm:$0xff] }
 0x956   : > { %4568 = vrot.lane.b32.xlu1 %v4523_v12, %s12007_s13  ;;  %v12398_v12 = vcombine.low %v12396_v39, %v12397_v49 }
 0x957   : > { %v11328_v34 = vpop.permute.xlu0 %6474 }
 0x958   : > { %v6841_v45 = vpop.permute.xlu1 %6840  ;;  %v6898_v13 = vsel %vm991_vm5, %v12398_v12, %v11314_v0 }
 0x959   : > { %4536 = vrot.lane.b32.xlu0 %v4386_v41, %s12010_s16  ;;  %v6899_v15 = vsel %vm993_vm6, %v6898_v13, %v6869_v40 }
 0x95a   : > { %4540 = vrot.lane.b32.xlu1 %v4387_v24, %s12007_s13 }
 0x95b   : > { %v6873_v7 = vpop.permute.xlu0 %6872 }
 0x95c   : > { %v11333_v2 = vpop.permute.xlu1 %6446  ;;  %v6900_v62 = vsel %vm995_vm7, %v6899_v15, %v6873_v7 }
 0x95d   : > { %5316 = vrot.lane.b32.xlu0 %v5154_v37, %s7283_s29 }
 0x95e   : > { %4544 = vrot.lane.b32.xlu1 %v4388_v5, %s12008_s14  ;;  %v12399_v5 = vld [vmem:[#allocation40_spill] sm:$0xff] }
 0x95f   : > { %v6479_v26 = vpop.permute.xlu0 %6478  ;;  %v12401_v1 = vcombine.low %v12399_v5, %v12400_v46 }
 0x960   : > { %v6845_v23 = vpop.permute.xlu1 %6844 }
 0x961   : > { %4572 = vrot.lane.b32.xlu0 %v4524_v25, %s12008_s14  ;;  %v6891_v61 = vsel %vm991_vm5, %v12401_v1, %v6837_v14  ;;  %v12409_v1 = vld [vmem:[#allocation31_spill] sm:$0xff]  ;;  %s377_s14 = sand.u32 1, %s7270_s18  }
 0x962   : > { %4580 = vrot.lane.b32.xlu1 %v4526_v6, %s7283_s29  ;;  %v6892_v0 = vsel %vm993_vm6, %v6891_v61, %v6841_v45  ;;  %s7067_s16 = sshll.u32 %s377_s14, 4 }
 0x963   : > { %v6877_v33 = vpop.permute.xlu0 %6876  ;;  %v6893_v7 = vsel %vm995_vm7, %v6892_v0, %v6845_v23  ;;  %v12403_v23 = vld [vmem:[#allocation75_spill] sm:$0xff]  ;;  %s379_s24 = scalar_lea.vmem [#allocation4], %s7067_s16  ;;  %s7222_s16 = sshll.u32 %s7295_s21, 4  ;;  %s7223_s16 = int_to_ptr.vmem [resolvable:$false] %s7222_s16 }
 0x964   : > { %v6483_v29 = vpop.permute.xlu1 %6482  ;;  %v6901_v50 = vsel %vm997_vm8, %v6900_v62, %v6877_v33  ;;  %v12405_v62 = vld [vmem:[#allocation111_spill] sm:$0xff]  ;;  %s7004_s30 = sshll.u32 %s379_s24, 4  ;;  %s7224_s0 = scalar_lea.vmem %s7223_s16, 512  ;;  %s7005_s30 = int_to_ptr.vmem [resolvable:$true] %s7004_s30 }
 0x965   : > { %4576 = vrot.lane.b32.xlu0 %v4525_v57, %s7282_s25  ;;  %p7225_p0 = scmp.lt.s32.totalorder %s7005_s30, %s7223_s16 }
 0x966   : > { %6907 = vperm.xlu1 %7145, %v3442_v36  }
 0x967   : > { %v6451_v31 = vpop.permute.xlu0 %6450 }
 0x968   : > { %v6881_v53 = vpop.permute.xlu1 %6880 }
 0x969   : > { %4548 = vrot.lane.b32.xlu0 %v4389_v48, %s7282_s25  ;;  %v6902_v37 = vsel %vm999_vm9, %v6901_v50, %v6881_v53  ;;  %v12406_v50 = vld [vmem:[#allocation110_spill] sm:$0xff]  ;;  %s6990_s25 = scalar_lea.sflag [#allocation5], %s377_s14 }
 0x96b   : > { %v6849_v44 = vpop.permute.xlu0 %6848 }
 0x96c   : > { %v6487_v52 = vpop.permute.xlu1 %6486  ;;  %v6894_v33 = vsel %vm997_vm8, %v6893_v7, %v6849_v44 }
 0x96d   : > { %4552 = vrot.lane.b32.xlu0 %v4390_v32, %s7283_s29  ;;  %s7218_s29 = scalar_lea.vmem %s7005_s30, 256 }
 0x96e   : > { %p7219_p11 = scmp.ne.s32.totalorder %s7005_s30, %s7218_s29  ;;  %p7226_p1 = scmp.lt.s32.totalorder %s7224_s0, %s7218_s29 }
 0x96f   : > { %v6455_v27 = vpop.permute.xlu0 %6454 }
 0x970   : > { %v6885_v11 = vpop.permute.xlu1 %6884  ;;  %p7220_p12 = pnand %p7219_p11, %p7394_p5  ;;  %p7227_p2 = por %p7226_p1, %p7225_p0 }
 0x971   : > { %v6903_v25 = vsel %vm1001_vm10, %v6902_v37, %v6885_v11  ;;  %v12402_v11 = vld [vmem:[#allocation103_spill] sm:$0xff]  ;;  %v12407_v37 = vcombine.low %v12405_v62, %v12406_v50  ;;  %v12412_v50 = vcombine.low %v10568_v18, %v10559_v55 }
 0x972   : > { %v12404_v39 = vcombine.low %v12402_v11, %v12403_v23  ;;  %p7221_p13 = pneg %p7220_p12 }
 0x973   : > { %v6853_v9 = vpop.permute.xlu0 %6852  ;;  %v6501_v5 = vsel %vm991_vm5, %v12407_v37, %v11333_v2 }
 0x974   : > { %v6459_v56 = vpop.permute.xlu1 %6458  ;;  %v6895_v57 = vsel %vm999_vm9, %v6894_v33, %v6853_v9  ;;  %v6508_v44 = vsel %vm991_vm5, %v12404_v39, %v11328_v34  ;;  %p7228_p3 = pnand %p7227_p2, %p7221_p13 }
 0x975   : > { %v6509_v9 = vsel %vm993_vm6, %v6508_v44, %v6479_v26  ;;  %v12408_v26 = vld [vmem:[#allocation28_spill] sm:$0xff]  ;;  %v12411_v44 = vcombine.low %v10487_v63, %v10480_v54 }
 0x976   : > { %v12410_v61 = vcombine.low %v12408_v26, %v12409_v1  ;;  %v12413_v1 = vld [vmem:[#allocation7_spill] sm:$0xff] }
 0x977   : > { %v11349_v4 = vpop.permute.xlu0 %5710 }
 0x978   : > { %v6857_v16 = vpop.permute.xlu1 %6856 }
 0x979   : > { %v6896_v8 = vsel %vm1001_vm10, %v6895_v57, %v6857_v16  ;;  %v6510_v16 = vsel %vm995_vm7, %v6509_v9, %v6483_v29  ;;  %v6102_v29 = vsel %vm991_vm5, %v12410_v61, %v10953_v42 }
 0x97a   : > { %v6511_v13 = vsel %vm997_vm8, %v6510_v16, %v6487_v52 }
 0x97b   : > { %v6491_v41 = vpop.permute.xlu0 %6490 }
 0x97c   : > { %v11358_v24 = vpop.permute.xlu1 %5682  ;;  %v6512_v15 = vsel %vm999_vm9, %v6511_v13, %v6491_v41 }
 0x97d   : > { %v5737_v37 = vsel %vm991_vm5, %v12412_v50, %v11358_v24 }
 0x97f   : > { %v6889_v6 = vpop.permute.xlu0 %6888 }
 0x980   : > { %v6463_v40 = vpop.permute.xlu1 %6462  ;;  %v6904_v60 = vsel %vm1003_vm11, %v6903_v25, %v6889_v6  ;;  %v6502_v25 = vsel %vm993_vm6, %v6501_v5, %v6451_v31  ;;  %v6103_v6 = vsel %vm993_vm6, %v6102_v29, %v10965_v35 }
 0x981   : > { %6928 = vmatprep.subr.mxu0 %v6904_v60  ;;  %v6503_v0 = vsel %vm995_vm7, %v6502_v25, %v6455_v27  ;;  %v6104_v2 = vsel %vm995_vm7, %v6103_v6, %v10985_v43 }
 0x982   : > { %v6504_v60 = vsel %vm997_vm8, %v6503_v0, %v6459_v56  ;;  %v6105_v7 = vsel %vm997_vm8, %v6104_v2, %v10995_v21 }
 0x983   : > { %v5715_v36 = vpop.permute.xlu0 %5714  ;;  %v6505_v42 = vsel %vm999_vm9, %v6504_v60, %v6463_v40  ;;  %v6106_v33 = vsel %vm999_vm9, %v6105_v7, %v11011_v47 }
 0x984   : > { %v6861_v30 = vpop.permute.xlu1 %6860  ;;  %v6107_v27 = vsel %vm1001_vm10, %v6106_v33, %v11029_v51 }
 0x985   : > { %v6897_v14 = vsel %vm1003_vm11, %v6896_v8, %v6861_v30  ;;  %v6108_v43 = vsel %vm1003_vm11, %v6107_v27, %v11066_v17  ;;  %v5744_v17 = vsel %vm991_vm5, %v12411_v44, %v11349_v4  ;;  %v12417_v27 = vld [vmem:[#allocation34_spill] sm:$0xff] }
 0x986   : > { %6929 = vmatpush1.msra.mxu0 %v6897_v14  ;;  %v5745_v9 = vsel %vm993_vm6, %v5744_v17, %v5715_v36 }
 0x987   : > { %v6495_v48 = vpop.permute.xlu0 %6494 }
 0x988   : > { %v5687_v53 = vpop.permute.xlu1 %5686  ;;  %v6513_v46 = vsel %vm1001_vm10, %v6512_v15, %v6495_v48 }
 0x989   : > { %v5738_v4 = vsel %vm993_vm6, %v5737_v37, %v5687_v53  ;;  %v12414_v53 = vld [vmem:[#allocation8_spill] sm:$0xff]  ;;  %v12426_v37 = vld [vmem:[#allocation54_spill] sm:$0xff] }
 0x98a   : > { %v12415_v61 = vcombine.low %v12413_v1, %v12414_v53  ;;  %v12431_v1 = vld [vmem:[#allocation99_spill] sm:$0xff] }
 0x98b   : > { %v11374_v45 = vpop.permute.xlu0 %5320 }
 0x98c   : > { %v6467_v32 = vpop.permute.xlu1 %6466  ;;  %v5354_v29 = vsel %vm991_vm5, %v12415_v61, %v11374_v45  ;;  %v12416_v45 = vld [vmem:[#allocation38_spill] sm:$0xff]  ;;  %v12433_v61 = vld [vmem:[#allocation91_spill] sm:$0xff] }
 0x98d   : > { %v6506_v57 = vsel %vm1001_vm10, %v6505_v42, %v6467_v32 }
 0x98f   : > { %v5719_v49 = vpop.permute.xlu0 %5718 }
 0x990   : > { %v11383_v12 = vpop.permute.xlu1 %5292  ;;  %v5746_v16 = vsel %vm995_vm7, %v5745_v9, %v5719_v49 }
 0x993   : > { %v6499_v34 = vpop.permute.xlu0 %6498 }
 0x994   : > { %v5691_v52 = vpop.permute.xlu1 %5690  ;;  %v6514_v41 = vsel %vm1003_vm11, %v6513_v46, %v6499_v34 }
 0x995   : > { %6930 = vmatprep.subr.mxu0 %v6514_v41  ;;  %v5739_v49 = vsel %vm995_vm7, %v5738_v4, %v5691_v52 }
 0x997   : > { %v5325_v31 = vpop.permute.xlu0 %5324 }
 0x998   : > { %v6471_v35 = vpop.permute.xlu1 %6470  ;;  %v5355_v52 = vsel %vm993_vm6, %v5354_v29, %v5325_v31  ;;  %v12418_v31 = vcombine.low %v12416_v45, %v12417_v27  ;;  %v12438_v27 = vld [vmem:[#allocation39_spill] sm:$0xff] }
 0x999   : > { %v6507_v8 = vsel %vm1003_vm11, %v6506_v57, %v6471_v35 }
 0x99a   : > { %6931 = vmatpush1.msra.mxu0 %v6507_v8  ;;  %v5347_v8 = vsel %vm991_vm5, %v12418_v31, %v11383_v12  ;;  %v12419_v12 = vcombine.low %v10814_v22, %v10836_v59  ;;  %v12424_v59 = vld [vmem:[#allocation102_spill] sm:$0xff] }
 0x99b   : > { %6932 = vmatprep.subr.mxu0 %v6108_v43  ;;  %v5723_v21 = vpop.permute.xlu0 %5722 }
 0x99c   : > { %6933 = vmatpush1.msra.mxu0 %v11056_v19  ;;  %v5297_v56 = vpop.permute.xlu1 %5296  ;;  %v5747_v15 = vsel %vm997_vm8, %v5746_v16, %v5723_v21  ;;  %v12421_v16 = vld [vmem:[#allocation18_spill] sm:$0xff] }
 0x99d   : > { %v5348_v43 = vsel %vm993_vm6, %v5347_v8, %v5297_v56  ;;  %v12439_v8 = vld [vmem:[#allocation100_spill] sm:$0xff] }
 0x99f   : > { %v5329_v40 = vpop.permute.xlu0 %5328 }
 0x9a0   : > { %v5695_v30 = vpop.permute.xlu1 %5694  ;;  %v5356_v6 = vsel %vm995_vm7, %v5355_v52, %v5329_v40  ;;  %v12434_v52 = vld [vmem:[#allocation37_spill] sm:$0xff] }
 0x9a1   : > { %v5740_v46 = vsel %vm997_vm8, %v5739_v49, %v5695_v30  ;;  %v12429_v49 = vld [vmem:[#allocation90_spill] sm:$0xff] }
 0x9a3   : > { %v5727_v47 = vpop.permute.xlu0 %5726 }
 0x9a4   : > { %v5301_v14 = vpop.permute.xlu1 %5300  ;;  %v5748_v62 = vsel %vm999_vm9, %v5747_v15, %v5727_v47  ;;  %v12422_v15 = vld [vmem:[#allocation51_spill] sm:$0xff] }
 0x9a5   : > { %v5349_v40 = vsel %vm995_vm7, %v5348_v43, %v5301_v14 }
 0x9a7   : > { %v5333_v48 = vpop.permute.xlu0 %5332 }
 0x9a8   : > { %v5699_v32 = vpop.permute.xlu1 %5698  ;;  %v5357_v0 = vsel %vm997_vm8, %v5356_v6, %v5333_v48 }
 0x9a9   : > { %v5741_v34 = vsel %vm999_vm9, %v5740_v46, %v5699_v32 }
 0x9ab   : > { %v5731_v11 = vpop.permute.xlu0 %5730 }
 0x9ac   : > { %v5305_v23 = vpop.permute.xlu1 %5304  ;;  %v5749_v54 = vsel %vm1001_vm10, %v5748_v62, %v5731_v11  ;;  %v12423_v62 = vcombine.low %v12421_v16, %v12422_v15 }
 0x9ad   : > { %v5350_v47 = vsel %vm997_vm8, %v5349_v40, %v5305_v23  ;;  %v12440_v40 = vld [vmem:[#allocation93_spill] sm:$0xff] }
 0x9af   : > { %v4557_v51 = vpop.permute.xlu0 %4556 }
 0x9b0   : > { %v5703_v39 = vpop.permute.xlu1 %5702  ;;  %v4590_v56 = vsel %vm991_vm5, %v12419_v12, %v4557_v51  ;;  %v12425_v51 = vld [vmem:[#allocation29_spill] sm:$0xff] }
 0x9b1   : > { %v5742_v55 = vsel %vm1001_vm10, %v5741_v34, %v5703_v39 }
 0x9b3   : > { %v5337_v19 = vpop.permute.xlu0 %5336 }
 0x9b4   : > { %v4529_v13 = vpop.permute.xlu1 %4528  ;;  %v5358_v2 = vsel %vm999_vm9, %v5357_v0, %v5337_v19  ;;  %v12420_v19 = vld [vmem:[#allocation19_spill] sm:$0xff] }
 0x9b5   : > { %v12435_v0 = vld [vmem:[#allocation35_spill] sm:$0xff] }
 0x9b7   : > { %v5735_v63 = vpop.permute.xlu0 %5734 }
 0x9b8   : > { %v5309_v36 = vpop.permute.xlu1 %5308  ;;  %v5750_v5 = vsel %vm1003_vm11, %v5749_v54, %v5735_v63  ;;  %v12427_v54 = vcombine.low %v12425_v51, %v12426_v37  ;;  %v12428_v63 = vcombine.low %v10804_v20, %v10862_v3 }
 0x9b9   : > { %6934 = vmatprep.subr.mxu0 %v5750_v5  ;;  %v5351_v48 = vsel %vm999_vm9, %v5350_v47, %v5309_v36 }
 0x9ba   : > { %v4583_v4 = vsel %vm991_vm5, %v12428_v63, %v4529_v13  ;;  %v12432_v13 = vld [vmem:[#allocation32_spill] sm:$0xff] }
 0x9bb   : > { %v4561_v26 = vpop.permute.xlu0 %4560 }
 0x9bc   : > { %v5707_v18 = vpop.permute.xlu1 %5706  ;;  %v4591_v23 = vsel %vm993_vm6, %v4590_v56, %v4561_v26 }
 0x9bd   : > { %v5743_v24 = vsel %vm1003_vm11, %v5742_v55, %v5707_v18  ;;  %v12430_v55 = vld [vmem:[#allocation89_spill] sm:$0xff] }
 0x9be   : > { %6935 = vmatpush1.msra.mxu0 %v5743_v24 }
 0x9bf   : > { %v5341_v25 = vpop.permute.xlu0 %5340 }
 0x9c0   : > { %v4565_v41 = vpop.permute.xlu1 %4564  ;;  %v5359_v7 = vsel %vm1001_vm10, %v5358_v2, %v5341_v25 }
 0x9c1   : > { %v4592_v17 = vsel %vm995_vm7, %v4591_v23, %v4565_v41 }
 0x9c3   : > { %v4533_v60 = vpop.permute.xlu0 %4532 }
 0x9c4   : > { %v5345_v42 = vpop.permute.xlu1 %5344  ;;  %v4584_v34 = vsel %vm993_vm6, %v4583_v4, %v4533_v60 }
 0x9c5   : > { %v5360_v33 = vsel %vm1003_vm11, %v5359_v7, %v5345_v42  ;;  %v12436_v42 = vld [vmem:[#allocation92_spill] sm:$0xff] }
 0x9c6   : > { %6936 = vmatprep.subr.mxu0 %v5360_v33 }
 0x9c7   : > { %v5313_v57 = vpop.permute.xlu0 %5312 }
 0x9c8   : > { %v4569_v35 = vpop.permute.xlu1 %4568  ;;  %v5352_v32 = vsel %vm1001_vm10, %v5351_v48, %v5313_v57  ;;  %v12441_v48 = vld [vmem:[#allocation14_spill] sm:$0xff] }
 0x9c9   : > { %v4593_v9 = vsel %vm997_vm8, %v4592_v17, %v4569_v35  ;;  %v12437_v35 = vld [vmem:[#allocation87_spill] sm:$0xff] }
 0x9cb   : > { %v4537_v21 = vpop.permute.xlu0 %4536 }
 0x9cc   : > { %v4541_v30 = vpop.permute.xlu1 %4540  ;;  %v4585_v24 = vsel %vm995_vm7, %v4584_v34, %v4537_v21  ;;  %v3441_v21 = vld [vmem:[%s11568_s7] sm:$0xff] }
 0x9cd   : > { %v4586_v25 = vsel %vm997_vm8, %v4585_v24, %v4541_v30 }
 0x9cf   : > { %v5317_v11 = vpop.permute.xlu0 %5316 }
 0x9d0   : > { %v5353_v39 = vsel %vm1003_vm11, %v5352_v32, %v5317_v11  ;;  %v4545_v44 = vpop.permute.xlu1 %4544 }
 0x9d1   : > { %6937 = vmatpush1.msra.mxu0 %v5353_v39  ;;  %v4587_v6 = vsel %vm999_vm9, %v4586_v25, %v4545_v44  ;;  %v12443_v44 = vld [vmem:[#allocation11_spill] sm:$0xff] }
 0x9d2   : > { %6938 = vmatprep.subr.mxu0 %v11217_v28  ;;  %v3794_v28 = vsel %vm991_vm5, %v12423_v62, %v12420_v19  ;;  %v473_v12 = vadd.f32 %v12443_v44, %v12441_v48 }
 0x9d3   : > { %v4573_v14 = vpop.permute.xlu0 %4572  ;;  %6939 = vmatpush1.msra.mxu0 %v11210_v58  ;;  %v3787_v58 = vsel %vm991_vm5, %v12427_v54, %v12424_v59  ;;  %v3795_v18 = vsel %vm993_vm6, %v3794_v28, %v12430_v55 }
 0x9d4   : > { %v4594_v50 = vsel %vm999_vm9, %v4593_v9, %v4573_v14  ;;  %v4581_v36 = vpop.permute.xlu1 %4580  ;;  %v3788_v46 = vsel %vm993_vm6, %v3787_v58, %v12429_v49  ;;  %v3796_v20 = vsel %vm995_vm7, %v3795_v18, %v12431_v1 }
 0x9d5   : > { %v3789_v53 = vsel %vm995_vm7, %v3788_v46, %v12432_v13  ;;  %v3797_v41 = vsel %vm997_vm8, %v3796_v20, %v12434_v52 }
 0x9d6   : > { %v3790_v29 = vsel %vm997_vm8, %v3789_v53, %v12433_v61  ;;  %v3798_v2 = vsel %vm999_vm9, %v3797_v41, %v12435_v0 }
 0x9d7   : > { %v4577_v22 = vpop.permute.xlu0 %4576  ;;  %v3791_v33 = vsel %vm999_vm9, %v3790_v29, %v12436_v42  ;;  %v3799_v31 = vsel %vm1001_vm10, %v3798_v2, %v12438_v27 }
 0x9d8   : > { %v4595_v5 = vsel %vm1001_vm10, %v4594_v50, %v4577_v22  ;;  %v3792_v45 = vsel %vm1001_vm10, %v3791_v33, %v12437_v35  ;;  %v3800_v43 = vsel %vm1003_vm11, %v3799_v31, %v12439_v8 }
 0x9d9   : > { %v4596_v26 = vsel %vm1003_vm11, %v4595_v5, %v4581_v36  ;;  %v3793_v30 = vsel %vm1003_vm11, %v3792_v45, %v12440_v40 }
 0x9da   : > { %6940 = vmatprep.subr.mxu0 %v4596_v26 }
 0x9db   : > { %v4549_v3 = vpop.permute.xlu0 %4548 }
 0x9dc   : > { %v4588_v60 = vsel %vm1001_vm10, %v4587_v6, %v4549_v3 }
 0x9df   : > { %v4553_v7 = vpop.permute.xlu0 %4552 }
 0x9e0   : > { %v4589_v57 = vsel %vm1003_vm11, %v4588_v60, %v4553_v7 }
 0x9e1   : > { %6941 = vmatpush1.msra.mxu0 %v4589_v57 }
 0x9e2   : > { %6942 = vmatprep.subr.mxu0 %v11318_v10  ;;  %v6908_v10 = vpop.permute.xlu1 %6907 }
 0x9e3   : > { %6943 = vmatpush1.msra.mxu0 %v11250_v38  ;;  %v12442_v38 = vld [vmem:[#allocation16_spill] sm:$0xff] }
 0x9e4   : > { %6944 = vmatprep.subr.mxu0 %v3800_v43  ;;  %v471_v32 = vadd.f32 %v12442_v38, %v12441_v48 }
 0x9e5   : > { %6945 = vmatpush1.msra.mxu0 %v3793_v30 }
 0x9e6   : > { %7083 = vmatmul.mubr.msk.f32.vlgmr.msra.gmra.mxu0 %vm6910_vm13, %v3441_v21 }
 0xaa6   : > { %v6980_v47 = vpop.f32.mrf.mxu0 }
 0xaa7   : > { %v6981_v11 = vadd.f32 %v6980_v47, %v6908_v10 }
 0xaa8   : > { %v6982_v39 = vpop.f32.mrf.mxu0 }
 0xaa9   : > { %v6985_v56 = vadd.f32 %v6981_v11, %v471_v32  ;;  %v6983_v14 = vadd.f32 %v6982_v39, %v6908_v10 }
 0xaab   : > { %6987 = vst [vmem:[%s379_s24] sm:$0xff] %v6985_v56  ;;  %v6986_v23 = vadd.f32 %v6983_v14, %v473_v12 }
 0xaad   : > { %6988 = vst [vmem:[%s379_s24 + $0x8] sm:$0xff] %v6986_v23 }
 0xaae   : > { %7231 = shalt.err (!%p7228_p3)
}
 0xaaf   : > { %s7232_s1 = scalar_lea.hbm %s7002_s15, 256  ;;  %s7236_s24 = scalar_lea.hbm %s11572_s11, 512 }
 0xab0   : > { %p7233_p4 = scmp.ne.s32.totalorder %s7002_s15, %s7232_s1  ;;  %p7237_p9 = scmp.lt.s32.totalorder %s7002_s15, %s11572_s11 }
 0xab1   : > { %p7238_p10 = scmp.lt.s32.totalorder %s7236_s24, %s7232_s1 }
 0xab2   : > { %p7234_p7 = pnand %p7233_p4, %p7394_p5 }
 0xab3   : > { %p7239_p11 = por %p7238_p10, %p7237_p9 }
 0xab4   : > { %p7235_p8 = pneg %p7234_p7 }
 0xab6   : > { %p7240_p12 = pnand %p7239_p11, %p7235_p8 }
 0xab8   : > { %7243 = shalt.err (!%p7240_p12)
}
 0xab9   : > { %7091 = dma.vmem_to_hbm [thread:$0]  (%p7394_p5), %s7005_s30, 256, %s7002_s15, %s6990_s25  }
 0xaba PF: > { %p7097_p13 = scmp.ge.s32.totalorder %s7278_s20, 2  ;;  %s7016_s0 = sand.u32 1, %s7266_s17  }
 0xabb   : > { %s7017_s29 = scalar_lea.sflag [#allocation5], %s7016_s0 }
 0xabc   : > { %p7094_p0 = pnand %p7097_p13, %p7398_p6 }
 0xabe   : > { %p7095_p1 = pneg %p7094_p0 }
 0xac0   : > { %7261 = dma.done.wait (%p7095_p1), %s7017_s29, 256  }
 0xac1   : > { %7263 = vsyncadd (%p7095_p1), %s7017_s29, 4294967040  ;;  %p21_p2 = scmp.ge.s32.totalorder %s7381_s23, 4   ;;  %s12444_s17 = smov %s7270_s18 }
 0xac2   : > { %s12445_s18 = smov %s7274_s19  ;;  %s12446_s19 = smov %s7392_s26 }
 0xac3   : > { %s12447_s20 = smov %s7381_s23  ;;  %23 = sbr.rel (!%p21_p2) target bundleno = 6 (0x6), region = 99 }
 0xac8   :  { %7022 = vsyncpa [#allocation5], 1 }
 0xac9   :  { %7024 = vsyncpa [#allocation5 + $0x1], 1 }

</bundles_post_ra>
